<compile_context>
chip_gen: v6e
topology: v6e:2x2x1
jax: 0.10.0
libtpu: 0.0.40
codegen_flags: <defaults>
</compile_context>

<pallas_src>
import jax
import jax.numpy as jnp
from jax.experimental import pallas as pl
from jax.experimental.pallas import tpu as pltpu

LEAKY_SLOPE = 0.2
BN_EPS = 1e-5

C1, C2, C3 = 64, 256, 512          # channel widths of conv1/conv2/conv3
KH1, KW1 = 3, 12                   # conv1 kernel
KH3 = 6                            # conv3 kernel height (width is 1)


def _lrelu(x):
    return jnp.where(x >= 0.0, x, LEAKY_SLOPE * x)


# ------------------------------ fused kernel ------------------------------- #

def _make_fused_kernel(H1, H3, G):
    """conv1+bn1+lrelu, conv2(3x1, pad (1,0))+bn2+lrelu, pool2(H) + conv3(6x1),
    all VMEM/vreg resident.  Row layout: row = h * G + (n * W2 + w), G sublane
    aligned, so a shift of 1 in H == a shift of G rows (always 8-aligned)."""
    M1 = H1 * G

    def kernel(p1_ref, w1_ref, b1_ref, w2_ref, b2_ref, w3_hbm_ref, out_ref,
               w3_vmem, w3_sem):
        # Kick off the dominant transfer (bf16 w3, ~1.5 MB) immediately; the
        # conv1/conv2 compute below hides under it.
        w3_copy = pltpu.make_async_copy(w3_hbm_ref, w3_vmem, w3_sem)
        w3_copy.start()

        # ---- conv1 (pool-pruned im2col patches) + folded BN1 + LeakyReLU ----
        a1 = jnp.dot(p1_ref[...], w1_ref[...], preferred_element_type=jnp.float32)
        a1 = _lrelu(a1 + b1_ref[...])                                  # (M1, 64) f32

        # ---- conv2: (3,1) conv along H, pad (1,0), as 3 tap matmuls combined
        #      with value-level sublane shifts (no scratch, no ref RMW) ----
        zpad = jnp.zeros((G, C2), jnp.float32)
        a2 = jnp.dot(a1, w2_ref[pl.ds(C1, C1), :],
                     preferred_element_type=jnp.float32)               # kh=1 (center)
        d_km1 = jnp.dot(a1[:M1 - G, :], w2_ref[pl.ds(0, C1), :],
                        preferred_element_type=jnp.float32)            # kh=0 (input h-1)
        a2 = a2 + jnp.concatenate([zpad, d_km1], axis=0)
        d_kp1 = jnp.dot(a1[G:, :], w2_ref[pl.ds(2 * C1, C1), :],
                        preferred_element_type=jnp.float32)            # kh=2 (input h+1)
        a2 = a2 + jnp.concatenate([d_kp1, zpad], axis=0)
        a2 = _lrelu(a2 + b2_ref[...])                                  # (M1, 256) f32

        # ---- pool2 over H (stride 2) fused into conv3's (6,1) tap gather;
        #      six taps concatenated along lanes -> ONE K=1536 bf16 matmul ----
        rows = []
        for ho in range(H3):
            taps = [a2[2 * (ho + t) * G:(2 * (ho + t) + 1) * G, :]
                    .astype(jnp.bfloat16) for t in range(KH3)]
            rows.append(jnp.concatenate(taps, axis=1))                 # (G, 6*256)
        p3 = jnp.concatenate(rows, axis=0)                             # (H3*G, 1536)

        w3_copy.wait()
        out_ref[...] = jnp.dot(p3, w3_vmem[...],
                               preferred_element_type=jnp.float32)     # (H3*G, 512)

    return kernel


# ------------------------------- glue (JAX) -------------------------------- #

def _w1_to_matmul(w):
    """(Cout, Cin, KH, KW) -> (Cin*KH*KW, Cout) in (cin, kh, kw) order, matching
    jax.lax.conv_general_dilated_patches channel ordering (Cin=1 here)."""
    cout, cin, kh, kw = w.shape
    return jnp.transpose(w, (1, 2, 3, 0)).reshape(cin * kh * kw, cout)


def _w_taps_to_matmul(w):
    """(Cout, Cin, KH, 1) -> (KH*Cin, Cout), tap-major (kh slow, cin fast)."""
    cout, cin, kh, kw = w.shape
    return jnp.transpose(w, (2, 3, 1, 0)).reshape(kh * kw * cin, cout)


def fold_bn(gamma, beta, mean, var):
    scale = gamma / jnp.sqrt(var + BN_EPS)
    bias = beta - mean * scale
    return scale, bias


def audio_encoder_forward(x_nchw, params):
    # TODO(synk): BatchNorm is applied in eval mode (running stats folded into a
    # per-channel affine); training-mode batch statistics are not computed.
    N, _, H0, W0 = x_nchw.shape

    # Shape arithmetic of the PyTorch module (MaxPool2d(1, s) == subsample by s).
    H1c, W1c = H0 - (KH1 - 1), W0 - (KW1 - 1)              # conv1, valid
    H1, W1 = (H1c - 1) // 3 + 1, (W1c - 1) // 3 + 1        # pool1: stride 3
    H2, W2 = (H1 - 1) // 2 + 1, (W1 - 1) // 2 + 1          # pool2: stride 2
    H3 = H2 - (KH3 - 1)                                    # conv3 (6,1), valid; W3 == W2
    G = ((N * W2 + 7) // 8) * 8                            # sublane-aligned group

    # Fold BN (eval mode) scale into weight columns; bias stays for the epilogue.
    s1, b1 = fold_bn(*params["bn1"])
    s2, b2 = fold_bn(*params["bn2"])
    w1 = _w1_to_matmul(params["w1"]) * s1[None, :]          # (36, 64)   f32
    w2 = _w_taps_to_matmul(params["w2"]) * s2[None, :]      # (192, 256) f32
    w3 = _w_taps_to_matmul(params["w3"]).astype(jnp.bfloat16)  # (1536, 512) bf16

    # conv1 im2col patches ONLY at positions that survive the pools:
    #   H stride 3 (pool1; conv2 mixes those rows), W stride 6 (pool1 * pool2;
    #   conv2/conv3 are 1-wide in W).  One patches op instead of 36 slices.
    p = jax.lax.conv_general_dilated_patches(
        x_nchw.astype(jnp.float32), filter_shape=(KH1, KW1),
        window_strides=(3, 6), padding="VALID",
        dimension_numbers=("NCHW", "OIHW", "NCHW"))          # (N, 36, H1, W2)
    p = jnp.transpose(p, (2, 0, 3, 1)).reshape(H1, N * W2, KH1 * KW1)
    p = jnp.pad(p, ((0, 0), (0, G - N * W2), (0, 0)))
    p = p.reshape(H1 * G, KH1 * KW1)

    out = pl.pallas_call(
        _make_fused_kernel(H1, H3, G),
        out_shape=jax.ShapeDtypeStruct((H3 * G, C3), jnp.float32),
        in_specs=[pl.BlockSpec(memory_space=pltpu.MemorySpace.VMEM)] * 5
                 + [pl.BlockSpec(memory_space=pl.ANY)],       # w3 stays in HBM
        out_specs=pl.BlockSpec(memory_space=pltpu.MemorySpace.VMEM),
        scratch_shapes=[pltpu.VMEM((KH3 * C2, C3), jnp.bfloat16),  # w3 landing buffer
                        pltpu.SemaphoreType.DMA],
    )(p, w1, b1.reshape(1, C1), w2, b2.reshape(1, C2), w3)

    # Rows are (h_out, n*W2 + w) with G-padding; unpack to NCHW.
    out = out.reshape(H3, G, C3)[:, :N * W2, :].reshape(H3, N, W2, C3)
    return jnp.transpose(out, (1, 3, 0, 2))                  # (N, 512, H3, W2)


# --------------------------- pure-JAX reference ---------------------------- #

def reference_forward(x_nchw, params):
    def conv(x, w, pad_h):
        return jax.lax.conv_general_dilated(
            x, w, window_strides=(1, 1),
            padding=((pad_h, pad_h), (0, 0)),
            dimension_numbers=("NCHW", "OIHW", "NCHW"))

    def bn(x, bnp):
        gamma, beta, mean, var = bnp
        s = gamma / jnp.sqrt(var + BN_EPS)
        b = beta - mean * s
        return x * s[None, :, None, None] + b[None, :, None, None]

    x = x_nchw.astype(jnp.float32)
    net = conv(x, params["w1"], 0)
    net = _lrelu(bn(net, params["bn1"]))
    net = net[:, :, ::3, ::3]                      # MaxPool2d(1, 3) == subsample
    net = conv(net, params["w2"], 1)
    net = _lrelu(bn(net, params["bn2"]))
    net = net[:, :, ::2, ::2]                      # MaxPool2d(1, 2) == subsample
    net = conv(net, params["w3"], 0)
    return net


# ----------------------------- params / main ------------------------------- #

def init_params(key):
    ks = jax.random.split(key, 11)

    def conv_w(k, cout, cin, kh, kw):
        return 0.05 * jax.random.normal(k, (cout, cin, kh, kw), jnp.float32)

    def bn_params(kg, kb, km, kv, c):
        gamma = 1.0 + 0.1 * jax.random.normal(kg, (c,), jnp.float32)
        beta = 0.1 * jax.random.normal(kb, (c,), jnp.float32)
        mean = 0.1 * jax.random.normal(km, (c,), jnp.float32)
        var = jax.random.uniform(kv, (c,), jnp.float32, minval=0.5, maxval=1.5)
        return gamma, beta, mean, var

    return {
        "w1": conv_w(ks[0], C1, 1, KH1, KW1),
        "w2": conv_w(ks[1], C2, C1, 3, 1),
        "w3": conv_w(ks[2], C3, C2, KH3, 1),
        "bn1": bn_params(ks[3], ks[4], ks[5], ks[6], C1),
        "bn2": bn_params(ks[7], ks[8], ks[9], ks[10], C2),
    }


if __name__ == "__main__":
    key = jax.random.PRNGKey(0)
    k_param, k_x = jax.random.split(key)
    params = init_params(k_param)

    # (N=2, C=1, H=33, W=23) -> conv1 (2,64,31,12) -> pool1 (2,64,11,4)
    # -> conv2 (2,256,11,4) -> pool2 (2,256,6,2) -> conv3 (2,512,1,2)
    x = jax.random.normal(k_x, (2, 1, 33, 23), jnp.float32)

    forward = jax.jit(audio_encoder_forward)
    out = jax.block_until_ready(forward(x, params))

    ref = jax.block_until_ready(jax.jit(reference_forward)(x, params))
    assert out.shape == (2, 512, 1, 2), out.shape
    # Tolerance relaxed vs. the f32-only version: conv3 runs with bf16 operands
    # (f32 accumulation); per-element relative error is ~0.4%.
    assert jnp.allclose(out, ref, atol=2e-2, rtol=2e-2), "mismatch vs reference"

    print("KERNEL_OK")
</pallas_src>

<mosaic_0001>
module attributes {stable_mosaic.version = 11 : i64} {
  func.func @kernel(%arg0: memref<88x36xf32, #tpu.memory_space<vmem>>, %arg1: memref<36x64xf32, #tpu.memory_space<vmem>>, %arg2: memref<1x64xf32, #tpu.memory_space<vmem>>, %arg3: memref<192x256xf32, #tpu.memory_space<vmem>>, %arg4: memref<1x256xf32, #tpu.memory_space<vmem>>, %arg5: memref<1536x512xbf16, #tpu.memory_space<any>>, %arg6: memref<8x512xf32, #tpu.memory_space<vmem>>, %arg7: memref<1536x512xbf16, #tpu.memory_space<vmem>>, %arg8: memref<!tpu.dma_semaphore, #tpu.memory_space<semaphore_mem>>) attributes {dimension_semantics = [], scalar_prefetch = 0 : i64, scratch_operands = 2 : i64, tpu.core_type = #tpu.core_type<tc>} {
    tpu.enqueue_dma source(%arg5 : memref<1536x512xbf16, #tpu.memory_space<any>>) target(%arg7 : memref<1536x512xbf16, #tpu.memory_space<vmem>>) target_semaphore(%arg8 : memref<!tpu.dma_semaphore, #tpu.memory_space<semaphore_mem>>)
    %c0 = arith.constant 0 : index
    %c0_0 = arith.constant 0 : index
    %0 = vector.load %arg0[%c0, %c0_0] : memref<88x36xf32, #tpu.memory_space<vmem>>, vector<88x36xf32>
    %c0_1 = arith.constant 0 : index
    %c0_2 = arith.constant 0 : index
    %1 = vector.load %arg1[%c0_1, %c0_2] : memref<36x64xf32, #tpu.memory_space<vmem>>, vector<36x64xf32>
    %cst = arith.constant dense<0.000000e+00> : vector<88x64xf32>
    %2 = tpu.matmul %0, %1, %cst {dimension_numbers = #tpu.dot_dimension_numbers<[1], [0], [0], [1], [0, 0, 1, 1], [], []>} : vector<88x36xf32>, vector<36x64xf32>, vector<88x64xf32> -> vector<88x64xf32>
    %c0_3 = arith.constant 0 : index
    %c0_4 = arith.constant 0 : index
    %3 = vector.load %arg2[%c0_3, %c0_4] : memref<1x64xf32, #tpu.memory_space<vmem>>, vector<1x64xf32>
    %4 = vector.broadcast %3 : vector<1x64xf32> to vector<88x64xf32>
    %5 = arith.addf %2, %4 : vector<88x64xf32>
    %cst_5 = arith.constant 0.000000e+00 : f32
    %6 = vector.broadcast %cst_5 : f32 to vector<88x64xf32>
    %7 = arith.cmpf oge, %5, %6 : vector<88x64xf32>
    %cst_6 = arith.constant 2.000000e-01 : f32
    %8 = vector.broadcast %cst_6 : f32 to vector<88x64xf32>
    %9 = arith.mulf %8, %5 : vector<88x64xf32>
    %10 = arith.select %7, %5, %9 : vector<88x64xi1>, vector<88x64xf32>
    %cst_7 = arith.constant 0.000000e+00 : f32
    %11 = vector.broadcast %cst_7 : f32 to vector<8x256xf32>
    %c64 = arith.constant 64 : index
    %c0_8 = arith.constant 0 : index
    %12 = vector.load %arg3[%c64, %c0_8] : memref<192x256xf32, #tpu.memory_space<vmem>>, vector<64x256xf32>
    %cst_9 = arith.constant dense<0.000000e+00> : vector<88x256xf32>
    %13 = tpu.matmul %10, %12, %cst_9 {dimension_numbers = #tpu.dot_dimension_numbers<[1], [0], [0], [1], [0, 0, 1, 1], [], []>} : vector<88x64xf32>, vector<64x256xf32>, vector<88x256xf32> -> vector<88x256xf32>
    %14 = vector.extract_strided_slice %10 {offsets = [0, 0], sizes = [80, 64], strides = [1, 1]} : vector<88x64xf32> to vector<80x64xf32>
    %c0_10 = arith.constant 0 : index
    %c0_11 = arith.constant 0 : index
    %15 = vector.load %arg3[%c0_10, %c0_11] : memref<192x256xf32, #tpu.memory_space<vmem>>, vector<64x256xf32>
    %cst_12 = arith.constant dense<0.000000e+00> : vector<80x256xf32>
    %16 = tpu.matmul %14, %15, %cst_12 {dimension_numbers = #tpu.dot_dimension_numbers<[1], [0], [0], [1], [0, 0, 1, 1], [], []>} : vector<80x64xf32>, vector<64x256xf32>, vector<80x256xf32> -> vector<80x256xf32>
    %17 = tpu.concatenate %11, %16 in 0 : vector<8x256xf32>, vector<80x256xf32> -> vector<88x256xf32>
    %18 = arith.addf %13, %17 : vector<88x256xf32>
    %19 = vector.extract_strided_slice %10 {offsets = [8, 0], sizes = [80, 64], strides = [1, 1]} : vector<88x64xf32> to vector<80x64xf32>
    %c128 = arith.constant 128 : index
    %c0_13 = arith.constant 0 : index
    %20 = vector.load %arg3[%c128, %c0_13] : memref<192x256xf32, #tpu.memory_space<vmem>>, vector<64x256xf32>
    %cst_14 = arith.constant dense<0.000000e+00> : vector<80x256xf32>
    %21 = tpu.matmul %19, %20, %cst_14 {dimension_numbers = #tpu.dot_dimension_numbers<[1], [0], [0], [1], [0, 0, 1, 1], [], []>} : vector<80x64xf32>, vector<64x256xf32>, vector<80x256xf32> -> vector<80x256xf32>
    %22 = tpu.concatenate %21, %11 in 0 : vector<80x256xf32>, vector<8x256xf32> -> vector<88x256xf32>
    %23 = arith.addf %18, %22 : vector<88x256xf32>
    %c0_15 = arith.constant 0 : index
    %c0_16 = arith.constant 0 : index
    %24 = vector.load %arg4[%c0_15, %c0_16] : memref<1x256xf32, #tpu.memory_space<vmem>>, vector<1x256xf32>
    %25 = vector.broadcast %24 : vector<1x256xf32> to vector<88x256xf32>
    %26 = arith.addf %23, %25 : vector<88x256xf32>
    %cst_17 = arith.constant 0.000000e+00 : f32
    %27 = vector.broadcast %cst_17 : f32 to vector<88x256xf32>
    %28 = arith.cmpf oge, %26, %27 : vector<88x256xf32>
    %cst_18 = arith.constant 2.000000e-01 : f32
    %29 = vector.broadcast %cst_18 : f32 to vector<88x256xf32>
    %30 = arith.mulf %29, %26 : vector<88x256xf32>
    %31 = arith.select %28, %26, %30 : vector<88x256xi1>, vector<88x256xf32>
    %32 = vector.extract_strided_slice %31 {offsets = [0, 0], sizes = [8, 256], strides = [1, 1]} : vector<88x256xf32> to vector<8x256xf32>
    %33 = arith.truncf %32 : vector<8x256xf32> to vector<8x256xbf16>
    %34 = vector.extract_strided_slice %31 {offsets = [16, 0], sizes = [8, 256], strides = [1, 1]} : vector<88x256xf32> to vector<8x256xf32>
    %35 = arith.truncf %34 : vector<8x256xf32> to vector<8x256xbf16>
    %36 = vector.extract_strided_slice %31 {offsets = [32, 0], sizes = [8, 256], strides = [1, 1]} : vector<88x256xf32> to vector<8x256xf32>
    %37 = arith.truncf %36 : vector<8x256xf32> to vector<8x256xbf16>
    %38 = vector.extract_strided_slice %31 {offsets = [48, 0], sizes = [8, 256], strides = [1, 1]} : vector<88x256xf32> to vector<8x256xf32>
    %39 = arith.truncf %38 : vector<8x256xf32> to vector<8x256xbf16>
    %40 = vector.extract_strided_slice %31 {offsets = [64, 0], sizes = [8, 256], strides = [1, 1]} : vector<88x256xf32> to vector<8x256xf32>
    %41 = arith.truncf %40 : vector<8x256xf32> to vector<8x256xbf16>
    %42 = vector.extract_strided_slice %31 {offsets = [80, 0], sizes = [8, 256], strides = [1, 1]} : vector<88x256xf32> to vector<8x256xf32>
    %43 = arith.truncf %42 : vector<8x256xf32> to vector<8x256xbf16>
    %44 = tpu.concatenate %33, %35, %37, %39, %41, %43 in 1 : vector<8x256xbf16>, vector<8x256xbf16>, vector<8x256xbf16>, vector<8x256xbf16>, vector<8x256xbf16>, vector<8x256xbf16> -> vector<8x1536xbf16>
    tpu.wait_dma2 semaphore(%arg8 : memref<!tpu.dma_semaphore, #tpu.memory_space<semaphore_mem>>) src(%arg5 : memref<1536x512xbf16, #tpu.memory_space<any>>) dst(%arg7 : memref<1536x512xbf16, #tpu.memory_space<vmem>>)
    %c0_19 = arith.constant 0 : index
    %c0_20 = arith.constant 0 : index
    %45 = vector.load %arg7[%c0_19, %c0_20] : memref<1536x512xbf16, #tpu.memory_space<vmem>>, vector<1536x512xbf16>
    %cst_21 = arith.constant dense<0.000000e+00> : vector<8x512xf32>
    %46 = tpu.matmul %44, %45, %cst_21 {dimension_numbers = #tpu.dot_dimension_numbers<[1], [0], [0], [1], [0, 0, 1, 1], [], []>} : vector<8x1536xbf16>, vector<1536x512xbf16>, vector<8x512xf32> -> vector<8x512xf32>
    %c0_22 = arith.constant 0 : index
    %c0_23 = arith.constant 0 : index
    %47 = vector.load %arg6[%c0_22, %c0_23] : memref<8x512xf32, #tpu.memory_space<vmem>>, vector<8x512xf32>
    tpu.vector_store %arg6[%c0_22, %c0_23], %46 {strides = array<i32>} : memref<8x512xf32, #tpu.memory_space<vmem>>, vector<8x512xf32>,
    return
  }
}

</mosaic_0001>

<bundles_post_ra>
// kernel: audio_encoder_forward.1
= control target key start
LH: loop header
LB: loop body
LE: loop exit
PB: predicated region body
PF: predicated region fallthrough
CT: control target
= control target key end

     0   :  { %s8072_s0 = inlined_call_operand.vmem [shape: f32[88,36], index: 0, kind: input, shape index: {}]   ;;  %s8073_s1 = inlined_call_operand.vmem [shape: f32[36,64], index: 1, kind: input, shape index: {}]   ;;  %s8074_s2 = inlined_call_operand.vmem [shape: f32[1,64], index: 2, kind: input, shape index: {}]   ;;  %s8075_s3 = inlined_call_operand.vmem [shape: f32[192,256], index: 3, kind: input, shape index: {}]   ;;  %s8076_s4 = inlined_call_operand.vmem [shape: f32[1,256], index: 4, kind: input, shape index: {}]   ;;  %s8077_s5 = inlined_call_operand.vmem [shape: bf16[1536,512], index: 5, kind: input, shape index: {}]   ;;  %s8078_s6 = inlined_call_operand.vmem [shape: f32[8,512], index: 6, kind: output, shape index: {}]  }
   0x1   :  { %v4915_v0 = vld [vmem:[%s8077_s5] sm:$0xff]  ;;  %v4920_v1 = vld [vmem:[%s8077_s5 + $0x8] sm:$0xff]  ;;  %v4925_v2 = vld [vmem:[%s8077_s5 + $0x10] sm:$0xff] }
   0x2   :  { %8438 = vst [vmem:[#allocation6_spill] sm:$0xff] %v4915_v0  ;;  %8439 = vst [vmem:[#allocation7_spill] sm:$0xff] %v4920_v1  ;;  %v4930_v3 = vld [vmem:[%s8077_s5 + $0x18] sm:$0xff]  ;;  %v4935_v4 = vld [vmem:[%s8077_s5 + $0x20] sm:$0xff] }
   0x3   :  { %8440 = vst [vmem:[#allocation8_spill] sm:$0xff] %v4925_v2  ;;  %8441 = vst [vmem:[#allocation9_spill] sm:$0xff] %v4930_v3  ;;  %v4940_v5 = vld [vmem:[%s8077_s5 + $0x28] sm:$0xff]  ;;  %v4945_v6 = vld [vmem:[%s8077_s5 + $0x30] sm:$0xff] }
   0x4   :  { %8442 = vst [vmem:[#allocation10_spill] sm:$0xff] %v4940_v5  ;;  %v4950_v7 = vld [vmem:[%s8077_s5 + $0x38] sm:$0xff]  ;;  %v4955_v8 = vld [vmem:[%s8077_s5 + $0x40] sm:$0xff]  ;;  %v4960_v9 = vld [vmem:[%s8077_s5 + $0x48] sm:$0xff] }
   0x5   :  { %8443 = vst [vmem:[#allocation11_spill] sm:$0xff] %v4950_v7  ;;  %8444 = vst [vmem:[#allocation12_spill] sm:$0xff] %v4960_v9  ;;  %v4965_v10 = vld [vmem:[%s8077_s5 + $0x50] sm:$0xff]  ;;  %v4970_v11 = vld [vmem:[%s8077_s5 + $0x58] sm:$0xff] }
   0x6   :  { %8445 = vst [vmem:[#allocation13_spill] sm:$0xff] %v4970_v11  ;;  %v4975_v12 = vld [vmem:[%s8077_s5 + $0x60] sm:$0xff]  ;;  %v4980_v13 = vld [vmem:[%s8077_s5 + $0x68] sm:$0xff]  ;;  %v4985_v14 = vld [vmem:[%s8077_s5 + $0x70] sm:$0xff] }
   0x7   :  { %8446 = vst [vmem:[#allocation14_spill] sm:$0xff] %v4980_v13  ;;  %v4990_v15 = vld [vmem:[%s8077_s5 + $0x78] sm:$0xff]  ;;  %v4995_v16 = vld [vmem:[%s8077_s5 + $0x80] sm:$0xff]  ;;  %v5000_v17 = vld [vmem:[%s8077_s5 + $0x88] sm:$0xff] }
   0x8   :  { %8447 = vst [vmem:[#allocation15_spill] sm:$0xff] %v4990_v15  ;;  %8448 = vst [vmem:[#allocation16_spill] sm:$0xff] %v5000_v17  ;;  %v5005_v18 = vld [vmem:[%s8077_s5 + $0x90] sm:$0xff]  ;;  %v5010_v19 = vld [vmem:[%s8077_s5 + $0x98] sm:$0xff] }
   0x9   :  { %8449 = vst [vmem:[#allocation17_spill] sm:$0xff] %v5010_v19  ;;  %v5015_v20 = vld [vmem:[%s8077_s5 + $0xa0] sm:$0xff]  ;;  %v5020_v21 = vld [vmem:[%s8077_s5 + $0xa8] sm:$0xff]  ;;  %v5025_v22 = vld [vmem:[%s8077_s5 + $0xb0] sm:$0xff] }
   0xa   :  { %8450 = vst [vmem:[#allocation18_spill] sm:$0xff] %v5020_v21  ;;  %v5030_v23 = vld [vmem:[%s8077_s5 + $0xb8] sm:$0xff]  ;;  %v5035_v24 = vld [vmem:[%s8077_s5 + $0xc0] sm:$0xff]  ;;  %v5040_v25 = vld [vmem:[%s8077_s5 + $0xc8] sm:$0xff] }
   0xb   :  { %8451 = vst [vmem:[#allocation19_spill] sm:$0xff] %v5030_v23  ;;  %8452 = vst [vmem:[#allocation20_spill] sm:$0xff] %v5040_v25  ;;  %v5045_v26 = vld [vmem:[%s8077_s5 + $0xd0] sm:$0xff]  ;;  %v5050_v27 = vld [vmem:[%s8077_s5 + $0xd8] sm:$0xff] }
   0xc   :  { %8453 = vst [vmem:[#allocation21_spill] sm:$0xff] %v5050_v27  ;;  %v5055_v28 = vld [vmem:[%s8077_s5 + $0xe0] sm:$0xff]  ;;  %v5060_v29 = vld [vmem:[%s8077_s5 + $0xe8] sm:$0xff]  ;;  %v5065_v30 = vld [vmem:[%s8077_s5 + $0xf0] sm:$0xff] }
   0xd   :  { %8454 = vst [vmem:[#allocation22_spill] sm:$0xff] %v5060_v29  ;;  %v5070_v31 = vld [vmem:[%s8077_s5 + $0xf8] sm:$0xff]  ;;  %v5075_v32 = vld [vmem:[%s8077_s5 + $0x100] sm:$0xff]  ;;  %v5080_v33 = vld [vmem:[%s8077_s5 + $0x108] sm:$0xff] }
   0xe   :  { %8455 = vst [vmem:[#allocation23_spill] sm:$0xff] %v5070_v31  ;;  %8456 = vst [vmem:[#allocation24_spill] sm:$0xff] %v5075_v32  ;;  %v5085_v34 = vld [vmem:[%s8077_s5 + $0x110] sm:$0xff]  ;;  %v5090_v35 = vld [vmem:[%s8077_s5 + $0x118] sm:$0xff] }
   0xf   :  { %8457 = vst [vmem:[#allocation25_spill] sm:$0xff] %v5080_v33  ;;  %8458 = vst [vmem:[#allocation26_spill] sm:$0xff] %v5085_v34  ;;  %v5095_v36 = vld [vmem:[%s8077_s5 + $0x120] sm:$0xff]  ;;  %v5100_v37 = vld [vmem:[%s8077_s5 + $0x128] sm:$0xff] }
  0x10   :  { %8459 = vst [vmem:[#allocation27_spill] sm:$0xff] %v5090_v35  ;;  %8460 = vst [vmem:[#allocation28_spill] sm:$0xff] %v5095_v36  ;;  %v5105_v38 = vld [vmem:[%s8077_s5 + $0x130] sm:$0xff]  ;;  %v5110_v39 = vld [vmem:[%s8077_s5 + $0x138] sm:$0xff] }
  0x11   :  { %8461 = vst [vmem:[#allocation29_spill] sm:$0xff] %v5100_v37  ;;  %8462 = vst [vmem:[#allocation30_spill] sm:$0xff] %v5105_v38  ;;  %v5115_v40 = vld [vmem:[%s8077_s5 + $0x140] sm:$0xff]  ;;  %v5120_v41 = vld [vmem:[%s8077_s5 + $0x148] sm:$0xff] }
  0x12   :  { %8463 = vst [vmem:[#allocation31_spill] sm:$0xff] %v5110_v39  ;;  %8464 = vst [vmem:[#allocation32_spill] sm:$0xff] %v5115_v40  ;;  %v5125_v42 = vld [vmem:[%s8077_s5 + $0x150] sm:$0xff]  ;;  %v5130_v43 = vld [vmem:[%s8077_s5 + $0x158] sm:$0xff] }
  0x13   :  { %8465 = vst [vmem:[#allocation33_spill] sm:$0xff] %v5120_v41  ;;  %8466 = vst [vmem:[#allocation34_spill] sm:$0xff] %v5125_v42  ;;  %v5135_v44 = vld [vmem:[%s8077_s5 + $0x160] sm:$0xff]  ;;  %v5140_v45 = vld [vmem:[%s8077_s5 + $0x168] sm:$0xff] }
  0x14   :  { %8467 = vst [vmem:[#allocation35_spill] sm:$0xff] %v5130_v43  ;;  %8468 = vst [vmem:[#allocation36_spill] sm:$0xff] %v5135_v44  ;;  %v5145_v46 = vld [vmem:[%s8077_s5 + $0x170] sm:$0xff]  ;;  %v5150_v47 = vld [vmem:[%s8077_s5 + $0x178] sm:$0xff] }
  0x15   :  { %8469 = vst [vmem:[#allocation37_spill] sm:$0xff] %v5140_v45  ;;  %8470 = vst [vmem:[#allocation38_spill] sm:$0xff] %v5145_v46  ;;  %v5155_v48 = vld [vmem:[%s8077_s5 + $0x180] sm:$0xff]  ;;  %v5160_v49 = vld [vmem:[%s8077_s5 + $0x188] sm:$0xff] }
  0x16   :  { %8471 = vst [vmem:[#allocation39_spill] sm:$0xff] %v5150_v47  ;;  %8472 = vst [vmem:[#allocation40_spill] sm:$0xff] %v5155_v48  ;;  %v5165_v50 = vld [vmem:[%s8077_s5 + $0x190] sm:$0xff]  ;;  %v5170_v51 = vld [vmem:[%s8077_s5 + $0x198] sm:$0xff] }
  0x17   :  { %8473 = vst [vmem:[#allocation41_spill] sm:$0xff] %v5160_v49  ;;  %8474 = vst [vmem:[#allocation42_spill] sm:$0xff] %v5165_v50  ;;  %v5175_v52 = vld [vmem:[%s8077_s5 + $0x1a0] sm:$0xff]  ;;  %v5180_v53 = vld [vmem:[%s8077_s5 + $0x1a8] sm:$0xff] }
  0x18   :  { %8475 = vst [vmem:[#allocation43_spill] sm:$0xff] %v5170_v51  ;;  %8476 = vst [vmem:[#allocation44_spill] sm:$0xff] %v5175_v52  ;;  %v5185_v54 = vld [vmem:[%s8077_s5 + $0x1b0] sm:$0xff]  ;;  %v5190_v55 = vld [vmem:[%s8077_s5 + $0x1b8] sm:$0xff] }
  0x19   :  { %8477 = vst [vmem:[#allocation45_spill] sm:$0xff] %v5180_v53  ;;  %8478 = vst [vmem:[#allocation46_spill] sm:$0xff] %v5185_v54  ;;  %v5195_v56 = vld [vmem:[%s8077_s5 + $0x1c0] sm:$0xff]  ;;  %v5200_v57 = vld [vmem:[%s8077_s5 + $0x1c8] sm:$0xff] }
  0x1a   :  { %8479 = vst [vmem:[#allocation47_spill] sm:$0xff] %v5190_v55  ;;  %8480 = vst [vmem:[#allocation48_spill] sm:$0xff] %v5195_v56  ;;  %v5205_v58 = vld [vmem:[%s8077_s5 + $0x1d0] sm:$0xff]  ;;  %v5210_v59 = vld [vmem:[%s8077_s5 + $0x1d8] sm:$0xff] }
  0x1b   :  { %8481 = vst [vmem:[#allocation49_spill] sm:$0xff] %v5200_v57  ;;  %8482 = vst [vmem:[#allocation50_spill] sm:$0xff] %v5205_v58  ;;  %v5215_v60 = vld [vmem:[%s8077_s5 + $0x1e0] sm:$0xff]  ;;  %v5220_v61 = vld [vmem:[%s8077_s5 + $0x1e8] sm:$0xff] }
  0x1c   :  { %8483 = vst [vmem:[#allocation51_spill] sm:$0xff] %v5210_v59  ;;  %8484 = vst [vmem:[#allocation52_spill] sm:$0xff] %v5215_v60  ;;  %v5225_v62 = vld [vmem:[%s8077_s5 + $0x1f0] sm:$0xff]  ;;  %v5230_v63 = vld [vmem:[%s8077_s5 + $0x1f8] sm:$0xff] }
  0x1d   :  { %8485 = vst [vmem:[#allocation53_spill] sm:$0xff] %v5220_v61  ;;  %8486 = vst [vmem:[#allocation54_spill] sm:$0xff] %v5225_v62  ;;  %v5235_v33 = vld [vmem:[%s8077_s5 + $0x200] sm:$0xff]  ;;  %v5240_v35 = vld [vmem:[%s8077_s5 + $0x208] sm:$0xff] }
  0x1e   :  { %8487 = vst [vmem:[#allocation55_spill] sm:$0xff] %v5230_v63  ;;  %8488 = vst [vmem:[#allocation56_spill] sm:$0xff] %v5235_v33  ;;  %v5245_v37 = vld [vmem:[%s8077_s5 + $0x210] sm:$0xff]  ;;  %v5250_v39 = vld [vmem:[%s8077_s5 + $0x218] sm:$0xff] }
  0x1f   :  { %8489 = vst [vmem:[#allocation57_spill] sm:$0xff] %v5240_v35  ;;  %8490 = vst [vmem:[#allocation58_spill] sm:$0xff] %v5245_v37  ;;  %v5255_v41 = vld [vmem:[%s8077_s5 + $0x220] sm:$0xff]  ;;  %v5260_v43 = vld [vmem:[%s8077_s5 + $0x228] sm:$0xff] }
  0x20   :  { %8491 = vst [vmem:[#allocation59_spill] sm:$0xff] %v5250_v39  ;;  %8492 = vst [vmem:[#allocation60_spill] sm:$0xff] %v5255_v41  ;;  %v5265_v45 = vld [vmem:[%s8077_s5 + $0x230] sm:$0xff]  ;;  %v5270_v47 = vld [vmem:[%s8077_s5 + $0x238] sm:$0xff] }
  0x21   :  { %8493 = vst [vmem:[#allocation61_spill] sm:$0xff] %v5260_v43  ;;  %8494 = vst [vmem:[#allocation62_spill] sm:$0xff] %v5270_v47  ;;  %v5275_v49 = vld [vmem:[%s8077_s5 + $0x240] sm:$0xff]  ;;  %v5280_v51 = vld [vmem:[%s8077_s5 + $0x248] sm:$0xff] }
  0x22   :  { %8495 = vst [vmem:[#allocation63_spill] sm:$0xff] %v5280_v51  ;;  %v5285_v53 = vld [vmem:[%s8077_s5 + $0x250] sm:$0xff]  ;;  %v5290_v55 = vld [vmem:[%s8077_s5 + $0x258] sm:$0xff]  ;;  %v5295_v57 = vld [vmem:[%s8077_s5 + $0x260] sm:$0xff] }
  0x23   :  { %8496 = vst [vmem:[#allocation64_spill] sm:$0xff] %v5290_v55  ;;  %v5300_v59 = vld [vmem:[%s8077_s5 + $0x268] sm:$0xff]  ;;  %v5305_v61 = vld [vmem:[%s8077_s5 + $0x270] sm:$0xff]  ;;  %v5310_v63 = vld [vmem:[%s8077_s5 + $0x278] sm:$0xff] }
  0x24   :  { %8497 = vst [vmem:[#allocation65_spill] sm:$0xff] %v5300_v59  ;;  %8498 = vst [vmem:[#allocation66_spill] sm:$0xff] %v5310_v63  ;;  %v5315_v35 = vld [vmem:[%s8077_s5 + $0x280] sm:$0xff]  ;;  %v5320_v39 = vld [vmem:[%s8077_s5 + $0x288] sm:$0xff] }
  0x25   :  { %8499 = vst [vmem:[#allocation67_spill] sm:$0xff] %v5320_v39  ;;  %v5325_v1 = vld [vmem:[%s8077_s5 + $0x290] sm:$0xff]  ;;  %v5330_v3 = vld [vmem:[%s8077_s5 + $0x298] sm:$0xff]  ;;  %v5335_v43 = vld [vmem:[%s8077_s5 + $0x2a0] sm:$0xff] }
  0x26   :  { %8500 = vst [vmem:[#allocation68_spill] sm:$0xff] %v5330_v3  ;;  %v5340_v47 = vld [vmem:[%s8077_s5 + $0x2a8] sm:$0xff]  ;;  %v5345_v5 = vld [vmem:[%s8077_s5 + $0x2b0] sm:$0xff]  ;;  %v5350_v7 = vld [vmem:[%s8077_s5 + $0x2b8] sm:$0xff] }
  0x27   :  { %8501 = vst [vmem:[#allocation69_spill] sm:$0xff] %v5340_v47  ;;  %8502 = vst [vmem:[#allocation70_spill] sm:$0xff] %v5350_v7  ;;  %v5355_v51 = vld [vmem:[%s8077_s5 + $0x2c0] sm:$0xff]  ;;  %v5360_v55 = vld [vmem:[%s8077_s5 + $0x2c8] sm:$0xff] }
  0x28   :  { %8503 = vst [vmem:[#allocation71_spill] sm:$0xff] %v5360_v55  ;;  %v5365_v9 = vld [vmem:[%s8077_s5 + $0x2d0] sm:$0xff]  ;;  %v5370_v11 = vld [vmem:[%s8077_s5 + $0x2d8] sm:$0xff]  ;;  %v5375_v59 = vld [vmem:[%s8077_s5 + $0x2e0] sm:$0xff] }
  0x29   :  { %8504 = vst [vmem:[#allocation72_spill] sm:$0xff] %v5370_v11  ;;  %v5380_v63 = vld [vmem:[%s8077_s5 + $0x2e8] sm:$0xff]  ;;  %v5385_v13 = vld [vmem:[%s8077_s5 + $0x2f0] sm:$0xff]  ;;  %v5390_v15 = vld [vmem:[%s8077_s5 + $0x2f8] sm:$0xff] }
  0x2a   :  { %8505 = vst [vmem:[#allocation73_spill] sm:$0xff] %v5380_v63  ;;  %8506 = vst [vmem:[#allocation74_spill] sm:$0xff] %v5390_v15  ;;  %v5395_v39 = vld [vmem:[%s8077_s5 + $0x300] sm:$0xff]  ;;  %v5400_v3 = vld [vmem:[%s8077_s5 + $0x308] sm:$0xff] }
  0x2b   :  { %8507 = vst [vmem:[#allocation75_spill] sm:$0xff] %v5395_v39  ;;  %8508 = vst [vmem:[#allocation76_spill] sm:$0xff] %v5400_v3  ;;  %v5405_v17 = vld [vmem:[%s8077_s5 + $0x310] sm:$0xff]  ;;  %v5410_v19 = vld [vmem:[%s8077_s5 + $0x318] sm:$0xff] }
  0x2c   :  { %8509 = vst [vmem:[#allocation77_spill] sm:$0xff] %v5405_v17  ;;  %8510 = vst [vmem:[#allocation78_spill] sm:$0xff] %v5410_v19  ;;  %v5415_v47 = vld [vmem:[%s8077_s5 + $0x320] sm:$0xff]  ;;  %v5420_v7 = vld [vmem:[%s8077_s5 + $0x328] sm:$0xff] }
  0x2d   :  { %8511 = vst [vmem:[#allocation79_spill] sm:$0xff] %v5415_v47  ;;  %8512 = vst [vmem:[#allocation80_spill] sm:$0xff] %v5420_v7  ;;  %v5425_v3 = vld [vmem:[%s8077_s5 + $0x330] sm:$0xff]  ;;  %v5430_v21 = vld [vmem:[%s8077_s5 + $0x338] sm:$0xff] }
  0x2e   :  { %8513 = vst [vmem:[#allocation81_spill] sm:$0xff] %v5425_v3  ;;  %8514 = vst [vmem:[#allocation82_spill] sm:$0xff] %v5430_v21  ;;  %v5435_v19 = vld [vmem:[%s8077_s5 + $0x340] sm:$0xff]  ;;  %v5440_v23 = vld [vmem:[%s8077_s5 + $0x348] sm:$0xff] }
  0x2f   :  { %8515 = vst [vmem:[#allocation83_spill] sm:$0xff] %v5435_v19  ;;  %8516 = vst [vmem:[#allocation84_spill] sm:$0xff] %v5440_v23  ;;  %v5445_v7 = vld [vmem:[%s8077_s5 + $0x350] sm:$0xff]  ;;  %v5450_v55 = vld [vmem:[%s8077_s5 + $0x358] sm:$0xff] }
  0x30   :  { %8517 = vst [vmem:[#allocation85_spill] sm:$0xff] %v5445_v7  ;;  %8518 = vst [vmem:[#allocation86_spill] sm:$0xff] %v5450_v55  ;;  %v5455_v21 = vld [vmem:[%s8077_s5 + $0x360] sm:$0xff]  ;;  %v5460_v11 = vld [vmem:[%s8077_s5 + $0x368] sm:$0xff] }
  0x31   :  { %8519 = vst [vmem:[#allocation87_spill] sm:$0xff] %v5455_v21  ;;  %8520 = vst [vmem:[#allocation88_spill] sm:$0xff] %v5460_v11  ;;  %v5465_v23 = vld [vmem:[%s8077_s5 + $0x370] sm:$0xff]  ;;  %v5470_v25 = vld [vmem:[%s8077_s5 + $0x378] sm:$0xff] }
  0x32   :  { %8521 = vst [vmem:[#allocation89_spill] sm:$0xff] %v5465_v23  ;;  %8522 = vst [vmem:[#allocation90_spill] sm:$0xff] %v5470_v25  ;;  %v5475_v55 = vld [vmem:[%s8077_s5 + $0x380] sm:$0xff]  ;;  %v5480_v27 = vld [vmem:[%s8077_s5 + $0x388] sm:$0xff] }
  0x33   :  { %8523 = vst [vmem:[#allocation91_spill] sm:$0xff] %v5475_v55  ;;  %8524 = vst [vmem:[#allocation92_spill] sm:$0xff] %v5480_v27  ;;  %v5485_v11 = vld [vmem:[%s8077_s5 + $0x390] sm:$0xff]  ;;  %v5490_v63 = vld [vmem:[%s8077_s5 + $0x398] sm:$0xff] }
  0x34   :  { %8525 = vst [vmem:[#allocation93_spill] sm:$0xff] %v5485_v11  ;;  %8526 = vst [vmem:[#allocation94_spill] sm:$0xff] %v5490_v63  ;;  %v5495_v25 = vld [vmem:[%s8077_s5 + $0x3a0] sm:$0xff]  ;;  %v5500_v15 = vld [vmem:[%s8077_s5 + $0x3a8] sm:$0xff] }
  0x35   :  { %8527 = vst [vmem:[#allocation95_spill] sm:$0xff] %v5495_v25  ;;  %8528 = vst [vmem:[#allocation96_spill] sm:$0xff] %v5500_v15  ;;  %v5505_v27 = vld [vmem:[%s8077_s5 + $0x3b0] sm:$0xff]  ;;  %v5510_v29 = vld [vmem:[%s8077_s5 + $0x3b8] sm:$0xff] }
  0x36   :  { %8529 = vst [vmem:[#allocation97_spill] sm:$0xff] %v5505_v27  ;;  %8530 = vst [vmem:[#allocation98_spill] sm:$0xff] %v5510_v29  ;;  %v5515_v63 = vld [vmem:[%s8077_s5 + $0x3c0] sm:$0xff]  ;;  %v5520_v31 = vld [vmem:[%s8077_s5 + $0x3c8] sm:$0xff] }
  0x37   :  { %8531 = vst [vmem:[#allocation99_spill] sm:$0xff] %v5515_v63  ;;  %8532 = vst [vmem:[#allocation100_spill] sm:$0xff] %v5520_v31  ;;  %v5525_v15 = vld [vmem:[%s8077_s5 + $0x3d0] sm:$0xff]  ;;  %v5530_v39 = vld [vmem:[%s8077_s5 + $0x3d8] sm:$0xff] }
  0x38   :  { %8533 = vst [vmem:[#allocation101_spill] sm:$0xff] %v5525_v15  ;;  %8534 = vst [vmem:[#allocation102_spill] sm:$0xff] %v5530_v39  ;;  %v5535_v29 = vld [vmem:[%s8077_s5 + $0x3e0] sm:$0xff]  ;;  %v5540_v17 = vld [vmem:[%s8077_s5 + $0x3e8] sm:$0xff] }
  0x39   :  { %8535 = vst [vmem:[#allocation103_spill] sm:$0xff] %v5535_v29  ;;  %8536 = vst [vmem:[#allocation104_spill] sm:$0xff] %v5540_v17  ;;  %v5545_v31 = vld [vmem:[%s8077_s5 + $0x3f0] sm:$0xff]  ;;  %v5550_v32 = vld [vmem:[%s8077_s5 + $0x3f8] sm:$0xff] }
  0x3a   :  { %8537 = vst [vmem:[#allocation105_spill] sm:$0xff] %v5545_v31  ;;  %8538 = vst [vmem:[#allocation106_spill] sm:$0xff] %v5550_v32  ;;  %v5555_v39 = vld [vmem:[%s8077_s5 + $0x400] sm:$0xff]  ;;  %v5560_v34 = vld [vmem:[%s8077_s5 + $0x408] sm:$0xff] }
  0x3b   :  { %8539 = vst [vmem:[#allocation107_spill] sm:$0xff] %v5555_v39  ;;  %8540 = vst [vmem:[#allocation108_spill] sm:$0xff] %v5560_v34  ;;  %v5565_v17 = vld [vmem:[%s8077_s5 + $0x410] sm:$0xff]  ;;  %v5570_v47 = vld [vmem:[%s8077_s5 + $0x418] sm:$0xff] }
  0x3c   :  { %8541 = vst [vmem:[#allocation109_spill] sm:$0xff] %v5565_v17  ;;  %8542 = vst [vmem:[#allocation110_spill] sm:$0xff] %v5570_v47  ;;  %v5575_v32 = vld [vmem:[%s8077_s5 + $0x420] sm:$0xff]  ;;  %v5580_v39 = vld [vmem:[%s8077_s5 + $0x428] sm:$0xff] }
  0x3d   :  { %8543 = vst [vmem:[#allocation111_spill] sm:$0xff] %v5575_v32  ;;  %8544 = vst [vmem:[#allocation112_spill] sm:$0xff] %v5580_v39  ;;  %v5585_v34 = vld [vmem:[%s8077_s5 + $0x430] sm:$0xff]  ;;  %v5590_v17 = vld [vmem:[%s8077_s5 + $0x438] sm:$0xff] }
  0x3e   :  { %8545 = vst [vmem:[#allocation113_spill] sm:$0xff] %v5585_v34  ;;  %8546 = vst [vmem:[#allocation114_spill] sm:$0xff] %v5590_v17  ;;  %v5595_v47 = vld [vmem:[%s8077_s5 + $0x440] sm:$0xff]  ;;  %v5600_v32 = vld [vmem:[%s8077_s5 + $0x448] sm:$0xff] }
  0x3f   :  { %8547 = vst [vmem:[#allocation115_spill] sm:$0xff] %v5595_v47  ;;  %8548 = vst [vmem:[#allocation116_spill] sm:$0xff] %v5600_v32  ;;  %v5605_v39 = vld [vmem:[%s8077_s5 + $0x450] sm:$0xff]  ;;  %v5610_v34 = vld [vmem:[%s8077_s5 + $0x458] sm:$0xff] }
  0x40   :  { %8549 = vst [vmem:[#allocation117_spill] sm:$0xff] %v5605_v39  ;;  %8550 = vst [vmem:[#allocation118_spill] sm:$0xff] %v5610_v34  ;;  %v5615_v17 = vld [vmem:[%s8077_s5 + $0x460] sm:$0xff]  ;;  %v5620_v47 = vld [vmem:[%s8077_s5 + $0x468] sm:$0xff] }
  0x41   :  { %8551 = vst [vmem:[#allocation119_spill] sm:$0xff] %v5615_v17  ;;  %8552 = vst [vmem:[#allocation120_spill] sm:$0xff] %v5620_v47  ;;  %v5625_v32 = vld [vmem:[%s8077_s5 + $0x470] sm:$0xff]  ;;  %v5630_v39 = vld [vmem:[%s8077_s5 + $0x478] sm:$0xff] }
  0x42   :  { %8553 = vst [vmem:[#allocation121_spill] sm:$0xff] %v5625_v32  ;;  %8554 = vst [vmem:[#allocation122_spill] sm:$0xff] %v5630_v39  ;;  %v5635_v34 = vld [vmem:[%s8077_s5 + $0x480] sm:$0xff]  ;;  %v5640_v17 = vld [vmem:[%s8077_s5 + $0x488] sm:$0xff] }
  0x43   :  { %8555 = vst [vmem:[#allocation123_spill] sm:$0xff] %v5635_v34  ;;  %8556 = vst [vmem:[#allocation124_spill] sm:$0xff] %v5640_v17  ;;  %v5645_v47 = vld [vmem:[%s8077_s5 + $0x490] sm:$0xff]  ;;  %v5650_v32 = vld [vmem:[%s8077_s5 + $0x498] sm:$0xff] }
  0x44   :  { %8557 = vst [vmem:[#allocation125_spill] sm:$0xff] %v5645_v47  ;;  %8558 = vst [vmem:[#allocation126_spill] sm:$0xff] %v5650_v32  ;;  %v5655_v39 = vld [vmem:[%s8077_s5 + $0x4a0] sm:$0xff]  ;;  %v5660_v34 = vld [vmem:[%s8077_s5 + $0x4a8] sm:$0xff] }
  0x45   :  { %8559 = vst [vmem:[#allocation127_spill] sm:$0xff] %v5655_v39  ;;  %8560 = vst [vmem:[#allocation128_spill] sm:$0xff] %v5660_v34  ;;  %v5665_v17 = vld [vmem:[%s8077_s5 + $0x4b0] sm:$0xff]  ;;  %v5670_v47 = vld [vmem:[%s8077_s5 + $0x4b8] sm:$0xff] }
  0x46   :  { %8561 = vst [vmem:[#allocation129_spill] sm:$0xff] %v5665_v17  ;;  %8562 = vst [vmem:[#allocation130_spill] sm:$0xff] %v5670_v47  ;;  %v5675_v32 = vld [vmem:[%s8077_s5 + $0x4c0] sm:$0xff]  ;;  %v5680_v39 = vld [vmem:[%s8077_s5 + $0x4c8] sm:$0xff] }
  0x47   :  { %8563 = vst [vmem:[#allocation131_spill] sm:$0xff] %v5675_v32  ;;  %8564 = vst [vmem:[#allocation132_spill] sm:$0xff] %v5680_v39  ;;  %v5685_v34 = vld [vmem:[%s8077_s5 + $0x4d0] sm:$0xff]  ;;  %v5690_v17 = vld [vmem:[%s8077_s5 + $0x4d8] sm:$0xff] }
  0x48   :  { %8565 = vst [vmem:[#allocation133_spill] sm:$0xff] %v5685_v34  ;;  %8566 = vst [vmem:[#allocation134_spill] sm:$0xff] %v5690_v17  ;;  %v5695_v47 = vld [vmem:[%s8077_s5 + $0x4e0] sm:$0xff]  ;;  %v5700_v32 = vld [vmem:[%s8077_s5 + $0x4e8] sm:$0xff] }
  0x49   :  { %8567 = vst [vmem:[#allocation135_spill] sm:$0xff] %v5695_v47  ;;  %8568 = vst [vmem:[#allocation136_spill] sm:$0xff] %v5700_v32  ;;  %v5705_v39 = vld [vmem:[%s8077_s5 + $0x4f0] sm:$0xff]  ;;  %v5710_v34 = vld [vmem:[%s8077_s5 + $0x4f8] sm:$0xff] }
  0x4a   :  { %8569 = vst [vmem:[#allocation137_spill] sm:$0xff] %v5705_v39  ;;  %8570 = vst [vmem:[#allocation138_spill] sm:$0xff] %v5710_v34  ;;  %v5715_v17 = vld [vmem:[%s8077_s5 + $0x500] sm:$0xff]  ;;  %v5720_v47 = vld [vmem:[%s8077_s5 + $0x508] sm:$0xff] }
  0x4b   :  { %8571 = vst [vmem:[#allocation139_spill] sm:$0xff] %v5715_v17  ;;  %8572 = vst [vmem:[#allocation140_spill] sm:$0xff] %v5720_v47  ;;  %v5725_v32 = vld [vmem:[%s8077_s5 + $0x510] sm:$0xff]  ;;  %v5730_v39 = vld [vmem:[%s8077_s5 + $0x518] sm:$0xff] }
  0x4c   :  { %8573 = vst [vmem:[#allocation141_spill] sm:$0xff] %v5725_v32  ;;  %8574 = vst [vmem:[#allocation142_spill] sm:$0xff] %v5730_v39  ;;  %v5735_v34 = vld [vmem:[%s8077_s5 + $0x520] sm:$0xff]  ;;  %v5740_v17 = vld [vmem:[%s8077_s5 + $0x528] sm:$0xff] }
  0x4d   :  { %8575 = vst [vmem:[#allocation143_spill] sm:$0xff] %v5735_v34  ;;  %8576 = vst [vmem:[#allocation144_spill] sm:$0xff] %v5740_v17  ;;  %v5745_v47 = vld [vmem:[%s8077_s5 + $0x530] sm:$0xff]  ;;  %v5750_v32 = vld [vmem:[%s8077_s5 + $0x538] sm:$0xff] }
  0x4e   :  { %8577 = vst [vmem:[#allocation145_spill] sm:$0xff] %v5745_v47  ;;  %8578 = vst [vmem:[#allocation146_spill] sm:$0xff] %v5750_v32  ;;  %v5755_v39 = vld [vmem:[%s8077_s5 + $0x540] sm:$0xff]  ;;  %v5760_v34 = vld [vmem:[%s8077_s5 + $0x548] sm:$0xff] }
  0x4f   :  { %8579 = vst [vmem:[#allocation147_spill] sm:$0xff] %v5755_v39  ;;  %8580 = vst [vmem:[#allocation148_spill] sm:$0xff] %v5760_v34  ;;  %v5765_v17 = vld [vmem:[%s8077_s5 + $0x550] sm:$0xff]  ;;  %v5770_v47 = vld [vmem:[%s8077_s5 + $0x558] sm:$0xff] }
  0x50   :  { %8581 = vst [vmem:[#allocation149_spill] sm:$0xff] %v5765_v17  ;;  %8582 = vst [vmem:[#allocation150_spill] sm:$0xff] %v5770_v47  ;;  %v5775_v32 = vld [vmem:[%s8077_s5 + $0x560] sm:$0xff]  ;;  %v5780_v39 = vld [vmem:[%s8077_s5 + $0x568] sm:$0xff] }
  0x51   :  { %8583 = vst [vmem:[#allocation151_spill] sm:$0xff] %v5775_v32  ;;  %8584 = vst [vmem:[#allocation152_spill] sm:$0xff] %v5780_v39  ;;  %v5785_v34 = vld [vmem:[%s8077_s5 + $0x570] sm:$0xff]  ;;  %v5790_v17 = vld [vmem:[%s8077_s5 + $0x578] sm:$0xff] }
  0x52   :  { %8585 = vst [vmem:[#allocation153_spill] sm:$0xff] %v5785_v34  ;;  %8586 = vst [vmem:[#allocation154_spill] sm:$0xff] %v5790_v17  ;;  %v5795_v47 = vld [vmem:[%s8077_s5 + $0x580] sm:$0xff]  ;;  %v5800_v32 = vld [vmem:[%s8077_s5 + $0x588] sm:$0xff] }
  0x53   :  { %8587 = vst [vmem:[#allocation155_spill] sm:$0xff] %v5795_v47  ;;  %8588 = vst [vmem:[#allocation156_spill] sm:$0xff] %v5800_v32  ;;  %v5805_v39 = vld [vmem:[%s8077_s5 + $0x590] sm:$0xff]  ;;  %v5810_v34 = vld [vmem:[%s8077_s5 + $0x598] sm:$0xff] }
  0x54   :  { %8589 = vst [vmem:[#allocation157_spill] sm:$0xff] %v5805_v39  ;;  %8590 = vst [vmem:[#allocation158_spill] sm:$0xff] %v5810_v34  ;;  %v5815_v17 = vld [vmem:[%s8077_s5 + $0x5a0] sm:$0xff]  ;;  %v5820_v47 = vld [vmem:[%s8077_s5 + $0x5a8] sm:$0xff] }
  0x55   :  { %8591 = vst [vmem:[#allocation159_spill] sm:$0xff] %v5815_v17  ;;  %8592 = vst [vmem:[#allocation160_spill] sm:$0xff] %v5820_v47  ;;  %v5825_v32 = vld [vmem:[%s8077_s5 + $0x5b0] sm:$0xff]  ;;  %v5830_v39 = vld [vmem:[%s8077_s5 + $0x5b8] sm:$0xff] }
  0x56   :  { %8593 = vst [vmem:[#allocation161_spill] sm:$0xff] %v5825_v32  ;;  %8594 = vst [vmem:[#allocation162_spill] sm:$0xff] %v5830_v39  ;;  %v5835_v34 = vld [vmem:[%s8077_s5 + $0x5c0] sm:$0xff]  ;;  %v5840_v17 = vld [vmem:[%s8077_s5 + $0x5c8] sm:$0xff] }
  0x57   :  { %8595 = vst [vmem:[#allocation163_spill] sm:$0xff] %v5835_v34  ;;  %8596 = vst [vmem:[#allocation164_spill] sm:$0xff] %v5840_v17  ;;  %v5845_v47 = vld [vmem:[%s8077_s5 + $0x5d0] sm:$0xff]  ;;  %v5850_v32 = vld [vmem:[%s8077_s5 + $0x5d8] sm:$0xff] }
  0x58   :  { %8597 = vst [vmem:[#allocation165_spill] sm:$0xff] %v5845_v47  ;;  %8598 = vst [vmem:[#allocation166_spill] sm:$0xff] %v5850_v32  ;;  %v5855_v39 = vld [vmem:[%s8077_s5 + $0x5e0] sm:$0xff]  ;;  %v5860_v34 = vld [vmem:[%s8077_s5 + $0x5e8] sm:$0xff] }
  0x59   :  { %8599 = vst [vmem:[#allocation167_spill] sm:$0xff] %v5855_v39  ;;  %8600 = vst [vmem:[#allocation168_spill] sm:$0xff] %v5860_v34  ;;  %v5865_v17 = vld [vmem:[%s8077_s5 + $0x5f0] sm:$0xff]  ;;  %v5870_v47 = vld [vmem:[%s8077_s5 + $0x5f8] sm:$0xff] }
  0x5a   :  { %8601 = vst [vmem:[#allocation169_spill] sm:$0xff] %v5865_v17  ;;  %8602 = vst [vmem:[#allocation170_spill] sm:$0xff] %v5870_v47  ;;  %v5875_v32 = vld [vmem:[%s8077_s5 + $0x600] sm:$0xff]  ;;  %v5880_v39 = vld [vmem:[%s8077_s5 + $0x608] sm:$0xff] }
  0x5b   :  { %8603 = vst [vmem:[#allocation171_spill] sm:$0xff] %v5875_v32  ;;  %8604 = vst [vmem:[#allocation172_spill] sm:$0xff] %v5880_v39  ;;  %v5885_v34 = vld [vmem:[%s8077_s5 + $0x610] sm:$0xff]  ;;  %v5890_v17 = vld [vmem:[%s8077_s5 + $0x618] sm:$0xff] }
  0x5c   :  { %8605 = vst [vmem:[#allocation173_spill] sm:$0xff] %v5885_v34  ;;  %8606 = vst [vmem:[#allocation174_spill] sm:$0xff] %v5890_v17  ;;  %v5895_v47 = vld [vmem:[%s8077_s5 + $0x620] sm:$0xff]  ;;  %v5900_v32 = vld [vmem:[%s8077_s5 + $0x628] sm:$0xff] }
  0x5d   :  { %8607 = vst [vmem:[#allocation175_spill] sm:$0xff] %v5895_v47  ;;  %8608 = vst [vmem:[#allocation176_spill] sm:$0xff] %v5900_v32  ;;  %v5905_v39 = vld [vmem:[%s8077_s5 + $0x630] sm:$0xff]  ;;  %v5910_v34 = vld [vmem:[%s8077_s5 + $0x638] sm:$0xff] }
  0x5e   :  { %8609 = vst [vmem:[#allocation177_spill] sm:$0xff] %v5905_v39  ;;  %8610 = vst [vmem:[#allocation178_spill] sm:$0xff] %v5910_v34  ;;  %v5915_v17 = vld [vmem:[%s8077_s5 + $0x640] sm:$0xff]  ;;  %v5920_v47 = vld [vmem:[%s8077_s5 + $0x648] sm:$0xff] }
  0x5f   :  { %8611 = vst [vmem:[#allocation179_spill] sm:$0xff] %v5915_v17  ;;  %8612 = vst [vmem:[#allocation180_spill] sm:$0xff] %v5920_v47  ;;  %v5925_v32 = vld [vmem:[%s8077_s5 + $0x650] sm:$0xff]  ;;  %v5930_v39 = vld [vmem:[%s8077_s5 + $0x658] sm:$0xff] }
  0x60   :  { %8613 = vst [vmem:[#allocation181_spill] sm:$0xff] %v5925_v32  ;;  %8614 = vst [vmem:[#allocation182_spill] sm:$0xff] %v5930_v39  ;;  %v5935_v34 = vld [vmem:[%s8077_s5 + $0x660] sm:$0xff]  ;;  %v5940_v17 = vld [vmem:[%s8077_s5 + $0x668] sm:$0xff] }
  0x61   :  { %8615 = vst [vmem:[#allocation183_spill] sm:$0xff] %v5935_v34  ;;  %8616 = vst [vmem:[#allocation184_spill] sm:$0xff] %v5940_v17  ;;  %v5945_v47 = vld [vmem:[%s8077_s5 + $0x670] sm:$0xff]  ;;  %v5950_v32 = vld [vmem:[%s8077_s5 + $0x678] sm:$0xff] }
  0x62   :  { %8617 = vst [vmem:[#allocation185_spill] sm:$0xff] %v5945_v47  ;;  %8618 = vst [vmem:[#allocation186_spill] sm:$0xff] %v5950_v32  ;;  %v5955_v39 = vld [vmem:[%s8077_s5 + $0x680] sm:$0xff]  ;;  %v5960_v34 = vld [vmem:[%s8077_s5 + $0x688] sm:$0xff] }
  0x63   :  { %8619 = vst [vmem:[#allocation187_spill] sm:$0xff] %v5955_v39  ;;  %8620 = vst [vmem:[#allocation188_spill] sm:$0xff] %v5960_v34  ;;  %v5965_v17 = vld [vmem:[%s8077_s5 + $0x690] sm:$0xff]  ;;  %v5970_v47 = vld [vmem:[%s8077_s5 + $0x698] sm:$0xff] }
  0x64   :  { %8621 = vst [vmem:[#allocation189_spill] sm:$0xff] %v5965_v17  ;;  %8622 = vst [vmem:[#allocation190_spill] sm:$0xff] %v5970_v47  ;;  %v5975_v32 = vld [vmem:[%s8077_s5 + $0x6a0] sm:$0xff]  ;;  %v5980_v39 = vld [vmem:[%s8077_s5 + $0x6a8] sm:$0xff] }
  0x65   :  { %8623 = vst [vmem:[#allocation191_spill] sm:$0xff] %v5975_v32  ;;  %8624 = vst [vmem:[#allocation192_spill] sm:$0xff] %v5980_v39  ;;  %v5985_v34 = vld [vmem:[%s8077_s5 + $0x6b0] sm:$0xff]  ;;  %v5990_v17 = vld [vmem:[%s8077_s5 + $0x6b8] sm:$0xff] }
  0x66   :  { %8625 = vst [vmem:[#allocation193_spill] sm:$0xff] %v5985_v34  ;;  %8626 = vst [vmem:[#allocation194_spill] sm:$0xff] %v5990_v17  ;;  %v5995_v47 = vld [vmem:[%s8077_s5 + $0x6c0] sm:$0xff]  ;;  %v6000_v32 = vld [vmem:[%s8077_s5 + $0x6c8] sm:$0xff] }
  0x67   :  { %8627 = vst [vmem:[#allocation195_spill] sm:$0xff] %v5995_v47  ;;  %8628 = vst [vmem:[#allocation196_spill] sm:$0xff] %v6000_v32  ;;  %v6005_v39 = vld [vmem:[%s8077_s5 + $0x6d0] sm:$0xff]  ;;  %v6010_v34 = vld [vmem:[%s8077_s5 + $0x6d8] sm:$0xff] }
  0x68   :  { %8629 = vst [vmem:[#allocation197_spill] sm:$0xff] %v6005_v39  ;;  %8630 = vst [vmem:[#allocation198_spill] sm:$0xff] %v6010_v34  ;;  %v6015_v17 = vld [vmem:[%s8077_s5 + $0x6e0] sm:$0xff]  ;;  %v6020_v47 = vld [vmem:[%s8077_s5 + $0x6e8] sm:$0xff] }
  0x69   :  { %8631 = vst [vmem:[#allocation199_spill] sm:$0xff] %v6015_v17  ;;  %8632 = vst [vmem:[#allocation200_spill] sm:$0xff] %v6020_v47  ;;  %v6025_v32 = vld [vmem:[%s8077_s5 + $0x6f0] sm:$0xff]  ;;  %v6030_v39 = vld [vmem:[%s8077_s5 + $0x6f8] sm:$0xff] }
  0x6a   :  { %8633 = vst [vmem:[#allocation201_spill] sm:$0xff] %v6025_v32  ;;  %8634 = vst [vmem:[#allocation202_spill] sm:$0xff] %v6030_v39  ;;  %v6035_v34 = vld [vmem:[%s8077_s5 + $0x700] sm:$0xff]  ;;  %v6040_v17 = vld [vmem:[%s8077_s5 + $0x708] sm:$0xff] }
  0x6b   :  { %8635 = vst [vmem:[#allocation203_spill] sm:$0xff] %v6035_v34  ;;  %8636 = vst [vmem:[#allocation204_spill] sm:$0xff] %v6040_v17  ;;  %v6045_v47 = vld [vmem:[%s8077_s5 + $0x710] sm:$0xff]  ;;  %v6050_v32 = vld [vmem:[%s8077_s5 + $0x718] sm:$0xff] }
  0x6c   :  { %8637 = vst [vmem:[#allocation205_spill] sm:$0xff] %v6045_v47  ;;  %8638 = vst [vmem:[#allocation206_spill] sm:$0xff] %v6050_v32  ;;  %v6055_v39 = vld [vmem:[%s8077_s5 + $0x720] sm:$0xff]  ;;  %v6060_v34 = vld [vmem:[%s8077_s5 + $0x728] sm:$0xff] }
  0x6d   :  { %8639 = vst [vmem:[#allocation207_spill] sm:$0xff] %v6055_v39  ;;  %8640 = vst [vmem:[#allocation208_spill] sm:$0xff] %v6060_v34  ;;  %v6065_v17 = vld [vmem:[%s8077_s5 + $0x730] sm:$0xff]  ;;  %v6070_v47 = vld [vmem:[%s8077_s5 + $0x738] sm:$0xff] }
  0x6e   :  { %8641 = vst [vmem:[#allocation209_spill] sm:$0xff] %v6065_v17  ;;  %8642 = vst [vmem:[#allocation210_spill] sm:$0xff] %v6070_v47  ;;  %v6075_v32 = vld [vmem:[%s8077_s5 + $0x740] sm:$0xff]  ;;  %v6080_v39 = vld [vmem:[%s8077_s5 + $0x748] sm:$0xff] }
  0x6f   :  { %8643 = vst [vmem:[#allocation211_spill] sm:$0xff] %v6075_v32  ;;  %8644 = vst [vmem:[#allocation212_spill] sm:$0xff] %v6080_v39  ;;  %v6085_v34 = vld [vmem:[%s8077_s5 + $0x750] sm:$0xff]  ;;  %v6090_v17 = vld [vmem:[%s8077_s5 + $0x758] sm:$0xff] }
  0x70   :  { %8645 = vst [vmem:[#allocation213_spill] sm:$0xff] %v6085_v34  ;;  %8646 = vst [vmem:[#allocation214_spill] sm:$0xff] %v6090_v17  ;;  %v6095_v47 = vld [vmem:[%s8077_s5 + $0x760] sm:$0xff]  ;;  %v6100_v32 = vld [vmem:[%s8077_s5 + $0x768] sm:$0xff] }
  0x71   :  { %8647 = vst [vmem:[#allocation215_spill] sm:$0xff] %v6095_v47  ;;  %8648 = vst [vmem:[#allocation216_spill] sm:$0xff] %v6100_v32  ;;  %v6105_v39 = vld [vmem:[%s8077_s5 + $0x770] sm:$0xff]  ;;  %v6110_v34 = vld [vmem:[%s8077_s5 + $0x778] sm:$0xff] }
  0x72   :  { %8649 = vst [vmem:[#allocation217_spill] sm:$0xff] %v6105_v39  ;;  %8650 = vst [vmem:[#allocation218_spill] sm:$0xff] %v6110_v34  ;;  %v6115_v17 = vld [vmem:[%s8077_s5 + $0x780] sm:$0xff]  ;;  %v6120_v47 = vld [vmem:[%s8077_s5 + $0x788] sm:$0xff] }
  0x73   :  { %8651 = vst [vmem:[#allocation219_spill] sm:$0xff] %v6115_v17  ;;  %8652 = vst [vmem:[#allocation220_spill] sm:$0xff] %v6120_v47  ;;  %v6125_v32 = vld [vmem:[%s8077_s5 + $0x790] sm:$0xff]  ;;  %v6130_v39 = vld [vmem:[%s8077_s5 + $0x798] sm:$0xff] }
  0x74   :  { %8653 = vst [vmem:[#allocation221_spill] sm:$0xff] %v6125_v32  ;;  %8654 = vst [vmem:[#allocation222_spill] sm:$0xff] %v6130_v39  ;;  %v6135_v34 = vld [vmem:[%s8077_s5 + $0x7a0] sm:$0xff]  ;;  %v6140_v17 = vld [vmem:[%s8077_s5 + $0x7a8] sm:$0xff] }
  0x75   :  { %8655 = vst [vmem:[#allocation223_spill] sm:$0xff] %v6135_v34  ;;  %8656 = vst [vmem:[#allocation224_spill] sm:$0xff] %v6140_v17  ;;  %v6145_v47 = vld [vmem:[%s8077_s5 + $0x7b0] sm:$0xff]  ;;  %v6150_v32 = vld [vmem:[%s8077_s5 + $0x7b8] sm:$0xff] }
  0x76   :  { %8657 = vst [vmem:[#allocation225_spill] sm:$0xff] %v6145_v47  ;;  %8658 = vst [vmem:[#allocation226_spill] sm:$0xff] %v6150_v32  ;;  %v6155_v39 = vld [vmem:[%s8077_s5 + $0x7c0] sm:$0xff]  ;;  %v6160_v34 = vld [vmem:[%s8077_s5 + $0x7c8] sm:$0xff] }
  0x77   :  { %8659 = vst [vmem:[#allocation227_spill] sm:$0xff] %v6155_v39  ;;  %8660 = vst [vmem:[#allocation228_spill] sm:$0xff] %v6160_v34  ;;  %v6165_v17 = vld [vmem:[%s8077_s5 + $0x7d0] sm:$0xff]  ;;  %v6170_v47 = vld [vmem:[%s8077_s5 + $0x7d8] sm:$0xff] }
  0x78   :  { %8661 = vst [vmem:[#allocation229_spill] sm:$0xff] %v6165_v17  ;;  %8662 = vst [vmem:[#allocation230_spill] sm:$0xff] %v6170_v47  ;;  %v6175_v32 = vld [vmem:[%s8077_s5 + $0x7e0] sm:$0xff]  ;;  %v6180_v39 = vld [vmem:[%s8077_s5 + $0x7e8] sm:$0xff] }
  0x79   :  { %8663 = vst [vmem:[#allocation231_spill] sm:$0xff] %v6175_v32  ;;  %8664 = vst [vmem:[#allocation232_spill] sm:$0xff] %v6180_v39  ;;  %v6185_v34 = vld [vmem:[%s8077_s5 + $0x7f0] sm:$0xff]  ;;  %v6190_v17 = vld [vmem:[%s8077_s5 + $0x7f8] sm:$0xff] }
  0x7a   :  { %8665 = vst [vmem:[#allocation233_spill] sm:$0xff] %v6185_v34  ;;  %8666 = vst [vmem:[#allocation234_spill] sm:$0xff] %v6190_v17  ;;  %v6195_v47 = vld [vmem:[%s8077_s5 + $0x800] sm:$0xff]  ;;  %v6200_v32 = vld [vmem:[%s8077_s5 + $0x808] sm:$0xff] }
  0x7b   :  { %8667 = vst [vmem:[#allocation235_spill] sm:$0xff] %v6195_v47  ;;  %8668 = vst [vmem:[#allocation236_spill] sm:$0xff] %v6200_v32  ;;  %v6205_v39 = vld [vmem:[%s8077_s5 + $0x810] sm:$0xff]  ;;  %v6210_v34 = vld [vmem:[%s8077_s5 + $0x818] sm:$0xff] }
  0x7c   :  { %8669 = vst [vmem:[#allocation237_spill] sm:$0xff] %v6205_v39  ;;  %8670 = vst [vmem:[#allocation238_spill] sm:$0xff] %v6210_v34  ;;  %v6215_v17 = vld [vmem:[%s8077_s5 + $0x820] sm:$0xff]  ;;  %v6220_v47 = vld [vmem:[%s8077_s5 + $0x828] sm:$0xff] }
  0x7d   :  { %8671 = vst [vmem:[#allocation239_spill] sm:$0xff] %v6215_v17  ;;  %8672 = vst [vmem:[#allocation240_spill] sm:$0xff] %v6220_v47  ;;  %v6225_v32 = vld [vmem:[%s8077_s5 + $0x830] sm:$0xff]  ;;  %v6230_v39 = vld [vmem:[%s8077_s5 + $0x838] sm:$0xff] }
  0x7e   :  { %8673 = vst [vmem:[#allocation241_spill] sm:$0xff] %v6225_v32  ;;  %8674 = vst [vmem:[#allocation242_spill] sm:$0xff] %v6230_v39  ;;  %v6235_v34 = vld [vmem:[%s8077_s5 + $0x840] sm:$0xff]  ;;  %v6240_v17 = vld [vmem:[%s8077_s5 + $0x848] sm:$0xff] }
  0x7f   :  { %8675 = vst [vmem:[#allocation243_spill] sm:$0xff] %v6235_v34  ;;  %8676 = vst [vmem:[#allocation244_spill] sm:$0xff] %v6240_v17  ;;  %v6245_v47 = vld [vmem:[%s8077_s5 + $0x850] sm:$0xff]  ;;  %v6250_v32 = vld [vmem:[%s8077_s5 + $0x858] sm:$0xff] }
  0x80   :  { %8677 = vst [vmem:[#allocation245_spill] sm:$0xff] %v6245_v47  ;;  %8678 = vst [vmem:[#allocation246_spill] sm:$0xff] %v6250_v32  ;;  %v6255_v39 = vld [vmem:[%s8077_s5 + $0x860] sm:$0xff]  ;;  %v6260_v34 = vld [vmem:[%s8077_s5 + $0x868] sm:$0xff] }
  0x81   :  { %8679 = vst [vmem:[#allocation247_spill] sm:$0xff] %v6255_v39  ;;  %8680 = vst [vmem:[#allocation248_spill] sm:$0xff] %v6260_v34  ;;  %v6265_v17 = vld [vmem:[%s8077_s5 + $0x870] sm:$0xff]  ;;  %v6270_v47 = vld [vmem:[%s8077_s5 + $0x878] sm:$0xff] }
  0x82   :  { %8681 = vst [vmem:[#allocation249_spill] sm:$0xff] %v6265_v17  ;;  %8682 = vst [vmem:[#allocation250_spill] sm:$0xff] %v6270_v47  ;;  %v6275_v32 = vld [vmem:[%s8077_s5 + $0x880] sm:$0xff]  ;;  %v6280_v39 = vld [vmem:[%s8077_s5 + $0x888] sm:$0xff] }
  0x83   :  { %8683 = vst [vmem:[#allocation251_spill] sm:$0xff] %v6275_v32  ;;  %8684 = vst [vmem:[#allocation252_spill] sm:$0xff] %v6280_v39  ;;  %v6285_v34 = vld [vmem:[%s8077_s5 + $0x890] sm:$0xff]  ;;  %v6290_v17 = vld [vmem:[%s8077_s5 + $0x898] sm:$0xff] }
  0x84   :  { %8685 = vst [vmem:[#allocation253_spill] sm:$0xff] %v6285_v34  ;;  %8686 = vst [vmem:[#allocation254_spill] sm:$0xff] %v6290_v17  ;;  %v6295_v47 = vld [vmem:[%s8077_s5 + $0x8a0] sm:$0xff]  ;;  %v6300_v32 = vld [vmem:[%s8077_s5 + $0x8a8] sm:$0xff] }
  0x85   :  { %8687 = vst [vmem:[#allocation255_spill] sm:$0xff] %v6295_v47  ;;  %8688 = vst [vmem:[#allocation256_spill] sm:$0xff] %v6300_v32  ;;  %v6305_v39 = vld [vmem:[%s8077_s5 + $0x8b0] sm:$0xff]  ;;  %v6310_v34 = vld [vmem:[%s8077_s5 + $0x8b8] sm:$0xff] }
  0x86   :  { %8689 = vst [vmem:[#allocation257_spill] sm:$0xff] %v6305_v39  ;;  %8690 = vst [vmem:[#allocation258_spill] sm:$0xff] %v6310_v34  ;;  %v6315_v17 = vld [vmem:[%s8077_s5 + $0x8c0] sm:$0xff]  ;;  %v6320_v47 = vld [vmem:[%s8077_s5 + $0x8c8] sm:$0xff] }
  0x87   :  { %8691 = vst [vmem:[#allocation259_spill] sm:$0xff] %v6315_v17  ;;  %8692 = vst [vmem:[#allocation260_spill] sm:$0xff] %v6320_v47  ;;  %v6325_v32 = vld [vmem:[%s8077_s5 + $0x8d0] sm:$0xff]  ;;  %v6330_v39 = vld [vmem:[%s8077_s5 + $0x8d8] sm:$0xff] }
  0x88   :  { %8693 = vst [vmem:[#allocation261_spill] sm:$0xff] %v6325_v32  ;;  %8694 = vst [vmem:[#allocation262_spill] sm:$0xff] %v6330_v39  ;;  %v6335_v34 = vld [vmem:[%s8077_s5 + $0x8e0] sm:$0xff]  ;;  %v6340_v17 = vld [vmem:[%s8077_s5 + $0x8e8] sm:$0xff] }
  0x89   :  { %8695 = vst [vmem:[#allocation263_spill] sm:$0xff] %v6335_v34  ;;  %8696 = vst [vmem:[#allocation264_spill] sm:$0xff] %v6340_v17  ;;  %v6345_v47 = vld [vmem:[%s8077_s5 + $0x8f0] sm:$0xff]  ;;  %v6350_v32 = vld [vmem:[%s8077_s5 + $0x8f8] sm:$0xff] }
  0x8a   :  { %8697 = vst [vmem:[#allocation265_spill] sm:$0xff] %v6345_v47  ;;  %8698 = vst [vmem:[#allocation266_spill] sm:$0xff] %v6350_v32  ;;  %v6355_v39 = vld [vmem:[%s8077_s5 + $0x900] sm:$0xff]  ;;  %v6360_v34 = vld [vmem:[%s8077_s5 + $0x908] sm:$0xff] }
  0x8b   :  { %8699 = vst [vmem:[#allocation267_spill] sm:$0xff] %v6355_v39  ;;  %8700 = vst [vmem:[#allocation268_spill] sm:$0xff] %v6360_v34  ;;  %v6365_v17 = vld [vmem:[%s8077_s5 + $0x910] sm:$0xff]  ;;  %v6370_v47 = vld [vmem:[%s8077_s5 + $0x918] sm:$0xff] }
  0x8c   :  { %8701 = vst [vmem:[#allocation269_spill] sm:$0xff] %v6365_v17  ;;  %8702 = vst [vmem:[#allocation270_spill] sm:$0xff] %v6370_v47  ;;  %v6375_v32 = vld [vmem:[%s8077_s5 + $0x920] sm:$0xff]  ;;  %v6380_v39 = vld [vmem:[%s8077_s5 + $0x928] sm:$0xff] }
  0x8d   :  { %8703 = vst [vmem:[#allocation271_spill] sm:$0xff] %v6375_v32  ;;  %8704 = vst [vmem:[#allocation272_spill] sm:$0xff] %v6380_v39  ;;  %v6385_v34 = vld [vmem:[%s8077_s5 + $0x930] sm:$0xff]  ;;  %v6390_v17 = vld [vmem:[%s8077_s5 + $0x938] sm:$0xff] }
  0x8e   :  { %8705 = vst [vmem:[#allocation273_spill] sm:$0xff] %v6385_v34  ;;  %8706 = vst [vmem:[#allocation274_spill] sm:$0xff] %v6390_v17  ;;  %v6395_v47 = vld [vmem:[%s8077_s5 + $0x940] sm:$0xff]  ;;  %v6400_v32 = vld [vmem:[%s8077_s5 + $0x948] sm:$0xff] }
  0x8f   :  { %8707 = vst [vmem:[#allocation275_spill] sm:$0xff] %v6395_v47  ;;  %8708 = vst [vmem:[#allocation276_spill] sm:$0xff] %v6400_v32  ;;  %v6405_v39 = vld [vmem:[%s8077_s5 + $0x950] sm:$0xff]  ;;  %v6410_v34 = vld [vmem:[%s8077_s5 + $0x958] sm:$0xff] }
  0x90   :  { %8709 = vst [vmem:[#allocation277_spill] sm:$0xff] %v6405_v39  ;;  %8710 = vst [vmem:[#allocation278_spill] sm:$0xff] %v6410_v34  ;;  %v6415_v17 = vld [vmem:[%s8077_s5 + $0x960] sm:$0xff]  ;;  %v6420_v47 = vld [vmem:[%s8077_s5 + $0x968] sm:$0xff] }
  0x91   :  { %8711 = vst [vmem:[#allocation279_spill] sm:$0xff] %v6415_v17  ;;  %8712 = vst [vmem:[#allocation280_spill] sm:$0xff] %v6420_v47  ;;  %v6425_v32 = vld [vmem:[%s8077_s5 + $0x970] sm:$0xff]  ;;  %v6430_v39 = vld [vmem:[%s8077_s5 + $0x978] sm:$0xff] }
  0x92   :  { %8713 = vst [vmem:[#allocation281_spill] sm:$0xff] %v6425_v32  ;;  %8714 = vst [vmem:[#allocation282_spill] sm:$0xff] %v6430_v39  ;;  %v6435_v34 = vld [vmem:[%s8077_s5 + $0x980] sm:$0xff]  ;;  %v6440_v17 = vld [vmem:[%s8077_s5 + $0x988] sm:$0xff] }
  0x93   :  { %8715 = vst [vmem:[#allocation283_spill] sm:$0xff] %v6435_v34  ;;  %8716 = vst [vmem:[#allocation284_spill] sm:$0xff] %v6440_v17  ;;  %v6445_v47 = vld [vmem:[%s8077_s5 + $0x990] sm:$0xff]  ;;  %v6450_v32 = vld [vmem:[%s8077_s5 + $0x998] sm:$0xff] }
  0x94   :  { %8717 = vst [vmem:[#allocation285_spill] sm:$0xff] %v6445_v47  ;;  %8718 = vst [vmem:[#allocation286_spill] sm:$0xff] %v6450_v32  ;;  %v6455_v39 = vld [vmem:[%s8077_s5 + $0x9a0] sm:$0xff]  ;;  %v6460_v34 = vld [vmem:[%s8077_s5 + $0x9a8] sm:$0xff] }
  0x95   :  { %8719 = vst [vmem:[#allocation287_spill] sm:$0xff] %v6455_v39  ;;  %8720 = vst [vmem:[#allocation288_spill] sm:$0xff] %v6460_v34  ;;  %v6465_v17 = vld [vmem:[%s8077_s5 + $0x9b0] sm:$0xff]  ;;  %v6470_v47 = vld [vmem:[%s8077_s5 + $0x9b8] sm:$0xff] }
  0x96   :  { %8721 = vst [vmem:[#allocation289_spill] sm:$0xff] %v6465_v17  ;;  %8722 = vst [vmem:[#allocation290_spill] sm:$0xff] %v6470_v47  ;;  %v6475_v32 = vld [vmem:[%s8077_s5 + $0x9c0] sm:$0xff]  ;;  %v6480_v39 = vld [vmem:[%s8077_s5 + $0x9c8] sm:$0xff] }
  0x97   :  { %8723 = vst [vmem:[#allocation291_spill] sm:$0xff] %v6475_v32  ;;  %8724 = vst [vmem:[#allocation292_spill] sm:$0xff] %v6480_v39  ;;  %v6485_v34 = vld [vmem:[%s8077_s5 + $0x9d0] sm:$0xff]  ;;  %v6490_v17 = vld [vmem:[%s8077_s5 + $0x9d8] sm:$0xff] }
  0x98   :  { %8725 = vst [vmem:[#allocation293_spill] sm:$0xff] %v6485_v34  ;;  %8726 = vst [vmem:[#allocation294_spill] sm:$0xff] %v6490_v17  ;;  %v6495_v47 = vld [vmem:[%s8077_s5 + $0x9e0] sm:$0xff]  ;;  %v6500_v32 = vld [vmem:[%s8077_s5 + $0x9e8] sm:$0xff] }
  0x99   :  { %8727 = vst [vmem:[#allocation295_spill] sm:$0xff] %v6495_v47  ;;  %8728 = vst [vmem:[#allocation296_spill] sm:$0xff] %v6500_v32  ;;  %v6505_v39 = vld [vmem:[%s8077_s5 + $0x9f0] sm:$0xff]  ;;  %v6510_v34 = vld [vmem:[%s8077_s5 + $0x9f8] sm:$0xff] }
  0x9a   :  { %8729 = vst [vmem:[#allocation297_spill] sm:$0xff] %v6505_v39  ;;  %8730 = vst [vmem:[#allocation298_spill] sm:$0xff] %v6510_v34  ;;  %v6515_v17 = vld [vmem:[%s8077_s5 + $0xa00] sm:$0xff]  ;;  %v6520_v47 = vld [vmem:[%s8077_s5 + $0xa08] sm:$0xff] }
  0x9b   :  { %8731 = vst [vmem:[#allocation299_spill] sm:$0xff] %v6515_v17  ;;  %8732 = vst [vmem:[#allocation300_spill] sm:$0xff] %v6520_v47  ;;  %v6525_v32 = vld [vmem:[%s8077_s5 + $0xa10] sm:$0xff]  ;;  %v6530_v39 = vld [vmem:[%s8077_s5 + $0xa18] sm:$0xff] }
  0x9c   :  { %8733 = vst [vmem:[#allocation301_spill] sm:$0xff] %v6525_v32  ;;  %8734 = vst [vmem:[#allocation302_spill] sm:$0xff] %v6530_v39  ;;  %v6535_v34 = vld [vmem:[%s8077_s5 + $0xa20] sm:$0xff]  ;;  %v6540_v17 = vld [vmem:[%s8077_s5 + $0xa28] sm:$0xff] }
  0x9d   :  { %8735 = vst [vmem:[#allocation303_spill] sm:$0xff] %v6535_v34  ;;  %8736 = vst [vmem:[#allocation304_spill] sm:$0xff] %v6540_v17  ;;  %v6545_v47 = vld [vmem:[%s8077_s5 + $0xa30] sm:$0xff]  ;;  %v6550_v32 = vld [vmem:[%s8077_s5 + $0xa38] sm:$0xff] }
  0x9e   :  { %8737 = vst [vmem:[#allocation305_spill] sm:$0xff] %v6545_v47  ;;  %8738 = vst [vmem:[#allocation306_spill] sm:$0xff] %v6550_v32  ;;  %v6555_v39 = vld [vmem:[%s8077_s5 + $0xa40] sm:$0xff]  ;;  %v6560_v34 = vld [vmem:[%s8077_s5 + $0xa48] sm:$0xff] }
  0x9f   :  { %8739 = vst [vmem:[#allocation307_spill] sm:$0xff] %v6555_v39  ;;  %8740 = vst [vmem:[#allocation308_spill] sm:$0xff] %v6560_v34  ;;  %v6565_v17 = vld [vmem:[%s8077_s5 + $0xa50] sm:$0xff]  ;;  %v6570_v47 = vld [vmem:[%s8077_s5 + $0xa58] sm:$0xff] }
  0xa0   :  { %8741 = vst [vmem:[#allocation309_spill] sm:$0xff] %v6565_v17  ;;  %8742 = vst [vmem:[#allocation310_spill] sm:$0xff] %v6570_v47  ;;  %v6575_v32 = vld [vmem:[%s8077_s5 + $0xa60] sm:$0xff]  ;;  %v6580_v39 = vld [vmem:[%s8077_s5 + $0xa68] sm:$0xff] }
  0xa1   :  { %8743 = vst [vmem:[#allocation311_spill] sm:$0xff] %v6575_v32  ;;  %8744 = vst [vmem:[#allocation312_spill] sm:$0xff] %v6580_v39  ;;  %v6585_v34 = vld [vmem:[%s8077_s5 + $0xa70] sm:$0xff]  ;;  %v6590_v17 = vld [vmem:[%s8077_s5 + $0xa78] sm:$0xff] }
  0xa2   :  { %8745 = vst [vmem:[#allocation313_spill] sm:$0xff] %v6585_v34  ;;  %8746 = vst [vmem:[#allocation314_spill] sm:$0xff] %v6590_v17  ;;  %v6595_v47 = vld [vmem:[%s8077_s5 + $0xa80] sm:$0xff]  ;;  %v6600_v32 = vld [vmem:[%s8077_s5 + $0xa88] sm:$0xff] }
  0xa3   :  { %8747 = vst [vmem:[#allocation315_spill] sm:$0xff] %v6595_v47  ;;  %8748 = vst [vmem:[#allocation316_spill] sm:$0xff] %v6600_v32  ;;  %v6605_v39 = vld [vmem:[%s8077_s5 + $0xa90] sm:$0xff]  ;;  %v6610_v34 = vld [vmem:[%s8077_s5 + $0xa98] sm:$0xff] }
  0xa4   :  { %8749 = vst [vmem:[#allocation317_spill] sm:$0xff] %v6605_v39  ;;  %8750 = vst [vmem:[#allocation318_spill] sm:$0xff] %v6610_v34  ;;  %v6615_v17 = vld [vmem:[%s8077_s5 + $0xaa0] sm:$0xff]  ;;  %v6620_v47 = vld [vmem:[%s8077_s5 + $0xaa8] sm:$0xff] }
  0xa5   :  { %8751 = vst [vmem:[#allocation319_spill] sm:$0xff] %v6615_v17  ;;  %8752 = vst [vmem:[#allocation320_spill] sm:$0xff] %v6620_v47  ;;  %v6625_v32 = vld [vmem:[%s8077_s5 + $0xab0] sm:$0xff]  ;;  %v6630_v39 = vld [vmem:[%s8077_s5 + $0xab8] sm:$0xff] }
  0xa6   :  { %8753 = vst [vmem:[#allocation321_spill] sm:$0xff] %v6625_v32  ;;  %8754 = vst [vmem:[#allocation322_spill] sm:$0xff] %v6630_v39  ;;  %v6635_v34 = vld [vmem:[%s8077_s5 + $0xac0] sm:$0xff]  ;;  %v6640_v17 = vld [vmem:[%s8077_s5 + $0xac8] sm:$0xff] }
  0xa7   :  { %8755 = vst [vmem:[#allocation323_spill] sm:$0xff] %v6635_v34  ;;  %8756 = vst [vmem:[#allocation324_spill] sm:$0xff] %v6640_v17  ;;  %v6645_v47 = vld [vmem:[%s8077_s5 + $0xad0] sm:$0xff]  ;;  %v6650_v32 = vld [vmem:[%s8077_s5 + $0xad8] sm:$0xff] }
  0xa8   :  { %8757 = vst [vmem:[#allocation325_spill] sm:$0xff] %v6645_v47  ;;  %8758 = vst [vmem:[#allocation326_spill] sm:$0xff] %v6650_v32  ;;  %v6655_v39 = vld [vmem:[%s8077_s5 + $0xae0] sm:$0xff]  ;;  %v6660_v34 = vld [vmem:[%s8077_s5 + $0xae8] sm:$0xff] }
  0xa9   :  { %8759 = vst [vmem:[#allocation327_spill] sm:$0xff] %v6655_v39  ;;  %8760 = vst [vmem:[#allocation328_spill] sm:$0xff] %v6660_v34  ;;  %v6665_v17 = vld [vmem:[%s8077_s5 + $0xaf0] sm:$0xff]  ;;  %v6670_v47 = vld [vmem:[%s8077_s5 + $0xaf8] sm:$0xff] }
  0xaa   :  { %8761 = vst [vmem:[#allocation329_spill] sm:$0xff] %v6665_v17  ;;  %8762 = vst [vmem:[#allocation330_spill] sm:$0xff] %v6670_v47  ;;  %v6675_v32 = vld [vmem:[%s8077_s5 + $0xb00] sm:$0xff]  ;;  %v6680_v39 = vld [vmem:[%s8077_s5 + $0xb08] sm:$0xff] }
  0xab   :  { %8763 = vst [vmem:[#allocation331_spill] sm:$0xff] %v6675_v32  ;;  %8764 = vst [vmem:[#allocation332_spill] sm:$0xff] %v6680_v39  ;;  %v6685_v34 = vld [vmem:[%s8077_s5 + $0xb10] sm:$0xff]  ;;  %v6690_v17 = vld [vmem:[%s8077_s5 + $0xb18] sm:$0xff] }
  0xac   :  { %8765 = vst [vmem:[#allocation333_spill] sm:$0xff] %v6685_v34  ;;  %8766 = vst [vmem:[#allocation334_spill] sm:$0xff] %v6690_v17  ;;  %v6695_v47 = vld [vmem:[%s8077_s5 + $0xb20] sm:$0xff]  ;;  %v6700_v32 = vld [vmem:[%s8077_s5 + $0xb28] sm:$0xff] }
  0xad   :  { %8767 = vst [vmem:[#allocation335_spill] sm:$0xff] %v6695_v47  ;;  %8768 = vst [vmem:[#allocation336_spill] sm:$0xff] %v6700_v32  ;;  %v6705_v39 = vld [vmem:[%s8077_s5 + $0xb30] sm:$0xff]  ;;  %v6710_v34 = vld [vmem:[%s8077_s5 + $0xb38] sm:$0xff] }
  0xae   :  { %8769 = vst [vmem:[#allocation337_spill] sm:$0xff] %v6705_v39  ;;  %8770 = vst [vmem:[#allocation338_spill] sm:$0xff] %v6710_v34  ;;  %v6715_v17 = vld [vmem:[%s8077_s5 + $0xb40] sm:$0xff]  ;;  %v6720_v47 = vld [vmem:[%s8077_s5 + $0xb48] sm:$0xff] }
  0xaf   :  { %8771 = vst [vmem:[#allocation339_spill] sm:$0xff] %v6715_v17  ;;  %8772 = vst [vmem:[#allocation340_spill] sm:$0xff] %v6720_v47  ;;  %v6725_v32 = vld [vmem:[%s8077_s5 + $0xb50] sm:$0xff]  ;;  %v6730_v39 = vld [vmem:[%s8077_s5 + $0xb58] sm:$0xff] }
  0xb0   :  { %8773 = vst [vmem:[#allocation341_spill] sm:$0xff] %v6725_v32  ;;  %8774 = vst [vmem:[#allocation342_spill] sm:$0xff] %v6730_v39  ;;  %v6735_v34 = vld [vmem:[%s8077_s5 + $0xb60] sm:$0xff]  ;;  %v6740_v17 = vld [vmem:[%s8077_s5 + $0xb68] sm:$0xff] }
  0xb1   :  { %8775 = vst [vmem:[#allocation343_spill] sm:$0xff] %v6735_v34  ;;  %8776 = vst [vmem:[#allocation344_spill] sm:$0xff] %v6740_v17  ;;  %v6745_v47 = vld [vmem:[%s8077_s5 + $0xb70] sm:$0xff]  ;;  %v6750_v32 = vld [vmem:[%s8077_s5 + $0xb78] sm:$0xff] }
  0xb2   :  { %8777 = vst [vmem:[#allocation345_spill] sm:$0xff] %v6745_v47  ;;  %8778 = vst [vmem:[#allocation346_spill] sm:$0xff] %v6750_v32  ;;  %v6755_v39 = vld [vmem:[%s8077_s5 + $0xb80] sm:$0xff]  ;;  %v6760_v34 = vld [vmem:[%s8077_s5 + $0xb88] sm:$0xff] }
  0xb3   :  { %8779 = vst [vmem:[#allocation347_spill] sm:$0xff] %v6755_v39  ;;  %8780 = vst [vmem:[#allocation348_spill] sm:$0xff] %v6760_v34  ;;  %v6765_v17 = vld [vmem:[%s8077_s5 + $0xb90] sm:$0xff]  ;;  %v6770_v47 = vld [vmem:[%s8077_s5 + $0xb98] sm:$0xff] }
  0xb4   :  { %8781 = vst [vmem:[#allocation349_spill] sm:$0xff] %v6765_v17  ;;  %8782 = vst [vmem:[#allocation350_spill] sm:$0xff] %v6770_v47  ;;  %v6775_v32 = vld [vmem:[%s8077_s5 + $0xba0] sm:$0xff]  ;;  %v6780_v39 = vld [vmem:[%s8077_s5 + $0xba8] sm:$0xff] }
  0xb5   :  { %8783 = vst [vmem:[#allocation351_spill] sm:$0xff] %v6775_v32  ;;  %8784 = vst [vmem:[#allocation352_spill] sm:$0xff] %v6780_v39  ;;  %v6785_v34 = vld [vmem:[%s8077_s5 + $0xbb0] sm:$0xff]  ;;  %v6790_v17 = vld [vmem:[%s8077_s5 + $0xbb8] sm:$0xff] }
  0xb6   :  { %8785 = vst [vmem:[#allocation353_spill] sm:$0xff] %v6785_v34  ;;  %8786 = vst [vmem:[#allocation354_spill] sm:$0xff] %v6790_v17  ;;  %v6795_v47 = vld [vmem:[%s8077_s5 + $0xbc0] sm:$0xff]  ;;  %v6800_v32 = vld [vmem:[%s8077_s5 + $0xbc8] sm:$0xff] }
  0xb7   :  { %8787 = vst [vmem:[#allocation355_spill] sm:$0xff] %v6795_v47  ;;  %8788 = vst [vmem:[#allocation356_spill] sm:$0xff] %v6800_v32  ;;  %v6805_v39 = vld [vmem:[%s8077_s5 + $0xbd0] sm:$0xff]  ;;  %v6810_v34 = vld [vmem:[%s8077_s5 + $0xbd8] sm:$0xff] }
  0xb8   :  { %8789 = vst [vmem:[#allocation357_spill] sm:$0xff] %v6805_v39  ;;  %8790 = vst [vmem:[#allocation358_spill] sm:$0xff] %v6810_v34  ;;  %v6815_v17 = vld [vmem:[%s8077_s5 + $0xbe0] sm:$0xff]  ;;  %v6820_v47 = vld [vmem:[%s8077_s5 + $0xbe8] sm:$0xff] }
  0xb9   :  { %8791 = vst [vmem:[#allocation359_spill] sm:$0xff] %v6815_v17  ;;  %8792 = vst [vmem:[#allocation360_spill] sm:$0xff] %v6820_v47  ;;  %v6825_v32 = vld [vmem:[%s8077_s5 + $0xbf0] sm:$0xff]  ;;  %v6830_v39 = vld [vmem:[%s8077_s5 + $0xbf8] sm:$0xff] }
  0xba   :  { %8793 = vst [vmem:[#allocation361_spill] sm:$0xff] %v6825_v32  ;;  %8794 = vst [vmem:[#allocation362_spill] sm:$0xff] %v6830_v39 }
  0xbb   :  { %829 = vsyncadd [#allocation3], 49152  ;;  %v845_v34 = vld [vmem:[%s8073_s1 + $0x20] sm:$0xf]  ;;  %vm887_vm0 = vcmask 1043456   ;;  %v8407_v17 = vmov 0.0   ;;  %v1491_v25 = vlaneseq }
  0xbc   :  { %4828 = vmatprep.subr.mxu0 %v8407_v17  ;;  %v844_v47 = vld [vmem:[%s8073_s1 + $0x18] sm:$0xff]  ;;  %1171 = vmatprep.mubr.f32.mxu1 %v8407_v17  ;;  %vm4876_vm1 = vmmov 0   ;;  %v843_v39 = vld [vmem:[%s8073_s1 + $0x10] sm:$0xff]  ;;  %v842_v32 = vld [vmem:[%s8073_s1 + $0x8] sm:$0xff]  ;;  %vm853_vm2 = vcmask 293888   ;;  %vm1076_vm4 = vcmask 523264  }
  0xbd   :  { %4829 = vmatpush3.msk.msra.mxu0 %vm887_vm0, %v845_v34  ;;  %4838 = vmatprep.mubr.msk.f32.mxu0 %vm4876_vm1, %v8407_v17  ;;  %v1075_v34 = vld [vmem:[%s8075_s3 + $0x78] sm:$0xff]  ;;  %v1074_v3 = vld [vmem:[%s8075_s3 + $0x70] sm:$0xff]  ;;  %v1073_v36 = vld [vmem:[%s8075_s3 + $0x68] sm:$0xff]  ;;  %v1492_v52 = vshrl.u32 %v1491_v25, 7 }
  0xbe   :  { %4830 = vmatprep.subr.mxu0 %v8407_v17  ;;  %1123 = vmatprep.subr.mxu1 %v1075_v34  ;;  %v830_v38 = vld [vmem:[%s8072_s0] sm:$0xff]  ;;  %v8795_v34 = vmov 0.0   ;;  %v1058_v19 = vld [vmem:[%s8075_s3 + $0xf0] sm:$0xff]  ;;  %v1359_v40 = vld [vmem:[%s8075_s3 + $0x168] sm:$0xff] }
  0xbf   :  { %4831 = vmatpush3.msra.mxu0 %v844_v47  ;;  %v841_v47 = vld [vmem:[%s8073_s1] sm:$0xff]  ;;  %1124 = vmatpush1.msra.mxu1 %v1074_v3  ;;  %v1071_v3 = vld [vmem:[%s8075_s3 + $0x58] sm:$0xff]  ;;  %v1054_v7 = vld [vmem:[%s8075_s3 + $0xd0] sm:$0xff] }
  0xc0   :  { %4832 = vmatprep.subr.mxu0 %v8407_v17  ;;  %1125 = vmatprep.subr.mxu1 %v1073_v36  ;;  %v1056_v36 = vld [vmem:[%s8075_s3 + $0xe0] sm:$0xff] }
  0xc1   :  { %4833 = vmatpush3.msra.mxu0 %v843_v39  ;;  %v1072_v39 = vld [vmem:[%s8075_s3 + $0x60] sm:$0xff] }
  0xc2   :  { %4834 = vmatprep.subr.mxu0 %v8407_v17  ;;  %v1059_v17 = vld [vmem:[%s8075_s3 + $0xf8] sm:$0xff]  ;;  %1126 = vmatpush1.msra.mxu1 %v1072_v39  ;;  %v831_v39 = vld [vmem:[%s8072_s0 + $0x8] sm:$0xff]  ;;  %v1346_v55 = vld [vmem:[%s8075_s3 + $0x100] sm:$0xff] }
  0xc3   :  { %4835 = vmatpush3.msra.mxu0 %v842_v32  ;;  %v1057_v32 = vld [vmem:[%s8075_s3 + $0xe8] sm:$0xff]  ;;  %1127 = vmatprep.subr.mxu1 %v1071_v3  ;;  %v1067_v3 = vld [vmem:[%s8075_s3 + $0x38] sm:$0xff] }
  0xc4   :  { %4836 = vmatprep.subr.mxu0 %v8795_v34 }
  0xc5   :  { %4837 = vmatpush3.msra.mxu0 %v841_v47  ;;  %v1070_v47 = vld [vmem:[%s8075_s3 + $0x50] sm:$0xff] }
  0xc6   :  { %4839 = vmatmul.mubr.msk.f32.vlgmr.msra.gmra.mxu0 %vm853_vm2, %v830_v38  ;;  %1241 = vmatprep.subr.mxu0 %v1059_v17  ;;  %v1055_v17 = vld [vmem:[%s8075_s3 + $0xd8] sm:$0xff]  ;;  %v1069_v38 = vld [vmem:[%s8075_s3 + $0x48] sm:$0xff] }
  0xc7   :  { %4841 = vmatprep.mubr.msk.f32.mxu0 %vm4876_vm1, %v8795_v34  ;;  %1242 = vmatpush1.msra.mxu0 %v1058_v19  ;;  %v1068_v19 = vld [vmem:[%s8075_s3 + $0x40] sm:$0xff] }
  0xc8   :  { %1243 = vmatprep.subr.mxu0 %v1057_v32  ;;  %1128 = vmatpush1.msra.mxu1 %v1070_v47  ;;  %v1053_v32 = vld [vmem:[%s8075_s3 + $0xc8] sm:$0xff]  ;;  %v1066_v47 = vld [vmem:[%s8075_s3 + $0x30] sm:$0xff] }
  0xc9   :  { %1244 = vmatpush1.msra.mxu0 %v1056_v36  ;;  %v832_v36 = vld [vmem:[%s8072_s0 + $0x10] sm:$0xff]  ;;  %1129 = vmatprep.subr.mxu1 %v1069_v38  ;;  %v1065_v38 = vld [vmem:[%s8075_s3 + $0x28] sm:$0xff] }
  0xca   :  { %4842 = vmatmul.mubr.msk.f32.gmra.mxu0 %vm853_vm2, %v831_v39  ;;  %1245 = vmatprep.subr.mxu0 %v1055_v17  ;;  %v1052_v39 = vld [vmem:[%s8075_s3 + $0xc0] sm:$0xff]  ;;  %v1051_v17 = vld [vmem:[%s8075_s3 + $0xb8] sm:$0xff] }
  0xcb   :  { %4844 = vmatprep.mubr.msk.f32.mxu0 %vm4876_vm1, %v8795_v34  ;;  %1246 = vmatpush1.msra.mxu0 %v1054_v7  ;;  %v1050_v7 = vld [vmem:[%s8075_s3 + $0xb0] sm:$0xff] }
  0xcc   :  { %1130 = vmatpush1.msra.mxu1 %v1068_v19  ;;  %1247 = vmatprep.subr.mxu0 %v1053_v32  ;;  %v833_v19 = vld [vmem:[%s8072_s0 + $0x18] sm:$0xff]  ;;  %v834_v32 = vld [vmem:[%s8072_s0 + $0x20] sm:$0xff] }
  0xcd   :  { %1131 = vmatprep.subr.mxu1 %v1067_v3  ;;  %1248 = vmatpush1.msra.mxu0 %v1052_v39  ;;  %v835_v3 = vld [vmem:[%s8072_s0 + $0x28] sm:$0xff]  ;;  %v838_v39 = vld [vmem:[%s8072_s0 + $0x40] sm:$0xff] }
  0xce   :  { %4845 = vmatmul.mubr.msk.f32.gmra.mxu0 %vm853_vm2, %v832_v36  ;;  %1132 = vmatpush1.msra.mxu1 %v1066_v47  ;;  %v836_v36 = vld [vmem:[%s8072_s0 + $0x30] sm:$0xff]  ;;  %v837_v47 = vld [vmem:[%s8072_s0 + $0x38] sm:$0xff] }
  0xcf   :  { %4847 = vmatprep.mubr.msk.f32.mxu0 %vm4876_vm1, %v8795_v34  ;;  %1249 = vmatprep.subr.mxu0 %v1051_v17  ;;  %v839_v17 = vld [vmem:[%s8072_s0 + $0x48] sm:$0xff] }
  0xd0   :  { %1133 = vmatprep.subr.mxu1 %v1065_v38  ;;  %1250 = vmatpush1.msra.mxu0 %v1050_v7  ;;  %v840_v38 = vld [vmem:[%s8072_s0 + $0x50] sm:$0xff]  ;;  %v1049_v7 = vld [vmem:[%s8075_s3 + $0xa8] sm:$0xff] }
  0xd1   :  { %1251 = vmatprep.subr.mxu0 %v1049_v7  ;;  %v1060_v7 = vld [vmem:[%s8075_s3] sm:$0xff] }
  0xd2   :  { %4848 = vmatmul.mubr.msk.f32.gmra.mxu0 %vm853_vm2, %v833_v19  ;;  %v1064_v19 = vld [vmem:[%s8075_s3 + $0x20] sm:$0xff] }
  0xd3   :  { %4850 = vmatprep.mubr.msk.f32.mxu0 %vm4876_vm1, %v8795_v34  ;;  %1134 = vmatpush1.msra.mxu1 %v1064_v19  ;;  %v1044_v19 = vld [vmem:[%s8075_s3 + $0x80] sm:$0xff] }
  0xd6   :  { %4851 = vmatmul.mubr.msk.f32.gmra.mxu0 %vm853_vm2, %v834_v32  ;;  %v1048_v32 = vld [vmem:[%s8075_s3 + $0xa0] sm:$0xff] }
  0xd7   :  { %4853 = vmatprep.mubr.msk.f32.mxu0 %vm4876_vm1, %v8795_v34  ;;  %1252 = vmatpush1.msra.mxu0 %v1048_v32  ;;  %v1361_v32 = vld [vmem:[%s8075_s3 + $0x178] sm:$0xff] }
  0xda   :  { %4854 = vmatmul.mubr.msk.f32.gmra.mxu0 %vm853_vm2, %v835_v3  ;;  %v1063_v3 = vld [vmem:[%s8075_s3 + $0x18] sm:$0xff] }
  0xdb   :  { %4856 = vmatprep.mubr.msk.f32.mxu0 %vm4876_vm1, %v8795_v34  ;;  %1135 = vmatprep.subr.mxu1 %v1063_v3  ;;  %v7022_v3 = vld [vmem:[%s8074_s2] ss:$0 sm:$0xff] }
  0xde   :  { %4857 = vmatmul.mubr.msk.f32.gmra.mxu0 %vm853_vm2, %v836_v36  ;;  %v1047_v36 = vld [vmem:[%s8075_s3 + $0x98] sm:$0xff] }
  0xdf   :  { %4859 = vmatprep.mubr.msk.f32.mxu0 %vm4876_vm1, %v8795_v34  ;;  %1253 = vmatprep.subr.mxu0 %v1047_v36 }
  0xe2   :  { %4860 = vmatmul.mubr.msk.f32.gmra.mxu0 %vm853_vm2, %v837_v47  ;;  %v1062_v47 = vld [vmem:[%s8075_s3 + $0x10] sm:$0xff] }
  0xe3   :  { %4862 = vmatprep.mubr.msk.f32.mxu0 %vm4876_vm1, %v8795_v34  ;;  %1136 = vmatpush1.msra.mxu1 %v1062_v47 }
  0xe6   :  { %4863 = vmatmul.mubr.msk.f32.gmra.mxu0 %vm853_vm2, %v838_v39  ;;  %v1046_v39 = vld [vmem:[%s8075_s3 + $0x90] sm:$0xff] }
  0xe7   :  { %4865 = vmatprep.mubr.msk.f32.mxu0 %vm4876_vm1, %v8795_v34  ;;  %1254 = vmatpush1.msra.mxu0 %v1046_v39 }
  0xea   :  { %4866 = vmatmul.mubr.msk.f32.gmra.mxu0 %vm853_vm2, %v839_v17  ;;  %v1061_v17 = vld [vmem:[%s8075_s3 + $0x8] sm:$0xff] }
  0xeb   :  { %4868 = vmatprep.mubr.msk.f32.mxu0 %vm4876_vm1, %v8795_v34  ;;  %1137 = vmatprep.subr.mxu1 %v1061_v17 }
  0xec   :  { %1138 = vmatpush1.msra.mxu1 %v1060_v7  ;;  %v1360_v7 = vld [vmem:[%s8075_s3 + $0x170] sm:$0xff] }
  0xed   :  { %1378 = vmatprep.subr.mxu1 %v1361_v32 }
  0xee   :  { %4869 = vmatmul.mubr.msk.f32.gmra.mxu0 %vm853_vm2, %v840_v38  ;;  %v1045_v38 = vld [vmem:[%s8075_s3 + $0x88] sm:$0xff] }
  0xef   :  { %1289 = vmatprep.mubr.f32.mxu0 %v8795_v34  ;;  %1255 = vmatprep.subr.mxu0 %v1045_v38 }
  0xf0   :  { %1256 = vmatpush1.msra.mxu0 %v1044_v19 }
 0x186   :  { %v957_v36 = vpop.f32.mrf.mxu0 }
 0x187   :  { %v958_v47 = vadd.f32 %v7022_v3, %v957_v36  ;;  %v1358_v36 = vld [vmem:[%s8075_s3 + $0x160] sm:$0xff] }
 0x188   :  { %v4840_v39 = vpop.f32.mrf.mxu0 }
 0x189   :  { %vm1011_vm3 = vcmp.ge.f32.partialorder %v958_v47, 0.0  ;;  %v1022_v17 = vmul.f32 0.2, %v958_v47 }
 0x18a   :  { %v962_v38 = vpop.f32.mrf.mxu0 }
 0x18b   :  { %v963_v19 = vadd.f32 %v7022_v3, %v962_v38  ;;  %v1033_v32 = vsel %vm1011_vm3, %v958_v47, %v1022_v17  ;;  %v1357_v17 = vld [vmem:[%s8075_s3 + $0x158] sm:$0xff] }
 0x18c   :  { %v4843_v42 = vpop.f32.mrf.mxu0  ;;  %4396 = vmatmul.mubr.msk.f32.vlgmr.msra.gmra.mxu1 %vm1076_vm4, %v1033_v32  ;;  %4406 = vmatmul.mubr.msk.f32.vlgmr.msra.gmra.mxu0 %vm1076_vm4, %v1033_v32 }
 0x18d   :  { %vm1012_vm5 = vcmp.ge.f32.partialorder %v963_v19, 0.0  ;;  %v1023_v39 = vmul.f32 0.2, %v963_v19  ;;  %1379 = vmatpush1.msra.mxu1 %v1360_v7  ;;  %1175 = vmatprep.mubr.f32.mxu1 %v8795_v34 }
 0x18e   :  { %v967_v38 = vpop.f32.mrf.mxu0  ;;  %1295 = vmatprep.mubr.f32.mxu0 %v8795_v34  ;;  %1380 = vmatprep.subr.mxu1 %v1359_v40  ;;  %v1356_v40 = vld [vmem:[%s8075_s3 + $0x150] sm:$0xff] }
 0x18f   :  { %v968_v47 = vadd.f32 %v7022_v3, %v967_v38  ;;  %v7040_v42 = vsel %vm1012_vm5, %v963_v19, %v1023_v39  ;;  %1381 = vmatpush1.msra.mxu1 %v1358_v36  ;;  %v1355_v38 = vld [vmem:[%s8075_s3 + $0x148] sm:$0xff] }
 0x190   :  { %v4846_v32 = vpop.f32.mrf.mxu0  ;;  %4397 = vmatmul.mubr.msk.f32.gmra.mxu1 %vm1076_vm4, %v7040_v42  ;;  %4407 = vmatmul.mubr.msk.f32.gmra.mxu0 %vm1076_vm4, %v7040_v42 }
 0x191   :  { %vm1013_vm6 = vcmp.ge.f32.partialorder %v968_v47, 0.0  ;;  %v1024_v7 = vmul.f32 0.2, %v968_v47  ;;  %1181 = vmatprep.mubr.f32.mxu1 %v8795_v34  ;;  %1299 = vmatprep.mubr.f32.mxu0 %v8795_v34 }
 0x192   :  { %v972_v19 = vpop.f32.mrf.mxu0  ;;  %1382 = vmatprep.subr.mxu1 %v1357_v17  ;;  %v1354_v17 = vld [vmem:[%s8075_s3 + $0x140] sm:$0xff] }
 0x193   :  { %v973_v36 = vadd.f32 %v7022_v3, %v972_v19  ;;  %v7055_v39 = vsel %vm1013_vm6, %v968_v47, %v1024_v7  ;;  %1383 = vmatpush1.msra.mxu1 %v1356_v40 }
 0x194   :  { %v4849_v32 = vpop.f32.mrf.mxu0  ;;  %4398 = vmatmul.mubr.msk.f32.gmra.mxu1 %vm1076_vm4, %v7055_v39  ;;  %4408 = vmatmul.mubr.msk.f32.gmra.mxu0 %vm1076_vm4, %v7055_v39 }
 0x195   :  { %vm1014_vm7 = vcmp.ge.f32.partialorder %v973_v36, 0.0  ;;  %v1025_v19 = vmul.f32 0.2, %v973_v36  ;;  %1185 = vmatprep.mubr.f32.mxu1 %v8795_v34  ;;  %1305 = vmatprep.mubr.f32.mxu0 %v8795_v34  ;;  %v1353_v32 = vld [vmem:[%s8075_s3 + $0x138] sm:$0xff] }
 0x196   :  { %v977_v47 = vpop.f32.mrf.mxu0  ;;  %1384 = vmatprep.subr.mxu1 %v1355_v38  ;;  %v1352_v38 = vld [vmem:[%s8075_s3 + $0x130] sm:$0xff] }
 0x197   :  { %v978_v40 = vadd.f32 %v7022_v3, %v977_v47  ;;  %v7070_v7 = vsel %vm1014_vm7, %v973_v36, %v1025_v19  ;;  %1385 = vmatpush1.msra.mxu1 %v1354_v17  ;;  %v1351_v19 = vld [vmem:[%s8075_s3 + $0x128] sm:$0xff] }
 0x198   :  { %v4852_v21 = vpop.f32.mrf.mxu0  ;;  %4399 = vmatmul.mubr.msk.f32.gmra.mxu1 %vm1076_vm4, %v7070_v7  ;;  %4409 = vmatmul.mubr.msk.f32.gmra.mxu0 %vm1076_vm4, %v7070_v7 }
 0x199   :  { %vm1015_vm8 = vcmp.ge.f32.partialorder %v978_v40, 0.0  ;;  %v1026_v47 = vmul.f32 0.2, %v978_v40  ;;  %1191 = vmatprep.mubr.f32.mxu1 %v8795_v34  ;;  %1309 = vmatprep.mubr.f32.mxu0 %v8795_v34 }
 0x19a   :  { %v982_v36 = vpop.f32.mrf.mxu0  ;;  %1386 = vmatprep.subr.mxu1 %v1353_v32  ;;  %v1350_v32 = vld [vmem:[%s8075_s3 + $0x120] sm:$0xff] }
 0x19b   :  { %v983_v21 = vadd.f32 %v7022_v3, %v982_v36  ;;  %v7085_v17 = vsel %vm1015_vm8, %v978_v40, %v1026_v47  ;;  %1387 = vmatpush1.msra.mxu1 %v1352_v38  ;;  %v1349_v47 = vld [vmem:[%s8075_s3 + $0x118] sm:$0xff] }
 0x19c   :  { %v4855_v23 = vpop.f32.mrf.mxu0  ;;  %4400 = vmatmul.mubr.msk.f32.gmra.mxu1 %vm1076_vm4, %v7085_v17  ;;  %4410 = vmatmul.mubr.msk.f32.gmra.mxu0 %vm1076_vm4, %v7085_v17 }
 0x19d   :  { %vm1016_vm9 = vcmp.ge.f32.partialorder %v983_v21, 0.0  ;;  %v1027_v36 = vmul.f32 0.2, %v983_v21  ;;  %1195 = vmatprep.mubr.f32.mxu1 %v8795_v34  ;;  %1315 = vmatprep.mubr.f32.mxu0 %v8795_v34 }
 0x19e   :  { %v987_v40 = vpop.f32.mrf.mxu0  ;;  %1388 = vmatprep.subr.mxu1 %v1351_v19  ;;  %v1348_v19 = vld [vmem:[%s8075_s3 + $0x110] sm:$0xff] }
 0x19f   :  { %v988_v23 = vadd.f32 %v7022_v3, %v987_v40  ;;  %v7100_v38 = vsel %vm1016_vm9, %v983_v21, %v1027_v36  ;;  %1389 = vmatpush1.msra.mxu1 %v1350_v32  ;;  %v1347_v36 = vld [vmem:[%s8075_s3 + $0x108] sm:$0xff] }
 0x1a0   :  { %v4858_v44 = vpop.f32.mrf.mxu0  ;;  %4401 = vmatmul.mubr.msk.f32.gmra.mxu1 %vm1076_vm4, %v7100_v38  ;;  %4411 = vmatmul.mubr.msk.f32.gmra.mxu0 %vm1076_vm4, %v7100_v38 }
 0x1a1   :  { %vm1017_vm10 = vcmp.ge.f32.partialorder %v988_v23, 0.0  ;;  %v1028_v40 = vmul.f32 0.2, %v988_v23  ;;  %1201 = vmatprep.mubr.f32.mxu1 %v8795_v34  ;;  %1319 = vmatprep.mubr.f32.mxu0 %v8795_v34 }
 0x1a2   :  { %v992_v21 = vpop.f32.mrf.mxu0  ;;  %1390 = vmatprep.subr.mxu1 %v1349_v47 }
 0x1a3   :  { %v993_v44 = vadd.f32 %v7022_v3, %v992_v21  ;;  %v1039_v32 = vsel %vm1017_vm10, %v988_v23, %v1028_v40  ;;  %1391 = vmatpush1.msra.mxu1 %v1348_v19 }
 0x1a4   :  { %v4861_v46 = vpop.f32.mrf.mxu0  ;;  %4402 = vmatmul.mubr.msk.f32.gmra.mxu1 %vm1076_vm4, %v1039_v32  ;;  %4412 = vmatmul.mubr.msk.f32.gmra.mxu0 %vm1076_vm4, %v1039_v32 }
 0x1a5   :  { %vm1018_vm11 = vcmp.ge.f32.partialorder %v993_v44, 0.0  ;;  %v1029_v11 = vmul.f32 0.2, %v993_v44  ;;  %1205 = vmatprep.mubr.f32.mxu1 %v8795_v34  ;;  %1325 = vmatprep.mubr.f32.mxu0 %v8795_v34 }
 0x1a6   :  { %v997_v23 = vpop.f32.mrf.mxu0  ;;  %1392 = vmatprep.subr.mxu1 %v1347_v36 }
 0x1a7   :  { %v998_v47 = vadd.f32 %v7022_v3, %v997_v23  ;;  %v1040_v19 = vsel %vm1018_vm11, %v993_v44, %v1029_v11  ;;  %1393 = vmatpush1.msra.mxu1 %v1346_v55 }
 0x1a8   :  { %v4864_v46 = vpop.f32.mrf.mxu0  ;;  %4403 = vmatmul.mubr.msk.f32.gmra.mxu1 %vm1076_vm4, %v1040_v19  ;;  %4413 = vmatmul.mubr.msk.f32.gmra.mxu0 %vm1076_vm4, %v1040_v19 }
 0x1a9   :  { %vm1019_vm12 = vcmp.ge.f32.partialorder %v998_v47, 0.0  ;;  %v1030_v40 = vmul.f32 0.2, %v998_v47  ;;  %1211 = vmatprep.mubr.f32.mxu1 %v8795_v34  ;;  %1329 = vmatprep.mubr.f32.mxu0 %v8795_v34 }
 0x1aa   :  { %v1002_v21 = vpop.f32.mrf.mxu0 }
 0x1ab   :  { %v1003_v48 = vadd.f32 %v7022_v3, %v1002_v21  ;;  %v1041_v50 = vsel %vm1019_vm12, %v998_v47, %v1030_v40 }
 0x1ac   :  { %v4867_v36 = vpop.f32.mrf.mxu0  ;;  %4404 = vmatmul.mubr.msk.f32.gmra.mxu1 %vm1076_vm4, %v1041_v50  ;;  %4414 = vmatmul.mubr.msk.f32.gmra.mxu0 %vm1076_vm4, %v1041_v50 }
 0x1ad   :  { %vm1020_vm13 = vcmp.ge.f32.partialorder %v1003_v48, 0.0  ;;  %v1031_v11 = vmul.f32 0.2, %v1003_v48  ;;  %1215 = vmatprep.mubr.f32.mxu1 %v8795_v34  ;;  %1335 = vmatprep.mubr.f32.mxu0 %v8795_v34 }
 0x1ae   :  { %v1007_v55 = vpop.f32.mrf.mxu0 }
 0x1af   :  { %v1008_v44 = vadd.f32 %v7022_v3, %v1007_v55  ;;  %v1042_v23 = vsel %vm1020_vm13, %v1003_v48, %v1031_v11 }
 0x1b0   :  { %4405 = vmatmul.mubr.msk.f32.gmra.mxu1 %vm1076_vm4, %v1042_v23  ;;  %4415 = vmatmul.mubr.msk.f32.gmra.mxu0 %vm1076_vm4, %v1042_v23  ;;  %v4870_v47 = vpop.f32.mrf.mxu0 }
 0x1b1   :  { %vm1021_vm14 = vcmp.ge.f32.partialorder %v1008_v44, 0.0  ;;  %v1032_v46 = vmul.f32 0.2, %v1008_v44  ;;  %1339 = vmatprep.mubr.f32.mxu0 %v8795_v34  ;;  %1426 = vmatprep.mubr.f32.mxu1 %v8795_v34 }
 0x1b3   :  { %v1043_v40 = vsel %vm1021_vm14, %v1008_v44, %v1032_v46 }
 0x1b4   :  { %4416 = vmatmul.mubr.msk.f32.gmra.mxu0 %vm1076_vm4, %v1043_v40  ;;  %4417 = vmatmul.mubr.msk.f32.vlgmr.msra.gmra.mxu1 %vm1076_vm4, %v7040_v42 }
 0x1b5   :  { %1432 = vmatprep.mubr.f32.mxu1 %v8795_v34 }
 0x1b8   :  { %4418 = vmatmul.mubr.msk.f32.gmra.mxu1 %vm1076_vm4, %v7055_v39 }
 0x1b9   :  { %1436 = vmatprep.mubr.f32.mxu1 %v8795_v34 }
 0x1bc   :  { %4419 = vmatmul.mubr.msk.f32.gmra.mxu1 %vm1076_vm4, %v7070_v7 }
 0x1bd   :  { %1442 = vmatprep.mubr.f32.mxu1 %v8795_v34 }
 0x1c0   :  { %4420 = vmatmul.mubr.msk.f32.gmra.mxu1 %vm1076_vm4, %v7085_v17 }
 0x1c1   :  { %1446 = vmatprep.mubr.f32.mxu1 %v8795_v34 }
 0x1c4   :  { %4421 = vmatmul.mubr.msk.f32.gmra.mxu1 %vm1076_vm4, %v7100_v38 }
 0x1c5   :  { %1452 = vmatprep.mubr.f32.mxu1 %v8795_v34 }
 0x1c8   :  { %4422 = vmatmul.mubr.msk.f32.gmra.mxu1 %vm1076_vm4, %v1039_v32 }
 0x1c9   :  { %1456 = vmatprep.mubr.f32.mxu1 %v8795_v34 }
 0x1cc   :  { %4423 = vmatmul.mubr.msk.f32.gmra.mxu1 %vm1076_vm4, %v1040_v19 }
 0x1cd   :  { %1462 = vmatprep.mubr.f32.mxu1 %v8795_v34 }
 0x1d0   :  { %4424 = vmatmul.mubr.msk.f32.gmra.mxu1 %vm1076_vm4, %v1041_v50 }
 0x1d1   :  { %1466 = vmatprep.mubr.f32.mxu1 %v8795_v34 }
 0x1d4   :  { %4425 = vmatmul.mubr.msk.f32.gmra.mxu1 %vm1076_vm4, %v1042_v23 }
 0x1d5   :  { %1472 = vmatprep.mubr.f32.mxu1 %v8795_v34 }
 0x1d8   :  { %4426 = vmatmul.mubr.msk.f32.gmra.mxu1 %vm1076_vm4, %v1043_v40 }
 0x24c   :  { %v1173_v48 = vpop.f32.mrf.mxu1  ;;  %v1291_v3 = vpop.f32.mrf.mxu0 }
 0x24e   :  { %v1174_v42 = vpop.f32.mrf.mxu1  ;;  %v1293_v39 = vpop.f32.mrf.mxu0 }
 0x250   :  { %v1177_v7 = vpop.f32.mrf.mxu1  ;;  %v1297_v17 = vpop.f32.mrf.mxu0 }
 0x252   :  { %v7165_v38 = vpop.f32.mrf.mxu1  ;;  %v1298_v32 = vpop.f32.mrf.mxu0 }
 0x254   :  { %v1183_v19 = vpop.f32.mrf.mxu1  ;;  %v1301_v21 = vpop.f32.mrf.mxu0 }
 0x255   :  { %v7167_v50 = vadd.f32 %v1301_v21, %v1177_v7 }
 0x256   :  { %v1184_v36 = vpop.f32.mrf.mxu1  ;;  %v1303_v11 = vpop.f32.mrf.mxu0 }
 0x258   :  { %v7169_v55 = vpop.f32.mrf.mxu1  ;;  %v1307_v34 = vpop.f32.mrf.mxu0 }
 0x25a   :  { %v7171_v44 = vpop.f32.mrf.mxu1  ;;  %v1308_v23 = vpop.f32.mrf.mxu0 }
 0x25c   :  { %v1193_v47 = vpop.f32.mrf.mxu1  ;;  %v7173_v46 = vpop.f32.mrf.mxu0 }
 0x25e   :  { %v1194_v40 = vpop.f32.mrf.mxu1  ;;  %v7175_v48 = vpop.f32.mrf.mxu0 }
 0x260   :  { %v7177_v42 = vpop.f32.mrf.mxu1  ;;  %v1317_v17 = vpop.f32.mrf.mxu0 }
 0x262   :  { %v7179_v32 = vpop.f32.mrf.mxu1  ;;  %v1318_v7 = vpop.f32.mrf.mxu0 }
 0x263   :  { %v1493_v7 = vsub.s32 0, %v1492_v52 }
 0x264   :  { %v1203_v19 = vpop.f32.mrf.mxu1  ;;  %v7181_v21 = vpop.f32.mrf.mxu0 }
 0x266   :  { %v1204_v36 = vpop.f32.mrf.mxu1  ;;  %v7183_v34 = vpop.f32.mrf.mxu0 }
 0x267   :  { %v1489_v36 = vld [vmem:[%s8076_s4] sm:$0x3] }
 0x268   :  { %v7185_v23 = vpop.f32.mrf.mxu1  ;;  %v1327_v47 = vpop.f32.mrf.mxu0  ;;  %v7196_v31 = vrot.slane %v1489_v36, %v1493_v7 }
 0x269   :  { %v1497_v47 = vsub.s32 1, %v1492_v52 }
 0x26a   :  { %v7187_v27 = vpop.f32.mrf.mxu1  ;;  %v1328_v40 = vpop.f32.mrf.mxu0 }
 0x26c   :  { %v1213_v54 = vpop.f32.mrf.mxu1  ;;  %v7189_v63 = vpop.f32.mrf.mxu0 }
 0x26e   :  { %v1214_v17 = vpop.f32.mrf.mxu1  ;;  %v7191_v15 = vpop.f32.mrf.mxu0 }
 0x26f   :  { %v7198_v17 = vrot.slane %v1489_v36, %v1497_v47 }
 0x270   :  { %v1217_v19 = vpop.f32.mrf.mxu1  ;;  %v1337_v56 = vpop.f32.mrf.mxu0 }
 0x272   :  { %v1219_v58 = vpop.f32.mrf.mxu1  ;;  %v1338_v29 = vpop.f32.mrf.mxu0 }
 0x274   :  { %v1341_v40 = vpop.f32.mrf.mxu0  ;;  %v1428_v25 = vpop.f32.mrf.mxu1 }
 0x275   :  { %v1342_v54 = vadd.f32 %v1341_v40, %v1217_v19  ;;  %v1477_v60 = vadd.f32 %v1428_v25, %v1291_v3 }
 0x276   :  { %v1343_v62 = vpop.f32.mrf.mxu0  ;;  %v1430_v33 = vpop.f32.mrf.mxu1 }
 0x277   :  { %v1511_v37 = vadd.f32 %v7196_v31, %v1342_v54  ;;  %v1501_v56 = vadd.f32 %v7196_v31, %v1477_v60  ;;  %v1344_v0 = vadd.f32 %v1343_v62, %v1219_v58  ;;  %v1478_v2 = vadd.f32 %v1430_v33, %v1293_v39 }
 0x278   :  { %v1434_v41 = vpop.f32.mrf.mxu1  ;;  %v1304_v33 = vadd.f32 %v1303_v11, %v7165_v38  ;;  %v1312_v11 = vadd.f32 %v7173_v46, %v7169_v55 }
 0x279   :  { %vm1523_vm15 = vcmp.ge.f32.partialorder %v1511_v37, 0.0  ;;  %v1535_v29 = vmul.f32 0.2, %v1511_v37  ;;  %vm1513_vm0 = vcmp.ge.f32.partialorder %v1501_v56, 0.0  ;;  %v1525_v52 = vmul.f32 0.2, %v1501_v56 }
 0x27a   :  { %v1512_v7 = vadd.f32 %v7198_v17, %v1344_v0  ;;  %v1502_v19 = vadd.f32 %v7198_v17, %v1478_v2  ;;  %v1435_v3 = vpop.f32.mrf.mxu1 }
 0x27b   :  { %v1547_v40 = vsel %vm1523_vm15, %v1511_v37, %v1535_v29  ;;  %v1537_v36 = vsel %vm1513_vm0, %v1501_v56, %v1525_v52 }
 0x27c   :  { %v7204_v47 = vpack.c.bf16 %v1547_v40, %v1547_v40  ;;  %v7206_v25 = vpack.c.bf16 %v1537_v36, %v1537_v36  ;;  %vm1524_vm1 = vcmp.ge.f32.partialorder %v1512_v7, 0.0  ;;  %v1536_v60 = vmul.f32 0.2, %v1512_v7  ;;  %v1438_v58 = vpop.f32.mrf.mxu1 }
 0x27d   :  { %vm1514_vm2 = vcmp.ge.f32.partialorder %v1502_v19, 0.0  ;;  %v1526_v41 = vmul.f32 0.2, %v1502_v19  ;;  %v1479_v62 = vadd.f32 %v1438_v58, %v7167_v50 }
 0x27e   :  { %v1548_v39 = vsel %vm1524_vm1, %v1512_v7, %v1536_v60  ;;  %v1440_v0 = vpop.f32.mrf.mxu1  ;;  %v1314_v60 = vadd.f32 %v7175_v48, %v7171_v44 }
 0x27f   :  { %v7210_v54 = vpack.c.bf16 %v1548_v39, %v1548_v39  ;;  %v1538_v2 = vsel %vm1514_vm2, %v1502_v19, %v1526_v41  ;;  %v1503_v37 = vadd.f32 %v7196_v31, %v1479_v62  ;;  %v1480_v56 = vadd.f32 %v1440_v0, %v1304_v33 }
 0x280   :  { %v7213_v29 = vpack.c.bf16 %v1538_v2, %v1538_v2  ;;  %v1444_v52 = vpop.f32.mrf.mxu1 }
 0x281   :  { %vm1515_vm3 = vcmp.ge.f32.partialorder %v1503_v37, 0.0  ;;  %v1527_v3 = vmul.f32 0.2, %v1503_v37  ;;  %v1504_v40 = vadd.f32 %v7198_v17, %v1480_v56  ;;  %v1322_v56 = vadd.f32 %v7181_v21, %v7177_v42 }
 0x282   :  { %v1445_v38 = vpop.f32.mrf.mxu1  ;;  %3901 = vmatprep.mubr.bf16.mxu0 %v7213_v29 }
 0x283   :  { %v1539_v50 = vsel %vm1515_vm3, %v1503_v37, %v1527_v3  ;;  %vm1516_vm4 = vcmp.ge.f32.partialorder %v1504_v40, 0.0  ;;  %v1528_v7 = vmul.f32 0.2, %v1504_v40 }
 0x284   :  { %v7218_v36 = vpack.c.bf16 %v1539_v50, %v1539_v50  ;;  %v1448_v19 = vpop.f32.mrf.mxu1 }
 0x285   :  { %v1540_v58 = vsel %vm1516_vm4, %v1504_v40, %v1528_v7  ;;  %v1481_v33 = vadd.f32 %v1448_v19, %v1312_v11  ;;  %v1324_v40 = vadd.f32 %v7183_v34, %v7179_v32 }
 0x286   :  { %v7222_v41 = vpack.c.bf16 %v1540_v58, %v1540_v58  ;;  %v1450_v62 = vpop.f32.mrf.mxu1 }
 0x287   :  { %v1505_v39 = vadd.f32 %v7196_v31, %v1481_v33  ;;  %v1482_v0 = vadd.f32 %v1450_v62, %v1314_v60  ;;  %v1332_v62 = vadd.f32 %v7189_v63, %v7185_v23 }
 0x288   :  { %v1454_v2 = vpop.f32.mrf.mxu1 }
 0x289   :  { %vm1517_vm5 = vcmp.ge.f32.partialorder %v1505_v39, 0.0  ;;  %v1529_v55 = vmul.f32 0.2, %v1505_v39  ;;  %v1506_v46 = vadd.f32 %v7198_v17, %v1482_v0  ;;  %v1334_v2 = vadd.f32 %v7191_v15, %v7187_v27 }
 0x28a   :  { %v1455_v37 = vpop.f32.mrf.mxu1 }
 0x28b   :  { %v1541_v52 = vsel %vm1517_vm5, %v1505_v39, %v1529_v55  ;;  %vm1518_vm6 = vcmp.ge.f32.partialorder %v1506_v46, 0.0  ;;  %v1530_v44 = vmul.f32 0.2, %v1506_v46 }
 0x28c   :  { %v7228_v48 = vpack.c.bf16 %v1541_v52, %v1541_v52  ;;  %v1458_v3 = vpop.f32.mrf.mxu1 }
 0x28d   :  { %v1542_v38 = vsel %vm1518_vm6, %v1506_v46, %v1530_v44  ;;  %v1483_v11 = vadd.f32 %v1458_v3, %v1322_v56 }
 0x28e   :  { %v7232_v50 = vpack.c.bf16 %v1542_v38, %v1542_v38  ;;  %v1460_v7 = vpop.f32.mrf.mxu1 }
 0x28f   :  { %v1507_v19 = vadd.f32 %v7196_v31, %v1483_v11  ;;  %v1484_v60 = vadd.f32 %v1460_v7, %v1324_v40 }
 0x290   :  { %v1464_v58 = vpop.f32.mrf.mxu1 }
 0x291   :  { %vm1519_vm7 = vcmp.ge.f32.partialorder %v1507_v19, 0.0  ;;  %v1531_v42 = vmul.f32 0.2, %v1507_v19  ;;  %v1508_v21 = vadd.f32 %v7198_v17, %v1484_v60  ;;  %v4455_v60 = vcombine.low %v5055_v28, %v5065_v30 }
 0x292   :  { %v1465_v33 = vpop.f32.mrf.mxu1 }
 0x293   :  { %v1543_v39 = vsel %vm1519_vm7, %v1507_v19, %v1531_v42  ;;  %vm1520_vm8 = vcmp.ge.f32.partialorder %v1508_v21, 0.0  ;;  %v1532_v32 = vmul.f32 0.2, %v1508_v21  ;;  %v4456_v19 = vcombine.high %v5055_v28, %v5065_v30 }
 0x294   :  { %v7238_v34 = vpack.c.bf16 %v1543_v39, %v1543_v39  ;;  %v1468_v0 = vpop.f32.mrf.mxu1 }
 0x295   :  { %v1544_v55 = vsel %vm1520_vm8, %v1508_v21, %v1532_v32  ;;  %v1485_v46 = vadd.f32 %v1468_v0, %v1332_v62 }
 0x296   :  { %v7242_v37 = vpack.c.bf16 %v1544_v55, %v1544_v55  ;;  %v1470_v56 = vpop.f32.mrf.mxu1 }
 0x297   :  { %v1509_v52 = vadd.f32 %v7196_v31, %v1485_v46  ;;  %v1486_v44 = vadd.f32 %v1470_v56, %v1334_v2  ;;  %v4520_v31 = vcombine.high %v5375_v59, %v5385_v13 }
 0x298   :  { %v1474_v3 = vpop.f32.mrf.mxu1 }
 0x299   :  { %vm1521_vm9 = vcmp.ge.f32.partialorder %v1509_v52, 0.0  ;;  %v1533_v63 = vmul.f32 0.2, %v1509_v52  ;;  %v1510_v23 = vadd.f32 %v7198_v17, %v1486_v44  ;;  %v4519_v17 = vcombine.low %v5375_v59, %v5385_v13 }
 0x29a   :  { %v1475_v40 = vpop.f32.mrf.mxu1 }
 0x29b   :  { %v1545_v38 = vsel %vm1521_vm9, %v1509_v52, %v1533_v63  ;;  %vm1522_vm10 = vcmp.ge.f32.partialorder %v1510_v23, 0.0  ;;  %v1534_v11 = vmul.f32 0.2, %v1510_v23 }
 0x29c   :  { %v7246_v7 = vpack.c.bf16 %v1545_v38, %v1545_v38 }
 0x29d   :  { %v1546_v15 = vsel %vm1522_vm10, %v1510_v23, %v1534_v11 }
 0x29e   :  { %v7248_v27 = vpack.c.bf16 %v1546_v15, %v1546_v15 }
 0x29f   :  { %4873 = dma.done.wait [#allocation3], 49152 }
 0x2a0   :  { %4874 = vsyncadd [#allocation3], 4294918144  ;;  %v4452_v58 = vcombine.high %v5035_v24, %v5045_v26  ;;  %v4516_v42 = vcombine.high %v5355_v51, %v5365_v9  ;;  %3942 = vmatprep.mubr.bf16.mxu1 %v7222_v41  ;;  %3869 = vmatprep.subr.bf16.mxu0 %v4456_v19  ;;  %v4451_v28 = vcombine.low %v5035_v24, %v5045_v26  ;;  %v8800_v39 = vld [vmem:[#allocation56_spill] sm:$0xff]  ;;  %v8803_v55 = vld [vmem:[#allocation105_spill] sm:$0xff] }
 0x2a1   :  { %3910 = vmatprep.subr.bf16.mxu1 %v4520_v31  ;;  %3870 = vmatpush1.bf16.msra.mxu0 %v4455_v60  ;;  %v4515_v13 = vcombine.low %v5355_v51, %v5365_v9  ;;  %v4448_v30 = vcombine.high %v5015_v20, %v5025_v22  ;;  %v4512_v59 = vcombine.high %v5335_v43, %v5345_v5  ;;  %v8804_v46 = vld [vmem:[#allocation103_spill] sm:$0xff]  ;;  %v8805_v3 = vld [vmem:[#allocation50_spill] sm:$0xff]  ;;  %v8806_v63 = vld [vmem:[#allocation48_spill] sm:$0xff] }
 0x2a2   :  { %3911 = vmatpush1.bf16.msra.mxu1 %v4519_v17  ;;  %3871 = vmatprep.subr.bf16.mxu0 %v4452_v58  ;;  %v4447_v21 = vcombine.low %v5015_v20, %v5025_v22  ;;  %v4511_v33 = vcombine.low %v5335_v43, %v5345_v5  ;;  %v4444_v9 = vcombine.high %v4995_v16, %v5005_v18  ;;  %v8807_v40 = vld [vmem:[#allocation101_spill] sm:$0xff]  ;;  %v8808_v38 = vld [vmem:[#allocation99_spill] sm:$0xff]  ;;  %v8809_v31 = vld [vmem:[#allocation46_spill] sm:$0xff] }
 0x2a3   :  { %3912 = vmatprep.subr.bf16.mxu1 %v4516_v42  ;;  %v4508_v24 = vcombine.high %v5315_v35, %v5325_v1  ;;  %v4443_v26 = vcombine.low %v4995_v16, %v5005_v18  ;;  %v4507_v51 = vcombine.low %v5315_v35, %v5325_v1  ;;  %v4440_v5 = vcombine.high %v4975_v12, %v4985_v14  ;;  %v8810_v60 = vld [vmem:[#allocation44_spill] sm:$0xff]  ;;  %v8811_v58 = vld [vmem:[#allocation97_spill] sm:$0xff]  ;;  %v8812_v42 = vld [vmem:[#allocation95_spill] sm:$0xff] }
 0x2a4   :  { %v4504_v20 = vcombine.high %v5295_v57, %v5305_v61  ;;  %v4439_v22 = vcombine.low %v4975_v12, %v4985_v14  ;;  %v4503_v43 = vcombine.low %v5295_v57, %v5305_v61  ;;  %v4436_v1 = vcombine.high %v4955_v8, %v4965_v10  ;;  %v8796_v14 = vld [vmem:[#allocation60_spill] sm:$0xff] }
 0x2a5   :  { %3872 = vmatpush1.bf16.msra.mxu0 %v4451_v28  ;;  %v4500_v16 = vcombine.high %v5275_v49, %v5285_v53  ;;  %v4435_v18 = vcombine.low %v4955_v8, %v4965_v10  ;;  %v4499_v35 = vcombine.low %v5275_v49, %v5285_v53  ;;  %v4432_v12 = vcombine.high %v4935_v4, %v4945_v6  ;;  %v8797_v8 = vld [vmem:[#allocation8_spill] sm:$0xff]  ;;  %v8798_v10 = vld [vmem:[#allocation6_spill] sm:$0xff] }
 0x2a6   :  { %3913 = vmatpush1.bf16.msra.mxu1 %v4515_v13  ;;  %3873 = vmatprep.subr.bf16.mxu0 %v4448_v30  ;;  %v4496_v57 = vcombine.high %v8796_v14, %v5265_v45  ;;  %v4431_v61 = vcombine.low %v4935_v4, %v4945_v6  ;;  %v4495_v62 = vcombine.low %v8796_v14, %v5265_v45  ;;  %v8799_v53 = vld [vmem:[#allocation58_spill] sm:$0xff]  ;;  %v8802_v6 = vld [vmem:[#allocation52_spill] sm:$0xff] }
 0x2a7   :  { %3914 = vmatprep.subr.bf16.mxu1 %v4512_v59  ;;  %v4428_v49 = vcombine.high %v8798_v10, %v8797_v8  ;;  %v4492_v32 = vcombine.high %v8800_v39, %v8799_v53  ;;  %v4427_v0 = vcombine.low %v8798_v10, %v8797_v8  ;;  %v4491_v2 = vcombine.low %v8800_v39, %v8799_v53  ;;  %v8801_v4 = vld [vmem:[#allocation54_spill] sm:$0xff]  ;;  %v8824_v8 = vld [vmem:[#allocation83_spill] sm:$0xff] }
 0x2a8   :  { %v4488_v45 = vcombine.high %v8802_v6, %v8801_v4  ;;  %v4552_v56 = vcombine.high %v8804_v46, %v8803_v55  ;;  %v4487_v52 = vcombine.low %v8802_v6, %v8801_v4  ;;  %v4551_v44 = vcombine.low %v8804_v46, %v8803_v55  ;;  %v8813_v59 = vld [vmem:[#allocation42_spill] sm:$0xff]  ;;  %v8828_v4 = vld [vmem:[#allocation79_spill] sm:$0xff] }
 0x2a9   :  { %3874 = vmatpush1.bf16.msra.mxu0 %v4447_v21  ;;  %v4484_v23 = vcombine.high %v8806_v63, %v8805_v3  ;;  %v4548_v11 = vcombine.high %v8808_v38, %v8807_v40  ;;  %v4483_v15 = vcombine.low %v8806_v63, %v8805_v3  ;;  %v4547_v19 = vcombine.low %v8808_v38, %v8807_v40  ;;  %v8814_v21 = vld [vmem:[#allocation40_spill] sm:$0xff]  ;;  %v8821_v14 = vld [vmem:[#allocation34_spill] sm:$0xff]  ;;  %v8832_v3 = vld [vmem:[#allocation75_spill] sm:$0xff] }
 0x2aa   :  { %3915 = vmatpush1.bf16.msra.mxu1 %v4511_v33  ;;  %3875 = vmatprep.subr.bf16.mxu0 %v4444_v9  ;;  %v4480_v17 = vcombine.high %v8810_v60, %v8809_v31  ;;  %v4544_v28 = vcombine.high %v8812_v42, %v8811_v58  ;;  %v4479_v13 = vcombine.low %v8810_v60, %v8809_v31  ;;  %v8815_v9 = vld [vmem:[#allocation93_spill] sm:$0xff]  ;;  %v8825_v39 = vld [vmem:[#allocation30_spill] sm:$0xff]  ;;  %v8836_v31 = vld [vmem:[#allocation199_spill] sm:$0xff] }
 0x2ab   :  { %3916 = vmatprep.subr.bf16.mxu1 %v4508_v24  ;;  %v4543_v30 = vcombine.low %v8812_v42, %v8811_v58  ;;  %v4476_v33 = vcombine.high %v8814_v21, %v8813_v59  ;;  %v8816_v24 = vld [vmem:[#allocation91_spill] sm:$0xff]  ;;  %v8829_v46 = vld [vmem:[#allocation26_spill] sm:$0xff]  ;;  %v8833_v38 = vld [vmem:[#allocation137_spill] sm:$0xff] }
 0x2ac   :  { %v8837_v42 = vld [vmem:[#allocation133_spill] sm:$0xff] }
 0x2ad   :  { %3876 = vmatpush1.bf16.msra.mxu0 %v4443_v26  ;;  %v4540_v26 = vcombine.high %v8816_v24, %v8815_v9 }
 0x2ae   :  { %3917 = vmatpush1.bf16.msra.mxu1 %v4507_v51  ;;  %3877 = vmatprep.subr.bf16.mxu0 %v4440_v5  ;;  %v4475_v51 = vcombine.low %v8814_v21, %v8813_v59  ;;  %v4539_v5 = vcombine.low %v8816_v24, %v8815_v9  ;;  %v8840_v59 = vld [vmem:[#allocation195_spill] sm:$0xff]  ;;  %v8841_v24 = vld [vmem:[#allocation129_spill] sm:$0xff] }
 0x2af   :  { %3918 = vmatprep.subr.bf16.mxu1 %v4504_v20  ;;  %v8817_v20 = vld [vmem:[#allocation38_spill] sm:$0xff] }
 0x2b1   :  { %3878 = vmatpush1.bf16.msra.mxu0 %v4439_v22  ;;  %v8818_v22 = vld [vmem:[#allocation36_spill] sm:$0xff] }
 0x2b2   :  { %3919 = vmatpush1.bf16.msra.mxu1 %v4503_v43  ;;  %3879 = vmatprep.subr.bf16.mxu0 %v4436_v1  ;;  %v4472_v43 = vcombine.high %v8818_v22, %v8817_v20  ;;  %v8819_v1 = vld [vmem:[#allocation89_spill] sm:$0xff] }
 0x2b3   :  { %3920 = vmatprep.subr.bf16.mxu1 %v4500_v16  ;;  %v8820_v16 = vld [vmem:[#allocation87_spill] sm:$0xff] }
 0x2b5   :  { %3880 = vmatpush1.bf16.msra.mxu0 %v4435_v18  ;;  %v4536_v18 = vcombine.high %v8820_v16, %v8819_v1 }
 0x2b6   :  { %3921 = vmatpush1.bf16.msra.mxu1 %v4499_v35  ;;  %3881 = vmatprep.subr.bf16.mxu0 %v4432_v12  ;;  %v4471_v35 = vcombine.low %v8818_v22, %v8817_v20  ;;  %v4535_v12 = vcombine.low %v8820_v16, %v8819_v1  ;;  %v8844_v20 = vld [vmem:[#allocation191_spill] sm:$0xff]  ;;  %v8845_v16 = vld [vmem:[#allocation125_spill] sm:$0xff] }
 0x2b7   :  { %3922 = vmatprep.subr.bf16.mxu1 %v4496_v57  ;;  %v8822_v57 = vld [vmem:[#allocation32_spill] sm:$0xff] }
 0x2b9   :  { %3882 = vmatpush1.bf16.msra.mxu0 %v4431_v61  ;;  %v4468_v61 = vcombine.high %v8822_v57, %v8821_v14 }
 0x2ba   :  { %3923 = vmatpush1.bf16.msra.mxu1 %v4495_v62  ;;  %3883 = vmatprep.subr.bf16.mxu0 %v4428_v49  ;;  %v8823_v62 = vld [vmem:[#allocation85_spill] sm:$0xff]  ;;  %v4467_v49 = vcombine.low %v8822_v57, %v8821_v14  ;;  %v8848_v14 = vld [vmem:[#allocation187_spill] sm:$0xff] }
 0x2bb   :  { %3924 = vmatprep.subr.bf16.mxu1 %v4492_v32  ;;  %v4532_v10 = vcombine.high %v8824_v8, %v8823_v62  ;;  %v4531_v53 = vcombine.low %v8824_v8, %v8823_v62  ;;  %v8826_v32 = vld [vmem:[#allocation28_spill] sm:$0xff]  ;;  %v8849_v8 = vld [vmem:[#allocation121_spill] sm:$0xff] }
 0x2bd   :  { %3884 = vmatpush1.bf16.msra.mxu0 %v4427_v0  ;;  %v4464_v0 = vcombine.high %v8826_v32, %v8825_v39 }
 0x2be   :  { %3925 = vmatpush1.bf16.msra.mxu1 %v4491_v2  ;;  %3885 = vmatprep.subr.bf16.mxu0 %v4488_v45  ;;  %v8827_v2 = vld [vmem:[#allocation81_spill] sm:$0xff]  ;;  %v4463_v45 = vcombine.low %v8826_v32, %v8825_v39  ;;  %v8852_v39 = vld [vmem:[#allocation183_spill] sm:$0xff] }
 0x2bf   :  { %3926 = vmatprep.subr.bf16.mxu1 %v4552_v56  ;;  %v4528_v6 = vcombine.high %v8828_v4, %v8827_v2  ;;  %v4527_v55 = vcombine.low %v8828_v4, %v8827_v2  ;;  %v8830_v56 = vld [vmem:[#allocation24_spill] sm:$0xff]  ;;  %v8853_v4 = vld [vmem:[#allocation117_spill] sm:$0xff] }
 0x2c1   :  { %3886 = vmatpush2.bf16.msra.mxu0 %v4487_v52  ;;  %v4460_v52 = vcombine.high %v8830_v56, %v8829_v46 }
 0x2c2   :  { %3927 = vmatpush2.bf16.msra.mxu1 %v4551_v44  ;;  %3887 = vmatprep.subr.bf16.mxu0 %v4484_v23  ;;  %v8831_v44 = vld [vmem:[#allocation77_spill] sm:$0xff]  ;;  %v4459_v23 = vcombine.low %v8830_v56, %v8829_v46  ;;  %v8856_v46 = vld [vmem:[#allocation179_spill] sm:$0xff] }
 0x2c3   :  { %3928 = vmatprep.subr.bf16.mxu1 %v4548_v11  ;;  %v4524_v63 = vcombine.high %v8832_v3, %v8831_v44  ;;  %v4523_v40 = vcombine.low %v8832_v3, %v8831_v44  ;;  %v8834_v11 = vld [vmem:[#allocation135_spill] sm:$0xff]  ;;  %v8857_v3 = vld [vmem:[#allocation113_spill] sm:$0xff] }
 0x2c5   :  { %3888 = vmatpush2.bf16.msra.mxu0 %v4483_v15  ;;  %v4584_v15 = vcombine.high %v8834_v11, %v8833_v38 }
 0x2c6   :  { %3929 = vmatpush2.bf16.msra.mxu1 %v4547_v19  ;;  %3889 = vmatprep.subr.bf16.mxu0 %v4480_v17  ;;  %v8835_v19 = vld [vmem:[#allocation201_spill] sm:$0xff]  ;;  %v4583_v17 = vcombine.low %v8834_v11, %v8833_v38  ;;  %v8860_v38 = vld [vmem:[#allocation175_spill] sm:$0xff] }
 0x2c7   :  { %3930 = vmatprep.subr.bf16.mxu1 %v4544_v28  ;;  %v4648_v60 = vcombine.high %v8836_v31, %v8835_v19  ;;  %v4647_v58 = vcombine.low %v8836_v31, %v8835_v19  ;;  %v8838_v28 = vld [vmem:[#allocation131_spill] sm:$0xff]  ;;  %v8861_v31 = vld [vmem:[#allocation109_spill] sm:$0xff] }
 0x2c9   :  { %3890 = vmatpush2.bf16.msra.mxu0 %v4479_v13  ;;  %v4580_v13 = vcombine.high %v8838_v28, %v8837_v42 }
 0x2ca   :  { %3931 = vmatpush2.bf16.msra.mxu1 %v4543_v30  ;;  %3891 = vmatprep.subr.bf16.mxu0 %v4476_v33  ;;  %v8839_v30 = vld [vmem:[#allocation197_spill] sm:$0xff]  ;;  %v4579_v33 = vcombine.low %v8838_v28, %v8837_v42  ;;  %v8864_v42 = vld [vmem:[#allocation171_spill] sm:$0xff] }
 0x2cb   :  { %3932 = vmatprep.subr.bf16.mxu1 %v4540_v26  ;;  %v4644_v21 = vcombine.high %v8840_v59, %v8839_v30  ;;  %v4643_v9 = vcombine.low %v8840_v59, %v8839_v30  ;;  %v8842_v26 = vld [vmem:[#allocation127_spill] sm:$0xff]  ;;  %v8865_v59 = vld [vmem:[#allocation169_spill] sm:$0xff] }
 0x2cd   :  { %3892 = vmatpush2.bf16.msra.mxu0 %v4475_v51  ;;  %v4576_v51 = vcombine.high %v8842_v26, %v8841_v24 }
 0x2ce   :  { %3933 = vmatpush2.bf16.msra.mxu1 %v4539_v5  ;;  %3893 = vmatprep.subr.bf16.mxu0 %v4472_v43  ;;  %v8843_v5 = vld [vmem:[#allocation193_spill] sm:$0xff]  ;;  %v4575_v43 = vcombine.low %v8842_v26, %v8841_v24  ;;  %v8868_v24 = vld [vmem:[#allocation231_spill] sm:$0xff] }
 0x2cf   :  { %3934 = vmatprep.subr.bf16.mxu1 %v4536_v18  ;;  %v4640_v22 = vcombine.high %v8844_v20, %v8843_v5  ;;  %v4639_v1 = vcombine.low %v8844_v20, %v8843_v5  ;;  %v8846_v18 = vld [vmem:[#allocation123_spill] sm:$0xff]  ;;  %v8869_v20 = vld [vmem:[#allocation165_spill] sm:$0xff] }
 0x2d1   :  { %3894 = vmatpush2.bf16.msra.mxu0 %v4471_v35  ;;  %v4572_v35 = vcombine.high %v8846_v18, %v8845_v16 }
 0x2d2   :  { %3935 = vmatpush2.bf16.msra.mxu1 %v4535_v12  ;;  %3895 = vmatprep.subr.bf16.mxu0 %v4468_v61  ;;  %v8847_v12 = vld [vmem:[#allocation189_spill] sm:$0xff]  ;;  %v4571_v61 = vcombine.low %v8846_v18, %v8845_v16  ;;  %v8872_v16 = vld [vmem:[#allocation227_spill] sm:$0xff] }
 0x2d3   :  { %3936 = vmatprep.subr.bf16.mxu1 %v4532_v10  ;;  %v4636_v57 = vcombine.high %v8848_v14, %v8847_v12  ;;  %v4635_v62 = vcombine.low %v8848_v14, %v8847_v12  ;;  %v8850_v10 = vld [vmem:[#allocation119_spill] sm:$0xff]  ;;  %v8873_v14 = vld [vmem:[#allocation161_spill] sm:$0xff] }
 0x2d5   :  { %3896 = vmatpush2.bf16.msra.mxu0 %v4467_v49  ;;  %v4568_v49 = vcombine.high %v8850_v10, %v8849_v8 }
 0x2d6   :  { %3937 = vmatpush2.bf16.msra.mxu1 %v4531_v53  ;;  %3897 = vmatprep.subr.bf16.mxu0 %v4464_v0  ;;  %v8851_v53 = vld [vmem:[#allocation185_spill] sm:$0xff]  ;;  %v4567_v0 = vcombine.low %v8850_v10, %v8849_v8  ;;  %v8876_v8 = vld [vmem:[#allocation223_spill] sm:$0xff] }
 0x2d7   :  { %3938 = vmatprep.subr.bf16.mxu1 %v4528_v6  ;;  %v4632_v32 = vcombine.high %v8852_v39, %v8851_v53  ;;  %v4631_v2 = vcombine.low %v8852_v39, %v8851_v53  ;;  %v8854_v6 = vld [vmem:[#allocation115_spill] sm:$0xff]  ;;  %v8877_v39 = vld [vmem:[#allocation157_spill] sm:$0xff] }
 0x2d9   :  { %3898 = vmatpush2.bf16.msra.mxu0 %v4463_v45  ;;  %v4564_v45 = vcombine.high %v8854_v6, %v8853_v4 }
 0x2da   :  { %3939 = vmatpush2.bf16.msra.mxu1 %v4527_v55  ;;  %3899 = vmatprep.subr.bf16.mxu0 %v4460_v52  ;;  %v8855_v55 = vld [vmem:[#allocation181_spill] sm:$0xff]  ;;  %v4563_v52 = vcombine.low %v8854_v6, %v8853_v4  ;;  %v8880_v4 = vld [vmem:[#allocation219_spill] sm:$0xff] }
 0x2db   :  { %3940 = vmatprep.subr.bf16.mxu1 %v4524_v63  ;;  %v4628_v56 = vcombine.high %v8856_v46, %v8855_v55  ;;  %v4627_v44 = vcombine.low %v8856_v46, %v8855_v55  ;;  %v8858_v63 = vld [vmem:[#allocation111_spill] sm:$0xff]  ;;  %v8881_v46 = vld [vmem:[#allocation153_spill] sm:$0xff] }
 0x2dd   :  { %3900 = vmatpush2.bf16.msra.mxu0 %v4459_v23  ;;  %v4560_v23 = vcombine.high %v8858_v63, %v8857_v3 }
 0x2de   :  { %3941 = vmatpush2.bf16.msra.mxu1 %v4523_v40  ;;  %3951 = vmatprep.subr.bf16.mxu0 %v4584_v15  ;;  %v8859_v40 = vld [vmem:[#allocation177_spill] sm:$0xff]  ;;  %v4559_v15 = vcombine.low %v8858_v63, %v8857_v3  ;;  %v8884_v3 = vld [vmem:[#allocation215_spill] sm:$0xff] }
 0x2df   :  { %3992 = vmatprep.subr.bf16.mxu1 %v4648_v60  ;;  %v4624_v11 = vcombine.high %v8860_v38, %v8859_v40  ;;  %v4623_v19 = vcombine.low %v8860_v38, %v8859_v40  ;;  %v8862_v60 = vld [vmem:[#allocation107_spill] sm:$0xff]  ;;  %v8885_v38 = vld [vmem:[#allocation149_spill] sm:$0xff] }
 0x2e0   :  { %3902 = vmatmul.mubr.bf16.vlgmr.msra.gmra.mxu0 %v7206_v25 }
 0x2e1   :  { %3943 = vmatmul.mubr.bf16.vlgmr.msra.gmra.mxu1 %v7218_v36  ;;  %3952 = vmatpush1.bf16.msra.mxu0 %v4583_v17  ;;  %v4556_v17 = vcombine.high %v8862_v60, %v8861_v31 }
 0x2e2   :  { %3993 = vmatpush1.bf16.msra.mxu1 %v4647_v58  ;;  %3953 = vmatprep.subr.bf16.mxu0 %v4580_v13  ;;  %v8863_v58 = vld [vmem:[#allocation173_spill] sm:$0xff]  ;;  %v4555_v13 = vcombine.low %v8862_v60, %v8861_v31  ;;  %v8888_v31 = vld [vmem:[#allocation211_spill] sm:$0xff] }
 0x2e3   :  { %3994 = vmatprep.subr.bf16.mxu1 %v4644_v21  ;;  %3983 = vmatprep.mubr.bf16.mxu0 %v7232_v50  ;;  %v4620_v28 = vcombine.high %v8864_v42, %v8863_v58  ;;  %v4619_v30 = vcombine.low %v8864_v42, %v8863_v58  ;;  %v8866_v21 = vld [vmem:[#allocation167_spill] sm:$0xff]  ;;  %v8889_v42 = vld [vmem:[#allocation145_spill] sm:$0xff] }
 0x2e4   :  { %4024 = vmatprep.mubr.bf16.mxu1 %v7242_v37 }
 0x2e5   :  { %3954 = vmatpush1.bf16.msra.mxu0 %v4579_v33  ;;  %v4616_v33 = vcombine.high %v8866_v21, %v8865_v59 }
 0x2e6   :  { %3995 = vmatpush1.bf16.msra.mxu1 %v4643_v9  ;;  %3955 = vmatprep.subr.bf16.mxu0 %v4576_v51  ;;  %v8867_v9 = vld [vmem:[#allocation233_spill] sm:$0xff]  ;;  %v4615_v51 = vcombine.low %v8866_v21, %v8865_v59  ;;  %v8892_v59 = vld [vmem:[#allocation207_spill] sm:$0xff] }
 0x2e7   :  { %3996 = vmatprep.subr.bf16.mxu1 %v4640_v22  ;;  %v4680_v26 = vcombine.high %v8868_v24, %v8867_v9  ;;  %v4679_v5 = vcombine.low %v8868_v24, %v8867_v9  ;;  %v8870_v22 = vld [vmem:[#allocation163_spill] sm:$0xff]  ;;  %v8893_v24 = vld [vmem:[#allocation141_spill] sm:$0xff] }
 0x2e9   :  { %3956 = vmatpush1.bf16.msra.mxu0 %v4575_v43  ;;  %v4612_v43 = vcombine.high %v8870_v22, %v8869_v20 }
 0x2ea   :  { %3997 = vmatpush1.bf16.msra.mxu1 %v4639_v1  ;;  %3957 = vmatprep.subr.bf16.mxu0 %v4572_v35  ;;  %v8871_v1 = vld [vmem:[#allocation229_spill] sm:$0xff]  ;;  %v4611_v35 = vcombine.low %v8870_v22, %v8869_v20  ;;  %v8896_v20 = vld [vmem:[#allocation203_spill] sm:$0xff] }
 0x2eb   :  { %3998 = vmatprep.subr.bf16.mxu1 %v4636_v57  ;;  %v4676_v18 = vcombine.high %v8872_v16, %v8871_v1  ;;  %v4675_v12 = vcombine.low %v8872_v16, %v8871_v1  ;;  %v8874_v57 = vld [vmem:[#allocation159_spill] sm:$0xff]  ;;  %v8897_v16 = vld [vmem:[#allocation265_spill] sm:$0xff] }
 0x2ed   :  { %3958 = vmatpush1.bf16.msra.mxu0 %v4571_v61  ;;  %v4608_v61 = vcombine.high %v8874_v57, %v8873_v14 }
 0x2ee   :  { %3999 = vmatpush1.bf16.msra.mxu1 %v4635_v62  ;;  %3959 = vmatprep.subr.bf16.mxu0 %v4568_v49  ;;  %v8875_v62 = vld [vmem:[#allocation225_spill] sm:$0xff]  ;;  %v4607_v49 = vcombine.low %v8874_v57, %v8873_v14  ;;  %v8900_v14 = vld [vmem:[#allocation327_spill] sm:$0xff] }
 0x2ef   :  { %4000 = vmatprep.subr.bf16.mxu1 %v4632_v32  ;;  %v4672_v10 = vcombine.high %v8876_v8, %v8875_v62  ;;  %v4671_v53 = vcombine.low %v8876_v8, %v8875_v62  ;;  %v8878_v32 = vld [vmem:[#allocation155_spill] sm:$0xff]  ;;  %v8901_v8 = vld [vmem:[#allocation261_spill] sm:$0xff] }
 0x2f1   :  { %3960 = vmatpush1.bf16.msra.mxu0 %v4567_v0  ;;  %v4604_v0 = vcombine.high %v8878_v32, %v8877_v39 }
 0x2f2   :  { %4001 = vmatpush1.bf16.msra.mxu1 %v4631_v2  ;;  %3961 = vmatprep.subr.bf16.mxu0 %v4564_v45  ;;  %v8879_v2 = vld [vmem:[#allocation221_spill] sm:$0xff]  ;;  %v4603_v45 = vcombine.low %v8878_v32, %v8877_v39  ;;  %v8904_v39 = vld [vmem:[#allocation323_spill] sm:$0xff] }
 0x2f3   :  { %4002 = vmatprep.subr.bf16.mxu1 %v4628_v56  ;;  %v4668_v6 = vcombine.high %v8880_v4, %v8879_v2  ;;  %v4667_v55 = vcombine.low %v8880_v4, %v8879_v2  ;;  %v8882_v56 = vld [vmem:[#allocation151_spill] sm:$0xff]  ;;  %v8905_v4 = vld [vmem:[#allocation257_spill] sm:$0xff] }
 0x2f5   :  { %3962 = vmatpush1.bf16.msra.mxu0 %v4563_v52  ;;  %v4600_v52 = vcombine.high %v8882_v56, %v8881_v46 }
 0x2f6   :  { %4003 = vmatpush1.bf16.msra.mxu1 %v4627_v44  ;;  %3963 = vmatprep.subr.bf16.mxu0 %v4560_v23  ;;  %v8883_v44 = vld [vmem:[#allocation217_spill] sm:$0xff]  ;;  %v4599_v23 = vcombine.low %v8882_v56, %v8881_v46  ;;  %v8908_v46 = vld [vmem:[#allocation319_spill] sm:$0xff] }
 0x2f7   :  { %4004 = vmatprep.subr.bf16.mxu1 %v4624_v11  ;;  %v4664_v63 = vcombine.high %v8884_v3, %v8883_v44  ;;  %v4663_v40 = vcombine.low %v8884_v3, %v8883_v44  ;;  %v8886_v11 = vld [vmem:[#allocation147_spill] sm:$0xff]  ;;  %v8909_v3 = vld [vmem:[#allocation253_spill] sm:$0xff] }
 0x2f9   :  { %3964 = vmatpush1.bf16.msra.mxu0 %v4559_v15  ;;  %v4596_v15 = vcombine.high %v8886_v11, %v8885_v38 }
 0x2fa   :  { %4005 = vmatpush1.bf16.msra.mxu1 %v4623_v19  ;;  %3965 = vmatprep.subr.bf16.mxu0 %v4556_v17  ;;  %v8887_v19 = vld [vmem:[#allocation213_spill] sm:$0xff]  ;;  %v4595_v17 = vcombine.low %v8886_v11, %v8885_v38  ;;  %v8912_v38 = vld [vmem:[#allocation315_spill] sm:$0xff] }
 0x2fb   :  { %4006 = vmatprep.subr.bf16.mxu1 %v4620_v28  ;;  %v4660_v60 = vcombine.high %v8888_v31, %v8887_v19  ;;  %v4659_v58 = vcombine.low %v8888_v31, %v8887_v19  ;;  %v8890_v28 = vld [vmem:[#allocation143_spill] sm:$0xff]  ;;  %v8913_v31 = vld [vmem:[#allocation249_spill] sm:$0xff] }
 0x2fd   :  { %3966 = vmatpush1.bf16.msra.mxu0 %v4555_v13  ;;  %v4592_v13 = vcombine.high %v8890_v28, %v8889_v42 }
 0x2fe   :  { %4007 = vmatpush1.bf16.msra.mxu1 %v4619_v30  ;;  %3967 = vmatprep.subr.bf16.mxu0 %v4616_v33  ;;  %v8891_v30 = vld [vmem:[#allocation209_spill] sm:$0xff]  ;;  %v4591_v33 = vcombine.low %v8890_v28, %v8889_v42  ;;  %v8916_v42 = vld [vmem:[#allocation311_spill] sm:$0xff] }
 0x2ff   :  { %4008 = vmatprep.subr.bf16.mxu1 %v4680_v26  ;;  %v4656_v21 = vcombine.high %v8892_v59, %v8891_v30  ;;  %v4655_v9 = vcombine.low %v8892_v59, %v8891_v30  ;;  %v8894_v26 = vld [vmem:[#allocation139_spill] sm:$0xff]  ;;  %v8917_v59 = vld [vmem:[#allocation245_spill] sm:$0xff] }
 0x301   :  { %3968 = vmatpush2.bf16.msra.mxu0 %v4615_v51  ;;  %v4588_v51 = vcombine.high %v8894_v26, %v8893_v24 }
 0x302   :  { %4009 = vmatpush2.bf16.msra.mxu1 %v4679_v5  ;;  %3969 = vmatprep.subr.bf16.mxu0 %v4612_v43  ;;  %v8895_v5 = vld [vmem:[#allocation205_spill] sm:$0xff]  ;;  %v4587_v43 = vcombine.low %v8894_v26, %v8893_v24  ;;  %v8920_v24 = vld [vmem:[#allocation307_spill] sm:$0xff] }
 0x303   :  { %4010 = vmatprep.subr.bf16.mxu1 %v4676_v18  ;;  %v4652_v22 = vcombine.high %v8896_v20, %v8895_v5  ;;  %v4651_v1 = vcombine.low %v8896_v20, %v8895_v5  ;;  %v8898_v18 = vld [vmem:[#allocation263_spill] sm:$0xff]  ;;  %v8921_v20 = vld [vmem:[#allocation241_spill] sm:$0xff] }
 0x305   :  { %3970 = vmatpush2.bf16.msra.mxu0 %v4611_v35  ;;  %v4712_v35 = vcombine.high %v8898_v18, %v8897_v16 }
 0x306   :  { %4011 = vmatpush2.bf16.msra.mxu1 %v4675_v12  ;;  %3971 = vmatprep.subr.bf16.mxu0 %v4608_v61  ;;  %v8899_v12 = vld [vmem:[#allocation329_spill] sm:$0xff]  ;;  %v4711_v61 = vcombine.low %v8898_v18, %v8897_v16  ;;  %v8924_v16 = vld [vmem:[#allocation303_spill] sm:$0xff] }
 0x307   :  { %4012 = vmatprep.subr.bf16.mxu1 %v4672_v10  ;;  %v4776_v57 = vcombine.high %v8900_v14, %v8899_v12  ;;  %v4775_v62 = vcombine.low %v8900_v14, %v8899_v12  ;;  %v8902_v10 = vld [vmem:[#allocation259_spill] sm:$0xff]  ;;  %v8925_v14 = vld [vmem:[#allocation237_spill] sm:$0xff] }
 0x309   :  { %3972 = vmatpush2.bf16.msra.mxu0 %v4607_v49  ;;  %v4708_v49 = vcombine.high %v8902_v10, %v8901_v8 }
 0x30a   :  { %4013 = vmatpush2.bf16.msra.mxu1 %v4671_v53  ;;  %3973 = vmatprep.subr.bf16.mxu0 %v4604_v0  ;;  %v8903_v53 = vld [vmem:[#allocation325_spill] sm:$0xff]  ;;  %v4707_v0 = vcombine.low %v8902_v10, %v8901_v8  ;;  %v8928_v8 = vld [vmem:[#allocation299_spill] sm:$0xff] }
 0x30b   :  { %4014 = vmatprep.subr.bf16.mxu1 %v4668_v6  ;;  %v4772_v32 = vcombine.high %v8904_v39, %v8903_v53  ;;  %v4771_v2 = vcombine.low %v8904_v39, %v8903_v53  ;;  %v8906_v6 = vld [vmem:[#allocation255_spill] sm:$0xff]  ;;  %v8929_v39 = vld [vmem:[#allocation297_spill] sm:$0xff] }
 0x30d   :  { %3974 = vmatpush2.bf16.msra.mxu0 %v4603_v45  ;;  %v4704_v45 = vcombine.high %v8906_v6, %v8905_v4 }
 0x30e   :  { %4015 = vmatpush2.bf16.msra.mxu1 %v4667_v55  ;;  %3975 = vmatprep.subr.bf16.mxu0 %v4600_v52  ;;  %v8907_v55 = vld [vmem:[#allocation321_spill] sm:$0xff]  ;;  %v4703_v52 = vcombine.low %v8906_v6, %v8905_v4  ;;  %v8932_v4 = vld [vmem:[#allocation359_spill] sm:$0xff] }
 0x30f   :  { %4016 = vmatprep.subr.bf16.mxu1 %v4664_v63  ;;  %v4768_v56 = vcombine.high %v8908_v46, %v8907_v55  ;;  %v4767_v44 = vcombine.low %v8908_v46, %v8907_v55  ;;  %v8910_v63 = vld [vmem:[#allocation251_spill] sm:$0xff]  ;;  %v8933_v46 = vld [vmem:[#allocation293_spill] sm:$0xff] }
 0x311   :  { %3976 = vmatpush2.bf16.msra.mxu0 %v4599_v23  ;;  %v4700_v23 = vcombine.high %v8910_v63, %v8909_v3 }
 0x312   :  { %4017 = vmatpush2.bf16.msra.mxu1 %v4663_v40  ;;  %3977 = vmatprep.subr.bf16.mxu0 %v4596_v15  ;;  %v8911_v40 = vld [vmem:[#allocation317_spill] sm:$0xff]  ;;  %v4699_v15 = vcombine.low %v8910_v63, %v8909_v3  ;;  %v8936_v3 = vld [vmem:[#allocation355_spill] sm:$0xff] }
 0x313   :  { %4018 = vmatprep.subr.bf16.mxu1 %v4660_v60  ;;  %v4764_v11 = vcombine.high %v8912_v38, %v8911_v40  ;;  %v4763_v19 = vcombine.low %v8912_v38, %v8911_v40  ;;  %v8914_v60 = vld [vmem:[#allocation247_spill] sm:$0xff]  ;;  %v8937_v38 = vld [vmem:[#allocation289_spill] sm:$0xff] }
 0x315   :  { %3978 = vmatpush2.bf16.msra.mxu0 %v4595_v17  ;;  %v4696_v17 = vcombine.high %v8914_v60, %v8913_v31 }
 0x316   :  { %4019 = vmatpush2.bf16.msra.mxu1 %v4659_v58  ;;  %3979 = vmatprep.subr.bf16.mxu0 %v4592_v13  ;;  %v8915_v58 = vld [vmem:[#allocation313_spill] sm:$0xff]  ;;  %v4695_v13 = vcombine.low %v8914_v60, %v8913_v31  ;;  %v8940_v31 = vld [vmem:[#allocation351_spill] sm:$0xff] }
 0x317   :  { %4020 = vmatprep.subr.bf16.mxu1 %v4656_v21  ;;  %v4760_v28 = vcombine.high %v8916_v42, %v8915_v58  ;;  %v4759_v30 = vcombine.low %v8916_v42, %v8915_v58  ;;  %v8918_v21 = vld [vmem:[#allocation243_spill] sm:$0xff]  ;;  %v8941_v42 = vld [vmem:[#allocation285_spill] sm:$0xff] }
 0x319   :  { %3980 = vmatpush2.bf16.msra.mxu0 %v4591_v33  ;;  %v4692_v33 = vcombine.high %v8918_v21, %v8917_v59 }
 0x31a   :  { %4021 = vmatpush2.bf16.msra.mxu1 %v4655_v9  ;;  %3981 = vmatprep.subr.bf16.mxu0 %v4588_v51  ;;  %v8919_v9 = vld [vmem:[#allocation309_spill] sm:$0xff]  ;;  %v4691_v51 = vcombine.low %v8918_v21, %v8917_v59  ;;  %v8944_v59 = vld [vmem:[#allocation347_spill] sm:$0xff] }
 0x31b   :  { %4022 = vmatprep.subr.bf16.mxu1 %v4652_v22  ;;  %v4756_v26 = vcombine.high %v8920_v24, %v8919_v9  ;;  %v4755_v5 = vcombine.low %v8920_v24, %v8919_v9  ;;  %v8922_v22 = vld [vmem:[#allocation239_spill] sm:$0xff]  ;;  %v8945_v24 = vld [vmem:[#allocation281_spill] sm:$0xff] }
 0x31d   :  { %3982 = vmatpush2.bf16.msra.mxu0 %v4587_v43  ;;  %v4688_v43 = vcombine.high %v8922_v22, %v8921_v20 }
 0x31e   :  { %4023 = vmatpush2.bf16.msra.mxu1 %v4651_v1  ;;  %4033 = vmatprep.subr.bf16.mxu0 %v4712_v35  ;;  %v8923_v1 = vld [vmem:[#allocation305_spill] sm:$0xff]  ;;  %v4687_v35 = vcombine.low %v8922_v22, %v8921_v20  ;;  %v8948_v20 = vld [vmem:[#allocation343_spill] sm:$0xff] }
 0x31f   :  { %4074 = vmatprep.subr.bf16.mxu1 %v4776_v57  ;;  %v4752_v18 = vcombine.high %v8924_v16, %v8923_v1  ;;  %v4751_v12 = vcombine.low %v8924_v16, %v8923_v1  ;;  %v8926_v57 = vld [vmem:[#allocation235_spill] sm:$0xff]  ;;  %v8949_v16 = vld [vmem:[#allocation277_spill] sm:$0xff] }
 0x320   :  { %3984 = vmatmul.mubr.bf16.vlgmr.msra.gmra.mxu0 %v7228_v48 }
 0x321   :  { %4025 = vmatmul.mubr.bf16.vlgmr.msra.gmra.mxu1 %v7238_v34  ;;  %4034 = vmatpush1.bf16.msra.mxu0 %v4711_v61  ;;  %v4684_v61 = vcombine.high %v8926_v57, %v8925_v14 }
 0x322   :  { %4075 = vmatpush1.bf16.msra.mxu1 %v4775_v62  ;;  %4035 = vmatprep.subr.bf16.mxu0 %v4708_v49  ;;  %v8927_v62 = vld [vmem:[#allocation301_spill] sm:$0xff]  ;;  %v4683_v49 = vcombine.low %v8926_v57, %v8925_v14  ;;  %v8952_v14 = vld [vmem:[#allocation339_spill] sm:$0xff] }
 0x323   :  { %4076 = vmatprep.subr.bf16.mxu1 %v4772_v32  ;;  %4065 = vmatprep.mubr.bf16.mxu0 %v7248_v27  ;;  %v4748_v10 = vcombine.high %v8928_v8, %v8927_v62  ;;  %v4747_v53 = vcombine.low %v8928_v8, %v8927_v62  ;;  %v8930_v32 = vld [vmem:[#allocation295_spill] sm:$0xff]  ;;  %v8953_v8 = vld [vmem:[#allocation273_spill] sm:$0xff] }
 0x324   :  { %4106 = vmatprep.mubr.bf16.mxu1 %v7210_v54 }
 0x325   :  { %4036 = vmatpush1.bf16.msra.mxu0 %v4707_v0  ;;  %v4744_v0 = vcombine.high %v8930_v32, %v8929_v39 }
 0x326   :  { %4077 = vmatpush1.bf16.msra.mxu1 %v4771_v2  ;;  %4037 = vmatprep.subr.bf16.mxu0 %v4704_v45  ;;  %v8931_v2 = vld [vmem:[#allocation361_spill] sm:$0xff]  ;;  %v4743_v45 = vcombine.low %v8930_v32, %v8929_v39  ;;  %v8956_v39 = vld [vmem:[#allocation335_spill] sm:$0xff] }
 0x327   :  { %4078 = vmatprep.subr.bf16.mxu1 %v4768_v56  ;;  %v4808_v6 = vcombine.high %v8932_v4, %v8931_v2  ;;  %v4807_v55 = vcombine.low %v8932_v4, %v8931_v2  ;;  %v8934_v56 = vld [vmem:[#allocation291_spill] sm:$0xff]  ;;  %v8957_v4 = vld [vmem:[#allocation269_spill] sm:$0xff] }
 0x329   :  { %4038 = vmatpush1.bf16.msra.mxu0 %v4703_v52  ;;  %v4740_v52 = vcombine.high %v8934_v56, %v8933_v46 }
 0x32a   :  { %4079 = vmatpush1.bf16.msra.mxu1 %v4767_v44  ;;  %4039 = vmatprep.subr.bf16.mxu0 %v4700_v23  ;;  %v8935_v44 = vld [vmem:[#allocation357_spill] sm:$0xff]  ;;  %v4739_v23 = vcombine.low %v8934_v56, %v8933_v46  ;;  %v8960_v46 = vld [vmem:[#allocation331_spill] sm:$0xff] }
 0x32b   :  { %4080 = vmatprep.subr.bf16.mxu1 %v4764_v11  ;;  %v4804_v63 = vcombine.high %v8936_v3, %v8935_v44  ;;  %v4803_v40 = vcombine.low %v8936_v3, %v8935_v44  ;;  %v8938_v11 = vld [vmem:[#allocation287_spill] sm:$0xff] }
 0x32c   :  { %v8961_v3 = vld [vmem:[#allocation23_spill] sm:$0xff] }
 0x32d   :  { %4040 = vmatpush1.bf16.msra.mxu0 %v4699_v15  ;;  %v4736_v15 = vcombine.high %v8938_v11, %v8937_v38 }
 0x32e   :  { %4081 = vmatpush1.bf16.msra.mxu1 %v4763_v19  ;;  %4041 = vmatprep.subr.bf16.mxu0 %v4696_v17  ;;  %v8939_v19 = vld [vmem:[#allocation353_spill] sm:$0xff]  ;;  %v4735_v17 = vcombine.low %v8938_v11, %v8937_v38 }
 0x32f   :  { %4082 = vmatprep.subr.bf16.mxu1 %v4760_v28  ;;  %v4800_v60 = vcombine.high %v8940_v31, %v8939_v19  ;;  %v4799_v58 = vcombine.low %v8940_v31, %v8939_v19  ;;  %v8942_v28 = vld [vmem:[#allocation283_spill] sm:$0xff]  ;;  %v8964_v38 = vld [vmem:[#allocation73_spill] sm:$0xff] }
 0x330   :  { %v8965_v31 = vld [vmem:[#allocation21_spill] sm:$0xff] }
 0x331   :  { %4042 = vmatpush1.bf16.msra.mxu0 %v4695_v13  ;;  %v4732_v13 = vcombine.high %v8942_v28, %v8941_v42 }
 0x332   :  { %4083 = vmatpush1.bf16.msra.mxu1 %v4759_v30  ;;  %4043 = vmatprep.subr.bf16.mxu0 %v4692_v33  ;;  %v8943_v30 = vld [vmem:[#allocation349_spill] sm:$0xff]  ;;  %v4731_v33 = vcombine.low %v8942_v28, %v8941_v42  ;;  %v8968_v42 = vld [vmem:[#allocation71_spill] sm:$0xff] }
 0x333   :  { %4084 = vmatprep.subr.bf16.mxu1 %v4756_v26  ;;  %v4796_v21 = vcombine.high %v8944_v59, %v8943_v30  ;;  %v4795_v9 = vcombine.low %v8944_v59, %v8943_v30  ;;  %v8946_v26 = vld [vmem:[#allocation279_spill] sm:$0xff] }
 0x334   :  { %v8969_v59 = vld [vmem:[#allocation19_spill] sm:$0xff] }
 0x335   :  { %4044 = vmatpush1.bf16.msra.mxu0 %v4691_v51  ;;  %v4728_v51 = vcombine.high %v8946_v26, %v8945_v24 }
 0x336   :  { %4085 = vmatpush1.bf16.msra.mxu1 %v4755_v5  ;;  %4045 = vmatprep.subr.bf16.mxu0 %v4688_v43  ;;  %v8947_v5 = vld [vmem:[#allocation345_spill] sm:$0xff]  ;;  %v4727_v43 = vcombine.low %v8946_v26, %v8945_v24 }
 0x337   :  { %4086 = vmatprep.subr.bf16.mxu1 %v4752_v18  ;;  %v4792_v22 = vcombine.high %v8948_v20, %v8947_v5  ;;  %v4791_v1 = vcombine.low %v8948_v20, %v8947_v5  ;;  %v8950_v18 = vld [vmem:[#allocation275_spill] sm:$0xff]  ;;  %v8972_v24 = vld [vmem:[#allocation69_spill] sm:$0xff] }
 0x338   :  { %v8973_v20 = vld [vmem:[#allocation17_spill] sm:$0xff] }
 0x339   :  { %4046 = vmatpush1.bf16.msra.mxu0 %v4687_v35  ;;  %v4724_v35 = vcombine.high %v8950_v18, %v8949_v16 }
 0x33a   :  { %4087 = vmatpush1.bf16.msra.mxu1 %v4751_v12  ;;  %4047 = vmatprep.subr.bf16.mxu0 %v4684_v61  ;;  %v8951_v12 = vld [vmem:[#allocation341_spill] sm:$0xff]  ;;  %v4723_v61 = vcombine.low %v8950_v18, %v8949_v16  ;;  %v8976_v16 = vld [vmem:[#allocation67_spill] sm:$0xff] }
 0x33b   :  { %4088 = vmatprep.subr.bf16.mxu1 %v4748_v10  ;;  %v4788_v57 = vcombine.high %v8952_v14, %v8951_v12  ;;  %v4787_v62 = vcombine.low %v8952_v14, %v8951_v12  ;;  %v8954_v10 = vld [vmem:[#allocation271_spill] sm:$0xff]  ;;  %v8978_v12 = vld [vmem:[#allocation14_spill] sm:$0xff] }
 0x33d   :  { %4048 = vmatpush1.bf16.msra.mxu0 %v4683_v49  ;;  %v4720_v49 = vcombine.high %v8954_v10, %v8953_v8 }
 0x33e   :  { %4089 = vmatpush1.bf16.msra.mxu1 %v4747_v53  ;;  %4049 = vmatprep.subr.bf16.mxu0 %v4744_v0  ;;  %v8955_v53 = vld [vmem:[#allocation337_spill] sm:$0xff]  ;;  %v4719_v0 = vcombine.low %v8954_v10, %v8953_v8 }
 0x33f   :  { %4090 = vmatprep.subr.bf16.mxu1 %v4808_v6  ;;  %v4784_v32 = vcombine.high %v8956_v39, %v8955_v53  ;;  %v4783_v2 = vcombine.low %v8956_v39, %v8955_v53  ;;  %v8958_v6 = vld [vmem:[#allocation267_spill] sm:$0xff]  ;;  %v8982_v53 = vld [vmem:[#allocation12_spill] sm:$0xff] }
 0x341   :  { %4050 = vmatpush2.bf16.msra.mxu0 %v4743_v45  ;;  %v4716_v45 = vcombine.high %v8958_v6, %v8957_v4 }
 0x342   :  { %4091 = vmatpush2.bf16.msra.mxu1 %v4807_v55  ;;  %4051 = vmatprep.subr.bf16.mxu0 %v4740_v52  ;;  %v8959_v55 = vld [vmem:[#allocation333_spill] sm:$0xff]  ;;  %v4715_v52 = vcombine.low %v8958_v6, %v8957_v4 }
 0x343   :  { %4092 = vmatprep.subr.bf16.mxu1 %v4804_v63  ;;  %v4780_v56 = vcombine.high %v8960_v46, %v8959_v55  ;;  %v4779_v44 = vcombine.low %v8960_v46, %v8959_v55  ;;  %v8962_v63 = vld [vmem:[#allocation22_spill] sm:$0xff] }
 0x344   :  { %v8986_v55 = vld [vmem:[#allocation10_spill] sm:$0xff] }
 0x345   :  { %4052 = vmatpush2.bf16.msra.mxu0 %v4739_v23  ;;  %v4458_v23 = vcombine.high %v8962_v63, %v8961_v3 }
 0x346   :  { %4093 = vmatpush2.bf16.msra.mxu1 %v4803_v40  ;;  %4053 = vmatprep.subr.bf16.mxu0 %v4736_v15  ;;  %v8963_v40 = vld [vmem:[#allocation74_spill] sm:$0xff]  ;;  %v4457_v15 = vcombine.low %v8962_v63, %v8961_v3 }
 0x347   :  { %4094 = vmatprep.subr.bf16.mxu1 %v4800_v60  ;;  %v4522_v11 = vcombine.high %v8964_v38, %v8963_v40  ;;  %v4521_v19 = vcombine.low %v8964_v38, %v8963_v40  ;;  %v8966_v60 = vld [vmem:[#allocation20_spill] sm:$0xff]  ;;  %v8990_v40 = vld [vmem:[#allocation7_spill] sm:$0xff] }
 0x349   :  { %4054 = vmatpush2.bf16.msra.mxu0 %v4735_v17  ;;  %v4454_v17 = vcombine.high %v8966_v60, %v8965_v31 }
 0x34a   :  { %4095 = vmatpush2.bf16.msra.mxu1 %v4799_v58  ;;  %4055 = vmatprep.subr.bf16.mxu0 %v4732_v13  ;;  %v8967_v58 = vld [vmem:[#allocation72_spill] sm:$0xff]  ;;  %v4453_v13 = vcombine.low %v8966_v60, %v8965_v31 }
 0x34b   :  { %4096 = vmatprep.subr.bf16.mxu1 %v4796_v21  ;;  %v4518_v28 = vcombine.high %v8968_v42, %v8967_v58  ;;  %v4517_v30 = vcombine.low %v8968_v42, %v8967_v58  ;;  %v8970_v21 = vld [vmem:[#allocation18_spill] sm:$0xff]  ;;  %v8994_v58 = vld [vmem:[#allocation53_spill] sm:$0xff] }
 0x34d   :  { %4056 = vmatpush2.bf16.msra.mxu0 %v4731_v33  ;;  %v4450_v33 = vcombine.high %v8970_v21, %v8969_v59 }
 0x34e   :  { %4097 = vmatpush2.bf16.msra.mxu1 %v4795_v9  ;;  %4057 = vmatprep.subr.bf16.mxu0 %v4728_v51  ;;  %v8971_v9 = vld [vmem:[#allocation70_spill] sm:$0xff]  ;;  %v4449_v51 = vcombine.low %v8970_v21, %v8969_v59 }
 0x34f   :  { %4098 = vmatprep.subr.bf16.mxu1 %v4792_v22  ;;  %v4514_v26 = vcombine.high %v8972_v24, %v8971_v9  ;;  %v4513_v5 = vcombine.low %v8972_v24, %v8971_v9  ;;  %v8974_v22 = vld [vmem:[#allocation16_spill] sm:$0xff]  ;;  %v8998_v9 = vld [vmem:[#allocation49_spill] sm:$0xff] }
 0x351   :  { %4058 = vmatpush2.bf16.msra.mxu0 %v4727_v43  ;;  %v4446_v43 = vcombine.high %v8974_v22, %v8973_v20 }
 0x352   :  { %4099 = vmatpush2.bf16.msra.mxu1 %v4791_v1  ;;  %4059 = vmatprep.subr.bf16.mxu0 %v4724_v35  ;;  %v8975_v1 = vld [vmem:[#allocation68_spill] sm:$0xff]  ;;  %v8977_v35 = vld [vmem:[#allocation15_spill] sm:$0xff] }
 0x353   :  { %4100 = vmatprep.subr.bf16.mxu1 %v4788_v57  ;;  %v4510_v18 = vcombine.high %v8976_v16, %v8975_v1  ;;  %v4442_v14 = vcombine.high %v8978_v12, %v8977_v35  ;;  %v8979_v57 = vld [vmem:[#allocation66_spill] sm:$0xff]  ;;  %v4441_v8 = vcombine.low %v8978_v12, %v8977_v35 }
 0x355   :  { %4060 = vmatpush2.bf16.msra.mxu0 %v4723_v61  ;;  %v8980_v61 = vld [vmem:[#allocation65_spill] sm:$0xff] }
 0x356   :  { %4101 = vmatpush2.bf16.msra.mxu1 %v4787_v62  ;;  %4061 = vmatprep.subr.bf16.mxu0 %v4720_v49  ;;  %v4506_v62 = vcombine.high %v8980_v61, %v8979_v57  ;;  %v4505_v10 = vcombine.low %v8980_v61, %v8979_v57  ;;  %v8981_v49 = vld [vmem:[#allocation13_spill] sm:$0xff] }
 0x357   :  { %4102 = vmatprep.subr.bf16.mxu1 %v4784_v32  ;;  %v4438_v39 = vcombine.high %v8982_v53, %v8981_v49  ;;  %v8983_v32 = vld [vmem:[#allocation64_spill] sm:$0xff]  ;;  %v4437_v4 = vcombine.low %v8982_v53, %v8981_v49  ;;  %v9006_v57 = vld [vmem:[#allocation41_spill] sm:$0xff] }
 0x359   :  { %4062 = vmatpush2.bf16.msra.mxu0 %v4719_v0  ;;  %v8984_v0 = vld [vmem:[#allocation63_spill] sm:$0xff] }
 0x35a   :  { %4103 = vmatpush2.bf16.msra.mxu1 %v4783_v2  ;;  %4063 = vmatprep.subr.bf16.mxu0 %v4716_v45  ;;  %v4502_v2 = vcombine.high %v8984_v0, %v8983_v32  ;;  %v4501_v6 = vcombine.low %v8984_v0, %v8983_v32  ;;  %v8985_v45 = vld [vmem:[#allocation11_spill] sm:$0xff]  ;;  %v9010_v32 = vld [vmem:[#allocation37_spill] sm:$0xff] }
 0x35b   :  { %4104 = vmatprep.subr.bf16.mxu1 %v4780_v56  ;;  %v4434_v46 = vcombine.high %v8986_v55, %v8985_v45  ;;  %v8987_v56 = vld [vmem:[#allocation62_spill] sm:$0xff]  ;;  %v4433_v3 = vcombine.low %v8986_v55, %v8985_v45 }
 0x35d   :  { %4064 = vmatpush2.bf16.msra.mxu0 %v4715_v52  ;;  %v8988_v52 = vld [vmem:[#allocation61_spill] sm:$0xff] }
 0x35e   :  { %4105 = vmatpush2.bf16.msra.mxu1 %v4779_v44  ;;  %4115 = vmatprep.subr.bf16.mxu0 %v4458_v23  ;;  %v4498_v44 = vcombine.high %v8988_v52, %v8987_v56  ;;  %v4497_v63 = vcombine.low %v8988_v52, %v8987_v56  ;;  %v8989_v23 = vld [vmem:[#allocation9_spill] sm:$0xff] }
 0x35f   :  { %4156 = vmatprep.subr.bf16.mxu1 %v4522_v11  ;;  %v4430_v38 = vcombine.high %v8990_v40, %v8989_v23  ;;  %v8991_v11 = vld [vmem:[#allocation59_spill] sm:$0xff]  ;;  %v4429_v31 = vcombine.low %v8990_v40, %v8989_v23  ;;  %v9014_v56 = vld [vmem:[#allocation33_spill] sm:$0xff] }
 0x360   :  { %4066 = vmatmul.mubr.bf16.vlgmr.msra.gmra.mxu0 %v7246_v7 }
 0x361   :  { %4107 = vmatmul.mubr.bf16.vlgmr.msra.gmra.mxu1 %v7204_v47  ;;  %4116 = vmatpush1.bf16.msra.mxu0 %v4457_v15  ;;  %v8992_v15 = vld [vmem:[#allocation57_spill] sm:$0xff] }
 0x362   :  { %4157 = vmatpush1.bf16.msra.mxu1 %v4521_v19  ;;  %4117 = vmatprep.subr.bf16.mxu0 %v4454_v17  ;;  %v4494_v19 = vcombine.high %v8992_v15, %v8991_v11  ;;  %v4493_v60 = vcombine.low %v8992_v15, %v8991_v11  ;;  %v8993_v17 = vld [vmem:[#allocation55_spill] sm:$0xff]  ;;  %v9018_v11 = vld [vmem:[#allocation29_spill] sm:$0xff] }
 0x363   :  { %4158 = vmatprep.subr.bf16.mxu1 %v4518_v28  ;;  %4147 = vmatprep.mubr.bf16.mxu0 %v7213_v29  ;;  %v4445_v29 = vcombine.low %v8974_v22, %v8973_v20  ;;  %v4490_v42 = vcombine.high %v8994_v58, %v8993_v17  ;;  %v8995_v28 = vld [vmem:[#allocation106_spill] sm:$0xff]  ;;  %v4489_v59 = vcombine.low %v8994_v58, %v8993_v17 }
 0x364   :  { %4188 = vmatprep.mubr.bf16.mxu1 %v7222_v41  ;;  %v4509_v41 = vcombine.low %v8976_v16, %v8975_v1  ;;  %v9002_v1 = vld [vmem:[#allocation45_spill] sm:$0xff] }
 0x365   :  { %4118 = vmatpush1.bf16.msra.mxu0 %v4453_v13  ;;  %v8996_v13 = vld [vmem:[#allocation104_spill] sm:$0xff] }
 0x366   :  { %4159 = vmatpush1.bf16.msra.mxu1 %v4517_v30  ;;  %4119 = vmatprep.subr.bf16.mxu0 %v4450_v33  ;;  %v4554_v30 = vcombine.high %v8996_v13, %v8995_v28  ;;  %v4553_v21 = vcombine.low %v8996_v13, %v8995_v28  ;;  %v8997_v33 = vld [vmem:[#allocation51_spill] sm:$0xff]  ;;  %v9022_v28 = vld [vmem:[#allocation25_spill] sm:$0xff] }
 0x367   :  { %4160 = vmatprep.subr.bf16.mxu1 %v4514_v26  ;;  %v4486_v24 = vcombine.high %v8998_v9, %v8997_v33  ;;  %v8999_v26 = vld [vmem:[#allocation102_spill] sm:$0xff]  ;;  %v4485_v20 = vcombine.low %v8998_v9, %v8997_v33 }
 0x369   :  { %4120 = vmatpush1.bf16.msra.mxu0 %v4449_v51  ;;  %v9000_v51 = vld [vmem:[#allocation100_spill] sm:$0xff] }
 0x36a   :  { %4161 = vmatpush1.bf16.msra.mxu1 %v4513_v5  ;;  %4121 = vmatprep.subr.bf16.mxu0 %v4446_v43  ;;  %v4550_v5 = vcombine.high %v9000_v51, %v8999_v26  ;;  %v4549_v22 = vcombine.low %v9000_v51, %v8999_v26  ;;  %v9001_v43 = vld [vmem:[#allocation47_spill] sm:$0xff]  ;;  %v9026_v26 = vld [vmem:[#allocation136_spill] sm:$0xff] }
 0x36b   :  { %4162 = vmatprep.subr.bf16.mxu1 %v4510_v18  ;;  %v4482_v16 = vcombine.high %v9002_v1, %v9001_v43  ;;  %v9003_v18 = vld [vmem:[#allocation98_spill] sm:$0xff]  ;;  %v4481_v35 = vcombine.low %v9002_v1, %v9001_v43 }
 0x36d   :  { %4122 = vmatpush1.bf16.msra.mxu0 %v4445_v29  ;;  %v9004_v29 = vld [vmem:[#allocation96_spill] sm:$0xff] }
 0x36e   :  { %4163 = vmatpush1.bf16.msra.mxu1 %v4509_v41  ;;  %4123 = vmatprep.subr.bf16.mxu0 %v4442_v14  ;;  %v4546_v41 = vcombine.high %v9004_v29, %v9003_v18  ;;  %v4545_v12 = vcombine.low %v9004_v29, %v9003_v18  ;;  %v9005_v14 = vld [vmem:[#allocation43_spill] sm:$0xff]  ;;  %v9030_v18 = vld [vmem:[#allocation132_spill] sm:$0xff] }
 0x36f   :  { %4164 = vmatprep.subr.bf16.mxu1 %v4506_v62  ;;  %v4478_v61 = vcombine.high %v9006_v57, %v9005_v14  ;;  %v9007_v62 = vld [vmem:[#allocation94_spill] sm:$0xff]  ;;  %v4477_v49 = vcombine.low %v9006_v57, %v9005_v14 }
 0x371   :  { %4124 = vmatpush1.bf16.msra.mxu0 %v4441_v8  ;;  %v9008_v8 = vld [vmem:[#allocation92_spill] sm:$0xff] }
 0x372   :  { %4165 = vmatpush1.bf16.msra.mxu1 %v4505_v10  ;;  %4125 = vmatprep.subr.bf16.mxu0 %v4438_v39  ;;  %v4542_v10 = vcombine.high %v9008_v8, %v9007_v62  ;;  %v4541_v53 = vcombine.low %v9008_v8, %v9007_v62  ;;  %v9009_v39 = vld [vmem:[#allocation39_spill] sm:$0xff] }
 0x373   :  { %4166 = vmatprep.subr.bf16.mxu1 %v4502_v2  ;;  %v4474_v0 = vcombine.high %v9010_v32, %v9009_v39  ;;  %v9011_v2 = vld [vmem:[#allocation90_spill] sm:$0xff]  ;;  %v4473_v45 = vcombine.low %v9010_v32, %v9009_v39  ;;  %v9034_v39 = vld [vmem:[#allocation128_spill] sm:$0xff] }
 0x375   :  { %4126 = vmatpush1.bf16.msra.mxu0 %v4437_v4  ;;  %v9012_v4 = vld [vmem:[#allocation88_spill] sm:$0xff] }
 0x376   :  { %4167 = vmatpush1.bf16.msra.mxu1 %v4501_v6  ;;  %4127 = vmatprep.subr.bf16.mxu0 %v4434_v46  ;;  %v4538_v6 = vcombine.high %v9012_v4, %v9011_v2  ;;  %v4537_v55 = vcombine.low %v9012_v4, %v9011_v2  ;;  %v9013_v46 = vld [vmem:[#allocation35_spill] sm:$0xff] }
 0x377   :  { %4168 = vmatprep.subr.bf16.mxu1 %v4498_v44  ;;  %v4470_v52 = vcombine.high %v9014_v56, %v9013_v46  ;;  %v9015_v44 = vld [vmem:[#allocation86_spill] sm:$0xff]  ;;  %v4469_v23 = vcombine.low %v9014_v56, %v9013_v46 }
 0x379   :  { %4128 = vmatpush1.bf16.msra.mxu0 %v4433_v3  ;;  %v9016_v3 = vld [vmem:[#allocation84_spill] sm:$0xff] }
 0x37a   :  { %4169 = vmatpush1.bf16.msra.mxu1 %v4497_v63  ;;  %4129 = vmatprep.subr.bf16.mxu0 %v4430_v38  ;;  %v4534_v63 = vcombine.high %v9016_v3, %v9015_v44  ;;  %v4533_v40 = vcombine.low %v9016_v3, %v9015_v44  ;;  %v9017_v38 = vld [vmem:[#allocation31_spill] sm:$0xff]  ;;  %v9038_v44 = vld [vmem:[#allocation124_spill] sm:$0xff] }
 0x37b   :  { %4170 = vmatprep.subr.bf16.mxu1 %v4494_v19  ;;  %v4466_v15 = vcombine.high %v9018_v11, %v9017_v38  ;;  %v9019_v19 = vld [vmem:[#allocation82_spill] sm:$0xff]  ;;  %v4465_v17 = vcombine.low %v9018_v11, %v9017_v38  ;;  %v9042_v11 = vld [vmem:[#allocation120_spill] sm:$0xff] }
 0x37c   :  { %v9041_v38 = vld [vmem:[#allocation122_spill] sm:$0xff] }
 0x37d   :  { %4130 = vmatpush1.bf16.msra.mxu0 %v4429_v31  ;;  %v9020_v31 = vld [vmem:[#allocation80_spill] sm:$0xff] }
 0x37e   :  { %4171 = vmatpush1.bf16.msra.mxu1 %v4493_v60  ;;  %4131 = vmatprep.subr.bf16.mxu0 %v4490_v42  ;;  %v4530_v60 = vcombine.high %v9020_v31, %v9019_v19  ;;  %v4529_v58 = vcombine.low %v9020_v31, %v9019_v19  ;;  %v9021_v42 = vld [vmem:[#allocation27_spill] sm:$0xff]  ;;  %v9043_v19 = vld [vmem:[#allocation186_spill] sm:$0xff]  ;;  %v9044_v31 = vld [vmem:[#allocation184_spill] sm:$0xff] }
 0x37f   :  { %4172 = vmatprep.subr.bf16.mxu1 %v4554_v30  ;;  %v4462_v13 = vcombine.high %v9022_v28, %v9021_v42  ;;  %v9023_v30 = vld [vmem:[#allocation78_spill] sm:$0xff]  ;;  %v4461_v33 = vcombine.low %v9022_v28, %v9021_v42  ;;  %v9046_v28 = vld [vmem:[#allocation116_spill] sm:$0xff] }
 0x380   :  { %v9045_v42 = vld [vmem:[#allocation118_spill] sm:$0xff] }
 0x381   :  { %4132 = vmatpush2.bf16.msra.mxu0 %v4489_v59  ;;  %v9024_v59 = vld [vmem:[#allocation76_spill] sm:$0xff] }
 0x382   :  { %4173 = vmatpush2.bf16.msra.mxu1 %v4553_v21  ;;  %4133 = vmatprep.subr.bf16.mxu0 %v4486_v24  ;;  %v4526_v21 = vcombine.high %v9024_v59, %v9023_v30  ;;  %v4525_v9 = vcombine.low %v9024_v59, %v9023_v30  ;;  %v9025_v24 = vld [vmem:[#allocation138_spill] sm:$0xff]  ;;  %v9048_v59 = vld [vmem:[#allocation180_spill] sm:$0xff] }
 0x383   :  { %4174 = vmatprep.subr.bf16.mxu1 %v4550_v5  ;;  %v4586_v51 = vcombine.high %v9026_v26, %v9025_v24  ;;  %v9027_v5 = vld [vmem:[#allocation202_spill] sm:$0xff]  ;;  %v4585_v43 = vcombine.low %v9026_v26, %v9025_v24  ;;  %v9050_v26 = vld [vmem:[#allocation112_spill] sm:$0xff] }
 0x384   :  { %v9047_v30 = vld [vmem:[#allocation182_spill] sm:$0xff] }
 0x385   :  { %4134 = vmatpush2.bf16.msra.mxu0 %v4485_v20  ;;  %v9028_v20 = vld [vmem:[#allocation200_spill] sm:$0xff]  ;;  %v9049_v24 = vld [vmem:[#allocation114_spill] sm:$0xff] }
 0x386   :  { %4175 = vmatpush2.bf16.msra.mxu1 %v4549_v22  ;;  %4135 = vmatprep.subr.bf16.mxu0 %v4482_v16  ;;  %v4650_v22 = vcombine.high %v9028_v20, %v9027_v5  ;;  %v4649_v1 = vcombine.low %v9028_v20, %v9027_v5  ;;  %v9029_v16 = vld [vmem:[#allocation134_spill] sm:$0xff]  ;;  %v9052_v20 = vld [vmem:[#allocation176_spill] sm:$0xff] }
 0x387   :  { %4176 = vmatprep.subr.bf16.mxu1 %v4546_v41  ;;  %v4582_v29 = vcombine.high %v9030_v18, %v9029_v16  ;;  %v9031_v41 = vld [vmem:[#allocation198_spill] sm:$0xff]  ;;  %v4581_v62 = vcombine.low %v9030_v18, %v9029_v16  ;;  %v9054_v18 = vld [vmem:[#allocation108_spill] sm:$0xff] }
 0x388   :  { %v9051_v5 = vld [vmem:[#allocation178_spill] sm:$0xff] }
 0x389   :  { %4136 = vmatpush2.bf16.msra.mxu0 %v4481_v35  ;;  %v9032_v35 = vld [vmem:[#allocation196_spill] sm:$0xff]  ;;  %v9053_v16 = vld [vmem:[#allocation110_spill] sm:$0xff] }
 0x38a   :  { %4177 = vmatpush2.bf16.msra.mxu1 %v4545_v12  ;;  %4137 = vmatprep.subr.bf16.mxu0 %v4478_v61  ;;  %v4646_v12 = vcombine.high %v9032_v35, %v9031_v41  ;;  %v4645_v8 = vcombine.low %v9032_v35, %v9031_v41  ;;  %v9055_v41 = vld [vmem:[#allocation174_spill] sm:$0xff]  ;;  %v9056_v35 = vld [vmem:[#allocation172_spill] sm:$0xff] }
 0x38b   :  { %4178 = vmatprep.subr.bf16.mxu1 %v4542_v10 }
 0x38d   :  { %4138 = vmatpush2.bf16.msra.mxu0 %v4477_v49 }
 0x38e   :  { %4179 = vmatpush2.bf16.msra.mxu1 %v4541_v53  ;;  %4139 = vmatprep.subr.bf16.mxu0 %v4474_v0  ;;  %v9033_v53 = vld [vmem:[#allocation130_spill] sm:$0xff]  ;;  %v9036_v0 = vld [vmem:[#allocation192_spill] sm:$0xff] }
 0x38f   :  { %4180 = vmatprep.subr.bf16.mxu1 %v4538_v6  ;;  %v4578_v32 = vcombine.high %v9034_v39, %v9033_v53 }
 0x391   :  { %4140 = vmatpush2.bf16.msra.mxu0 %v4473_v45  ;;  %v4577_v45 = vcombine.low %v9034_v39, %v9033_v53  ;;  %v9060_v53 = vld [vmem:[#allocation232_spill] sm:$0xff] }
 0x392   :  { %4181 = vmatpush2.bf16.msra.mxu1 %v4537_v55  ;;  %4141 = vmatprep.subr.bf16.mxu0 %v4470_v52  ;;  %v9037_v52 = vld [vmem:[#allocation126_spill] sm:$0xff] }
 0x393   :  { %4182 = vmatprep.subr.bf16.mxu1 %v4534_v63  ;;  %v4574_v3 = vcombine.high %v9038_v44, %v9037_v52  ;;  %v9040_v63 = vld [vmem:[#allocation188_spill] sm:$0xff] }
 0x395   :  { %4142 = vmatpush2.bf16.msra.mxu0 %v4469_v23  ;;  %v4573_v23 = vcombine.low %v9038_v44, %v9037_v52  ;;  %v9065_v52 = vld [vmem:[#allocation162_spill] sm:$0xff]  ;;  %v9066_v44 = vld [vmem:[#allocation160_spill] sm:$0xff] }
 0x396   :  { %4183 = vmatpush2.bf16.msra.mxu1 %v4533_v40  ;;  %4143 = vmatprep.subr.bf16.mxu0 %v4466_v15  ;;  %v4570_v15 = vcombine.high %v9042_v11, %v9041_v38 }
 0x397   :  { %4184 = vmatprep.subr.bf16.mxu1 %v4530_v60  ;;  %v4634_v60 = vcombine.high %v9044_v31, %v9043_v19 }
 0x399   :  { %4144 = vmatpush2.bf16.msra.mxu0 %v4465_v17  ;;  %v4569_v17 = vcombine.low %v9042_v11, %v9041_v38  ;;  %v9069_v38 = vld [vmem:[#allocation158_spill] sm:$0xff]  ;;  %v9070_v11 = vld [vmem:[#allocation156_spill] sm:$0xff] }
 0x39a   :  { %4185 = vmatpush2.bf16.msra.mxu1 %v4529_v58  ;;  %4145 = vmatprep.subr.bf16.mxu0 %v4462_v13  ;;  %v4633_v58 = vcombine.low %v9044_v31, %v9043_v19  ;;  %v4566_v13 = vcombine.high %v9046_v28, %v9045_v42  ;;  %v9071_v19 = vld [vmem:[#allocation222_spill] sm:$0xff]  ;;  %v9072_v31 = vld [vmem:[#allocation220_spill] sm:$0xff] }
 0x39b   :  { %4186 = vmatprep.subr.bf16.mxu1 %v4526_v21  ;;  %v4630_v21 = vcombine.high %v9048_v59, %v9047_v30 }
 0x39d   :  { %4146 = vmatpush2.bf16.msra.mxu0 %v4461_v33  ;;  %v4565_v33 = vcombine.low %v9046_v28, %v9045_v42  ;;  %v9073_v42 = vld [vmem:[#allocation154_spill] sm:$0xff]  ;;  %v9074_v28 = vld [vmem:[#allocation152_spill] sm:$0xff] }
 0x39e   :  { %4187 = vmatpush2.bf16.msra.mxu1 %v4525_v9  ;;  %4197 = vmatprep.subr.bf16.mxu0 %v4586_v51  ;;  %v4629_v9 = vcombine.low %v9048_v59, %v9047_v30  ;;  %v4562_v51 = vcombine.high %v9050_v26, %v9049_v24  ;;  %v9075_v30 = vld [vmem:[#allocation218_spill] sm:$0xff]  ;;  %v9076_v59 = vld [vmem:[#allocation216_spill] sm:$0xff] }
 0x39f   :  { %4238 = vmatprep.subr.bf16.mxu1 %v4650_v22  ;;  %v4626_v22 = vcombine.high %v9052_v20, %v9051_v5 }
 0x3a0   :  { %v3903_v14 = vpop.f32.mrf.mxu0  ;;  %4148 = vmatmul.mubr.bf16.vlgmr.msra.gmra.mxu0 %v7206_v25  ;;  %v9035_v25 = vld [vmem:[#allocation194_spill] sm:$0xff] }
 0x3a1   :  { %v3944_v57 = vpop.f32.mrf.mxu1  ;;  %4189 = vmatmul.mubr.bf16.vlgmr.msra.gmra.mxu1 %v7218_v36  ;;  %4198 = vmatpush1.bf16.msra.mxu0 %v4585_v43  ;;  %v4642_v36 = vcombine.high %v9036_v0, %v9035_v25  ;;  %v4641_v55 = vcombine.low %v9036_v0, %v9035_v25  ;;  %v4561_v43 = vcombine.low %v9050_v26, %v9049_v24  ;;  %v9061_v0 = vld [vmem:[#allocation166_spill] sm:$0xff]  ;;  %v9078_v26 = vld [vmem:[#allocation148_spill] sm:$0xff] }
 0x3a2   :  { %v7790_v61 = vadd.f32 %v3944_v57, %v3903_v14  ;;  %4239 = vmatpush1.bf16.msra.mxu1 %v4649_v1  ;;  %v3905_v10 = vpop.f32.mrf.mxu0  ;;  %4199 = vmatprep.subr.bf16.mxu0 %v4582_v29  ;;  %v4625_v1 = vcombine.low %v9052_v20, %v9051_v5  ;;  %v4558_v29 = vcombine.high %v9054_v18, %v9053_v16  ;;  %v9077_v24 = vld [vmem:[#allocation150_spill] sm:$0xff]  ;;  %v9080_v20 = vld [vmem:[#allocation212_spill] sm:$0xff] }
 0x3a3   :  { %v3946_v49 = vpop.f32.mrf.mxu1  ;;  %4240 = vmatprep.subr.bf16.mxu1 %v4646_v12  ;;  %4229 = vmatprep.mubr.bf16.mxu0 %v7232_v50  ;;  %v9039_v50 = vld [vmem:[#allocation190_spill] sm:$0xff]  ;;  %v4622_v12 = vcombine.high %v9056_v35, %v9055_v41  ;;  %v4557_v14 = vcombine.low %v9054_v18, %v9053_v16  ;;  %v4621_v57 = vcombine.low %v9056_v35, %v9055_v41  ;;  %v9082_v18 = vld [vmem:[#allocation144_spill] sm:$0xff] }
 0x3a4   :  { %v7800_v2 = vadd.f32 %v3946_v49, %v3905_v10  ;;  %4270 = vmatprep.mubr.bf16.mxu1 %v7242_v37  ;;  %v3907_v4 = vpop.f32.mrf.mxu0  ;;  %v4638_v37 = vcombine.high %v9040_v63, %v9039_v50  ;;  %v4637_v40 = vcombine.low %v9040_v63, %v9039_v50  ;;  %v9059_v49 = vld [vmem:[#allocation234_spill] sm:$0xff]  ;;  %v9068_v63 = vld [vmem:[#allocation224_spill] sm:$0xff] }
 0x3a5   :  { %v3948_v6 = vpop.f32.mrf.mxu1  ;;  %4200 = vmatpush1.bf16.msra.mxu0 %v4581_v62  ;;  %v9057_v62 = vld [vmem:[#allocation170_spill] sm:$0xff]  ;;  %v4682_v39 = vcombine.high %v9060_v53, %v9059_v49  ;;  %v4681_v25 = vcombine.low %v9060_v53, %v9059_v49  ;;  %v9084_v35 = vld [vmem:[#allocation208_spill] sm:$0xff] }
 0x3a6   :  { %4241 = vmatpush1.bf16.msra.mxu1 %v4645_v8  ;;  %v3908_v46 = vpop.f32.mrf.mxu0  ;;  %4201 = vmatprep.subr.bf16.mxu0 %v4578_v32  ;;  %v9058_v8 = vld [vmem:[#allocation168_spill] sm:$0xff]  ;;  %v9063_v6 = vld [vmem:[#allocation230_spill] sm:$0xff] }
 0x3a7   :  { %v3949_v56 = vpop.f32.mrf.mxu1  ;;  %4242 = vmatprep.subr.bf16.mxu1 %v4642_v36  ;;  %v4618_v10 = vcombine.high %v9058_v8, %v9057_v62  ;;  %v4617_v32 = vcombine.low %v9058_v8, %v9057_v62  ;;  %v9062_v36 = vld [vmem:[#allocation164_spill] sm:$0xff]  ;;  %v9067_v50 = vld [vmem:[#allocation226_spill] sm:$0xff] }
 0x3a8   :  { %v4614_v4 = vcombine.high %v9062_v36, %v9061_v0  ;;  %v4613_v46 = vcombine.low %v9062_v36, %v9061_v0  ;;  %v9079_v5 = vld [vmem:[#allocation214_spill] sm:$0xff]  ;;  %v9086_v8 = vld [vmem:[#allocation140_spill] sm:$0xff] }
 0x3a9   :  { %4202 = vmatpush1.bf16.msra.mxu0 %v4577_v45  ;;  %v9064_v45 = vld [vmem:[#allocation228_spill] sm:$0xff]  ;;  %v9081_v16 = vld [vmem:[#allocation146_spill] sm:$0xff] }
 0x3aa   :  { %4243 = vmatpush1.bf16.msra.mxu1 %v4641_v55  ;;  %4203 = vmatprep.subr.bf16.mxu0 %v4574_v3  ;;  %v4678_v55 = vcombine.high %v9064_v45, %v9063_v6  ;;  %v4677_v56 = vcombine.low %v9064_v45, %v9063_v6  ;;  %v4610_v3 = vcombine.high %v9066_v44, %v9065_v52  ;;  %v9083_v41 = vld [vmem:[#allocation210_spill] sm:$0xff]  ;;  %v9088_v53 = vld [vmem:[#allocation204_spill] sm:$0xff] }
 0x3ab   :  { %4244 = vmatprep.subr.bf16.mxu1 %v4638_v37  ;;  %v4674_v37 = vcombine.high %v9068_v63, %v9067_v50  ;;  %v9085_v62 = vld [vmem:[#allocation142_spill] sm:$0xff]  ;;  %v9090_v36 = vld [vmem:[#allocation264_spill] sm:$0xff] }
 0x3ac   :  { %v9087_v49 = vld [vmem:[#allocation206_spill] sm:$0xff]  ;;  %v9092_v45 = vld [vmem:[#allocation328_spill] sm:$0xff] }
 0x3ad   :  { %4204 = vmatpush1.bf16.msra.mxu0 %v4573_v23  ;;  %v4609_v23 = vcombine.low %v9066_v44, %v9065_v52  ;;  %v9089_v0 = vld [vmem:[#allocation266_spill] sm:$0xff]  ;;  %v9094_v44 = vld [vmem:[#allocation260_spill] sm:$0xff] }
 0x3ae   :  { %4245 = vmatpush1.bf16.msra.mxu1 %v4637_v40  ;;  %4205 = vmatprep.subr.bf16.mxu0 %v4570_v15  ;;  %v4673_v40 = vcombine.low %v9068_v63, %v9067_v50  ;;  %v4606_v15 = vcombine.high %v9070_v11, %v9069_v38  ;;  %v9091_v6 = vld [vmem:[#allocation330_spill] sm:$0xff]  ;;  %v9096_v63 = vld [vmem:[#allocation324_spill] sm:$0xff] }
 0x3af   :  { %4246 = vmatprep.subr.bf16.mxu1 %v4634_v60  ;;  %v4670_v60 = vcombine.high %v9072_v31, %v9071_v19  ;;  %v9093_v52 = vld [vmem:[#allocation262_spill] sm:$0xff] }
 0x3b0   :  { %v9095_v50 = vld [vmem:[#allocation326_spill] sm:$0xff] }
 0x3b1   :  { %4206 = vmatpush1.bf16.msra.mxu0 %v4569_v17  ;;  %v4605_v17 = vcombine.low %v9070_v11, %v9069_v38  ;;  %v4709_v38 = vcombine.low %v9094_v44, %v9093_v52  ;;  %v4773_v11 = vcombine.low %v9096_v63, %v9095_v50 }
 0x3b2   :  { %4247 = vmatpush1.bf16.msra.mxu1 %v4633_v58  ;;  %4207 = vmatprep.subr.bf16.mxu0 %v4566_v13  ;;  %v4669_v58 = vcombine.low %v9072_v31, %v9071_v19  ;;  %v4602_v13 = vcombine.high %v9074_v28, %v9073_v42  ;;  %v9097_v31 = vld [vmem:[#allocation258_spill] sm:$0xff] }
 0x3b3   :  { %4248 = vmatprep.subr.bf16.mxu1 %v4630_v21  ;;  %v4666_v21 = vcombine.high %v9076_v59, %v9075_v30 }
 0x3b5   :  { %4208 = vmatpush1.bf16.msra.mxu0 %v4565_v33  ;;  %v4601_v33 = vcombine.low %v9074_v28, %v9073_v42 }
 0x3b6   :  { %4249 = vmatpush1.bf16.msra.mxu1 %v4629_v9  ;;  %4209 = vmatprep.subr.bf16.mxu0 %v4562_v51  ;;  %v4665_v9 = vcombine.low %v9076_v59, %v9075_v30  ;;  %v4598_v51 = vcombine.high %v9078_v26, %v9077_v24 }
 0x3b7   :  { %4250 = vmatprep.subr.bf16.mxu1 %v4626_v22  ;;  %v4662_v22 = vcombine.high %v9080_v20, %v9079_v5 }
 0x3b9   :  { %4210 = vmatpush1.bf16.msra.mxu0 %v4561_v43  ;;  %v4597_v43 = vcombine.low %v9078_v26, %v9077_v24  ;;  %v9104_v26 = vld [vmem:[#allocation316_spill] sm:$0xff] }
 0x3ba   :  { %4251 = vmatpush1.bf16.msra.mxu1 %v4625_v1  ;;  %4211 = vmatprep.subr.bf16.mxu0 %v4558_v29  ;;  %v4661_v1 = vcombine.low %v9080_v20, %v9079_v5  ;;  %v4594_v29 = vcombine.high %v9082_v18, %v9081_v16  ;;  %v9105_v20 = vld [vmem:[#allocation250_spill] sm:$0xff] }
 0x3bb   :  { %4252 = vmatprep.subr.bf16.mxu1 %v4622_v12  ;;  %v4658_v12 = vcombine.high %v9084_v35, %v9083_v41 }
 0x3bd   :  { %4212 = vmatpush1.bf16.msra.mxu0 %v4557_v14  ;;  %v4593_v14 = vcombine.low %v9082_v18, %v9081_v16  ;;  %v9108_v16 = vld [vmem:[#allocation312_spill] sm:$0xff] }
 0x3be   :  { %4253 = vmatpush1.bf16.msra.mxu1 %v4621_v57  ;;  %4213 = vmatprep.subr.bf16.mxu0 %v4618_v10  ;;  %v4657_v57 = vcombine.low %v9084_v35, %v9083_v41  ;;  %v4590_v10 = vcombine.high %v9086_v8, %v9085_v62  ;;  %v9109_v35 = vld [vmem:[#allocation246_spill] sm:$0xff] }
 0x3bf   :  { %4254 = vmatprep.subr.bf16.mxu1 %v4682_v39  ;;  %v4654_v39 = vcombine.high %v9088_v53, %v9087_v49 }
 0x3c1   :  { %4214 = vmatpush2.bf16.msra.mxu0 %v4617_v32  ;;  %v4589_v32 = vcombine.low %v9086_v8, %v9085_v62  ;;  %v9112_v62 = vld [vmem:[#allocation308_spill] sm:$0xff] }
 0x3c2   :  { %4255 = vmatpush2.bf16.msra.mxu1 %v4681_v25  ;;  %4215 = vmatprep.subr.bf16.mxu0 %v4614_v4  ;;  %v4653_v25 = vcombine.low %v9088_v53, %v9087_v49  ;;  %v4714_v4 = vcombine.high %v9090_v36, %v9089_v0  ;;  %v9113_v53 = vld [vmem:[#allocation242_spill] sm:$0xff] }
 0x3c3   :  { %4256 = vmatprep.subr.bf16.mxu1 %v4678_v55  ;;  %v4778_v55 = vcombine.high %v9092_v45, %v9091_v6 }
 0x3c5   :  { %4216 = vmatpush2.bf16.msra.mxu0 %v4613_v46  ;;  %v4713_v46 = vcombine.low %v9090_v36, %v9089_v0  ;;  %v9116_v0 = vld [vmem:[#allocation304_spill] sm:$0xff] }
 0x3c6   :  { %4257 = vmatpush2.bf16.msra.mxu1 %v4677_v56  ;;  %4217 = vmatprep.subr.bf16.mxu0 %v4610_v3  ;;  %v4777_v56 = vcombine.low %v9092_v45, %v9091_v6  ;;  %v4710_v3 = vcombine.high %v9094_v44, %v9093_v52  ;;  %v9117_v45 = vld [vmem:[#allocation238_spill] sm:$0xff]  ;;  %v9120_v52 = vld [vmem:[#allocation300_spill] sm:$0xff] }
 0x3c7   :  { %4258 = vmatprep.subr.bf16.mxu1 %v4674_v37  ;;  %v4774_v37 = vcombine.high %v9096_v63, %v9095_v50  ;;  %v9121_v63 = vld [vmem:[#allocation298_spill] sm:$0xff] }
 0x3c9   :  { %4218 = vmatpush2.bf16.msra.mxu0 %v4609_v23 }
 0x3ca   :  { %4259 = vmatpush2.bf16.msra.mxu1 %v4673_v40  ;;  %4219 = vmatprep.subr.bf16.mxu0 %v4606_v15 }
 0x3cb   :  { %4260 = vmatprep.subr.bf16.mxu1 %v4670_v60  ;;  %v9098_v60 = vld [vmem:[#allocation256_spill] sm:$0xff] }
 0x3cd   :  { %4220 = vmatpush2.bf16.msra.mxu0 %v4605_v17  ;;  %v4706_v17 = vcombine.high %v9098_v60, %v9097_v31 }
 0x3ce   :  { %4261 = vmatpush2.bf16.msra.mxu1 %v4669_v58  ;;  %4221 = vmatprep.subr.bf16.mxu0 %v4602_v13  ;;  %v9100_v58 = vld [vmem:[#allocation320_spill] sm:$0xff]  ;;  %v4705_v13 = vcombine.low %v9098_v60, %v9097_v31 }
 0x3cf   :  { %4262 = vmatprep.subr.bf16.mxu1 %v4666_v21  ;;  %v9124_v31 = vld [vmem:[#allocation360_spill] sm:$0xff] }
 0x3d1   :  { %4222 = vmatpush2.bf16.msra.mxu0 %v4601_v33  ;;  %v9101_v33 = vld [vmem:[#allocation254_spill] sm:$0xff] }
 0x3d2   :  { %4263 = vmatpush2.bf16.msra.mxu1 %v4665_v9  ;;  %4223 = vmatprep.subr.bf16.mxu0 %v4598_v51  ;;  %v9102_v9 = vld [vmem:[#allocation252_spill] sm:$0xff] }
 0x3d3   :  { %4264 = vmatprep.subr.bf16.mxu1 %v4662_v22  ;;  %v4702_v24 = vcombine.high %v9102_v9, %v9101_v33  ;;  %v4701_v51 = vcombine.low %v9102_v9, %v9101_v33  ;;  %v9106_v22 = vld [vmem:[#allocation248_spill] sm:$0xff]  ;;  %v9129_v33 = vld [vmem:[#allocation290_spill] sm:$0xff] }
 0x3d4   :  { %v9130_v9 = vld [vmem:[#allocation288_spill] sm:$0xff] }
 0x3d5   :  { %4224 = vmatpush2.bf16.msra.mxu0 %v4597_v43  ;;  %v4698_v43 = vcombine.high %v9106_v22, %v9105_v20 }
 0x3d6   :  { %4265 = vmatpush2.bf16.msra.mxu1 %v4661_v1  ;;  %4225 = vmatprep.subr.bf16.mxu0 %v4594_v29  ;;  %v9107_v1 = vld [vmem:[#allocation314_spill] sm:$0xff]  ;;  %v4697_v29 = vcombine.low %v9106_v22, %v9105_v20  ;;  %v9134_v22 = vld [vmem:[#allocation284_spill] sm:$0xff] }
 0x3d7   :  { %4266 = vmatprep.subr.bf16.mxu1 %v4658_v12  ;;  %v4762_v18 = vcombine.high %v9108_v16, %v9107_v1  ;;  %v4761_v41 = vcombine.low %v9108_v16, %v9107_v1  ;;  %v9110_v12 = vld [vmem:[#allocation244_spill] sm:$0xff]  ;;  %v9133_v20 = vld [vmem:[#allocation286_spill] sm:$0xff] }
 0x3d8   :  { %v9135_v1 = vld [vmem:[#allocation350_spill] sm:$0xff]  ;;  %v9136_v16 = vld [vmem:[#allocation348_spill] sm:$0xff] }
 0x3d9   :  { %4226 = vmatpush2.bf16.msra.mxu0 %v4593_v14  ;;  %v4694_v14 = vcombine.high %v9110_v12, %v9109_v35 }
 0x3da   :  { %4267 = vmatpush2.bf16.msra.mxu1 %v4657_v57  ;;  %4227 = vmatprep.subr.bf16.mxu0 %v4590_v10  ;;  %v9111_v57 = vld [vmem:[#allocation310_spill] sm:$0xff]  ;;  %v4693_v10 = vcombine.low %v9110_v12, %v9109_v35  ;;  %v9138_v12 = vld [vmem:[#allocation280_spill] sm:$0xff] }
 0x3db   :  { %4268 = vmatprep.subr.bf16.mxu1 %v4654_v39  ;;  %v4758_v8 = vcombine.high %v9112_v62, %v9111_v57  ;;  %v4757_v49 = vcombine.low %v9112_v62, %v9111_v57  ;;  %v9114_v39 = vld [vmem:[#allocation240_spill] sm:$0xff]  ;;  %v9137_v35 = vld [vmem:[#allocation282_spill] sm:$0xff] }
 0x3dc   :  { %v9139_v57 = vld [vmem:[#allocation346_spill] sm:$0xff]  ;;  %v9140_v62 = vld [vmem:[#allocation344_spill] sm:$0xff] }
 0x3dd   :  { %4228 = vmatpush2.bf16.msra.mxu0 %v4589_v32  ;;  %v4690_v32 = vcombine.high %v9114_v39, %v9113_v53 }
 0x3de   :  { %4269 = vmatpush2.bf16.msra.mxu1 %v4653_v25  ;;  %4279 = vmatprep.subr.bf16.mxu0 %v4714_v4  ;;  %v9115_v25 = vld [vmem:[#allocation306_spill] sm:$0xff]  ;;  %v4689_v4 = vcombine.low %v9114_v39, %v9113_v53  ;;  %v9142_v39 = vld [vmem:[#allocation276_spill] sm:$0xff] }
 0x3df   :  { %4320 = vmatprep.subr.bf16.mxu1 %v4778_v55  ;;  %v4754_v36 = vcombine.high %v9116_v0, %v9115_v25  ;;  %v4753_v6 = vcombine.low %v9116_v0, %v9115_v25  ;;  %v9118_v55 = vld [vmem:[#allocation236_spill] sm:$0xff]  ;;  %v9141_v53 = vld [vmem:[#allocation278_spill] sm:$0xff] }
 0x3e0   :  { %v7924_v23 = vpop.f32.mrf.mxu0  ;;  %4230 = vmatmul.mubr.bf16.vlgmr.msra.gmra.mxu0 %v7228_v48  ;;  %v9099_v48 = vld [vmem:[#allocation322_spill] sm:$0xff]  ;;  %v9144_v0 = vld [vmem:[#allocation340_spill] sm:$0xff] }
 0x3e1   :  { %v7926_v40 = vpop.f32.mrf.mxu1  ;;  %4271 = vmatmul.mubr.bf16.vlgmr.msra.gmra.mxu1 %v7238_v34  ;;  %4280 = vmatpush1.bf16.msra.mxu0 %v4713_v46  ;;  %v4770_v34 = vcombine.high %v9100_v58, %v9099_v48  ;;  %v4769_v30 = vcombine.low %v9100_v58, %v9099_v48  ;;  %v4686_v46 = vcombine.high %v9118_v55, %v9117_v45  ;;  %v9125_v58 = vld [vmem:[#allocation294_spill] sm:$0xff] }
 0x3e2   :  { %4321 = vmatpush1.bf16.msra.mxu1 %v4777_v56  ;;  %v7934_v15 = vpop.f32.mrf.mxu0  ;;  %4281 = vmatprep.subr.bf16.mxu0 %v4710_v3  ;;  %v9119_v56 = vld [vmem:[#allocation302_spill] sm:$0xff]  ;;  %v4685_v3 = vcombine.low %v9118_v55, %v9117_v45  ;;  %v9146_v55 = vld [vmem:[#allocation272_spill] sm:$0xff] }
 0x3e3   :  { %v7936_v19 = vpop.f32.mrf.mxu1  ;;  %4322 = vmatprep.subr.bf16.mxu1 %v4774_v37  ;;  %4311 = vmatprep.mubr.bf16.mxu0 %v7248_v27  ;;  %v9103_v27 = vld [vmem:[#allocation318_spill] sm:$0xff]  ;;  %v4750_v44 = vcombine.high %v9120_v52, %v9119_v56  ;;  %v4749_v50 = vcombine.low %v9120_v52, %v9119_v56  ;;  %v9122_v37 = vld [vmem:[#allocation296_spill] sm:$0xff] }
 0x3e4   :  { %4352 = vmatprep.mubr.bf16.mxu1 %v7210_v54  ;;  %v3989_v42 = vpop.f32.mrf.mxu0  ;;  %v4766_v54 = vcombine.high %v9104_v26, %v9103_v27  ;;  %v4765_v5 = vcombine.low %v9104_v26, %v9103_v27  ;;  %v9131_v27 = vld [vmem:[#allocation354_spill] sm:$0xff]  ;;  %v9132_v26 = vld [vmem:[#allocation352_spill] sm:$0xff] }
 0x3e5   :  { %v4030_v28 = vpop.f32.mrf.mxu1  ;;  %4282 = vmatpush1.bf16.msra.mxu0 %v4709_v38  ;;  %v4746_v38 = vcombine.high %v9122_v37, %v9121_v63  ;;  %v9143_v25 = vld [vmem:[#allocation342_spill] sm:$0xff]  ;;  %v9148_v52 = vld [vmem:[#allocation336_spill] sm:$0xff] }
 0x3e6   :  { %4323 = vmatpush1.bf16.msra.mxu1 %v4773_v11  ;;  %v3990_v59 = vpop.f32.mrf.mxu0  ;;  %4283 = vmatprep.subr.bf16.mxu0 %v4706_v17  ;;  %v9123_v11 = vld [vmem:[#allocation362_spill] sm:$0xff]  ;;  %v4745_v17 = vcombine.low %v9122_v37, %v9121_v63  ;;  %v9150_v37 = vld [vmem:[#allocation268_spill] sm:$0xff] }
 0x3e7   :  { %v4031_v21 = vpop.f32.mrf.mxu1  ;;  %4324 = vmatprep.subr.bf16.mxu1 %v4770_v34  ;;  %v4810_v60 = vcombine.high %v9124_v31, %v9123_v11  ;;  %v4809_v48 = vcombine.low %v9124_v31, %v9123_v11  ;;  %v9126_v34 = vld [vmem:[#allocation292_spill] sm:$0xff]  ;;  %v9127_v28 = vld [vmem:[#allocation358_spill] sm:$0xff] }
 0x3e8   :  { %v4742_v42 = vcombine.high %v9126_v34, %v9125_v58  ;;  %v4741_v59 = vcombine.low %v9126_v34, %v9125_v58  ;;  %v9145_v45 = vld [vmem:[#allocation274_spill] sm:$0xff]  ;;  %v9152_v31 = vld [vmem:[#allocation332_spill] sm:$0xff]  ;;  %v3986_v58 = vadd.f32 %v7924_v23, %v7790_v61  ;;  %v3988_v34 = vadd.f32 %v7934_v15, %v7800_v2 }
 0x3e9   :  { %4284 = vmatpush1.bf16.msra.mxu0 %v4705_v13  ;;  %v9128_v13 = vld [vmem:[#allocation356_spill] sm:$0xff]  ;;  %v9147_v56 = vld [vmem:[#allocation338_spill] sm:$0xff] }
 0x3ea   :  { %4325 = vmatpush1.bf16.msra.mxu1 %v4769_v30  ;;  %4285 = vmatprep.subr.bf16.mxu0 %v4702_v24  ;;  %v4806_v30 = vcombine.high %v9128_v13, %v9127_v28  ;;  %v4805_v21 = vcombine.low %v9128_v13, %v9127_v28  ;;  %v4738_v24 = vcombine.high %v9130_v9, %v9129_v33  ;;  %v9149_v63 = vld [vmem:[#allocation270_spill] sm:$0xff] }
 0x3eb   :  { %4326 = vmatprep.subr.bf16.mxu1 %v4766_v54  ;;  %v4802_v54 = vcombine.high %v9132_v26, %v9131_v27  ;;  %v9151_v11 = vld [vmem:[#allocation334_spill] sm:$0xff] }
 0x3ed   :  { %4286 = vmatpush1.bf16.msra.mxu0 %v4701_v51  ;;  %v4737_v51 = vcombine.low %v9130_v9, %v9129_v33 }
 0x3ee   :  { %4327 = vmatpush1.bf16.msra.mxu1 %v4765_v5  ;;  %4287 = vmatprep.subr.bf16.mxu0 %v4698_v43  ;;  %v4801_v5 = vcombine.low %v9132_v26, %v9131_v27  ;;  %v4734_v43 = vcombine.high %v9134_v22, %v9133_v20 }
 0x3ef   :  { %4328 = vmatprep.subr.bf16.mxu1 %v4762_v18  ;;  %v4798_v18 = vcombine.high %v9136_v16, %v9135_v1 }
 0x3f1   :  { %4288 = vmatpush1.bf16.msra.mxu0 %v4697_v29  ;;  %v4733_v29 = vcombine.low %v9134_v22, %v9133_v20 }
 0x3f2   :  { %4329 = vmatpush1.bf16.msra.mxu1 %v4761_v41  ;;  %4289 = vmatprep.subr.bf16.mxu0 %v4694_v14  ;;  %v4797_v41 = vcombine.low %v9136_v16, %v9135_v1  ;;  %v4730_v14 = vcombine.high %v9138_v12, %v9137_v35 }
 0x3f3   :  { %4330 = vmatprep.subr.bf16.mxu1 %v4758_v8  ;;  %v4794_v8 = vcombine.high %v9140_v62, %v9139_v57 }
 0x3f5   :  { %4290 = vmatpush1.bf16.msra.mxu0 %v4693_v10  ;;  %v4729_v10 = vcombine.low %v9138_v12, %v9137_v35 }
 0x3f6   :  { %4331 = vmatpush1.bf16.msra.mxu1 %v4757_v49  ;;  %4291 = vmatprep.subr.bf16.mxu0 %v4690_v32  ;;  %v4793_v49 = vcombine.low %v9140_v62, %v9139_v57  ;;  %v4726_v32 = vcombine.high %v9142_v39, %v9141_v53 }
 0x3f7   :  { %4332 = vmatprep.subr.bf16.mxu1 %v4754_v36  ;;  %v4790_v36 = vcombine.high %v9144_v0, %v9143_v25 }
 0x3f9   :  { %4292 = vmatpush1.bf16.msra.mxu0 %v4689_v4  ;;  %v4725_v4 = vcombine.low %v9142_v39, %v9141_v53 }
 0x3fa   :  { %4333 = vmatpush1.bf16.msra.mxu1 %v4753_v6  ;;  %4293 = vmatprep.subr.bf16.mxu0 %v4686_v46  ;;  %v4789_v6 = vcombine.low %v9144_v0, %v9143_v25  ;;  %v4722_v46 = vcombine.high %v9146_v55, %v9145_v45 }
 0x3fb   :  { %4334 = vmatprep.subr.bf16.mxu1 %v4750_v44  ;;  %v4786_v44 = vcombine.high %v9148_v52, %v9147_v56 }
 0x3fd   :  { %4294 = vmatpush1.bf16.msra.mxu0 %v4685_v3  ;;  %v4721_v3 = vcombine.low %v9146_v55, %v9145_v45 }
 0x3fe   :  { %4335 = vmatpush1.bf16.msra.mxu1 %v4749_v50  ;;  %4295 = vmatprep.subr.bf16.mxu0 %v4746_v38  ;;  %v4785_v50 = vcombine.low %v9148_v52, %v9147_v56  ;;  %v4718_v38 = vcombine.high %v9150_v37, %v9149_v63 }
 0x3ff   :  { %4336 = vmatprep.subr.bf16.mxu1 %v4810_v60  ;;  %v4782_v60 = vcombine.high %v9152_v31, %v9151_v11 }
 0x401   :  { %4296 = vmatpush2.bf16.msra.mxu0 %v4745_v17  ;;  %v4717_v17 = vcombine.low %v9150_v37, %v9149_v63 }
 0x402   :  { %4337 = vmatpush2.bf16.msra.mxu1 %v4809_v48  ;;  %4297 = vmatprep.subr.bf16.mxu0 %v4742_v42  ;;  %v4781_v48 = vcombine.low %v9152_v31, %v9151_v11  ;;  %v4027_v42 = vadd.f32 %v7926_v40, %v3986_v58 }
 0x403   :  { %4338 = vmatprep.subr.bf16.mxu1 %v4806_v30  ;;  %v4029_v30 = vadd.f32 %v7936_v19, %v3988_v34 }
 0x405   :  { %4298 = vmatpush2.bf16.msra.mxu0 %v4741_v59 }
 0x406   :  { %4339 = vmatpush2.bf16.msra.mxu1 %v4805_v21  ;;  %4299 = vmatprep.subr.bf16.mxu0 %v4738_v24 }
 0x407   :  { %4340 = vmatprep.subr.bf16.mxu1 %v4802_v54 }
 0x409   :  { %4300 = vmatpush2.bf16.msra.mxu0 %v4737_v51 }
 0x40a   :  { %4341 = vmatpush2.bf16.msra.mxu1 %v4801_v5  ;;  %4301 = vmatprep.subr.bf16.mxu0 %v4734_v43 }
 0x40b   :  { %4342 = vmatprep.subr.bf16.mxu1 %v4798_v18 }
 0x40d   :  { %4302 = vmatpush2.bf16.msra.mxu0 %v4733_v29 }
 0x40e   :  { %4343 = vmatpush2.bf16.msra.mxu1 %v4797_v41  ;;  %4303 = vmatprep.subr.bf16.mxu0 %v4730_v14 }
 0x40f   :  { %4344 = vmatprep.subr.bf16.mxu1 %v4794_v8 }
 0x411   :  { %4304 = vmatpush2.bf16.msra.mxu0 %v4729_v10 }
 0x412   :  { %4345 = vmatpush2.bf16.msra.mxu1 %v4793_v49  ;;  %4305 = vmatprep.subr.bf16.mxu0 %v4726_v32 }
 0x413   :  { %4346 = vmatprep.subr.bf16.mxu1 %v4790_v36 }
 0x415   :  { %4306 = vmatpush2.bf16.msra.mxu0 %v4725_v4 }
 0x416   :  { %4347 = vmatpush2.bf16.msra.mxu1 %v4789_v6  ;;  %4307 = vmatprep.subr.bf16.mxu0 %v4722_v46 }
 0x417   :  { %4348 = vmatprep.subr.bf16.mxu1 %v4786_v44 }
 0x419   :  { %4308 = vmatpush2.bf16.msra.mxu0 %v4721_v3 }
 0x41a   :  { %4349 = vmatpush2.bf16.msra.mxu1 %v4785_v50  ;;  %4309 = vmatprep.subr.bf16.mxu0 %v4718_v38 }
 0x41b   :  { %4350 = vmatprep.subr.bf16.mxu1 %v4782_v60 }
 0x41d   :  { %4310 = vmatpush2.bf16.msra.mxu0 %v4717_v17 }
 0x41e   :  { %4351 = vmatpush2.bf16.msra.mxu1 %v4781_v48 }
 0x420   :  { %v4067_v28 = vpop.f32.mrf.mxu0  ;;  %4312 = vmatmul.mubr.bf16.vlgmr.msra.gmra.mxu0 %v7246_v7 }
 0x421   :  { %v4108_v13 = vpop.f32.mrf.mxu1  ;;  %4353 = vmatmul.mubr.bf16.vlgmr.msra.gmra.mxu1 %v7204_v47  ;;  %v4068_v59 = vadd.f32 %v4067_v28, %v4027_v42 }
 0x422   :  { %v4069_v21 = vpop.f32.mrf.mxu0 }
 0x423   :  { %v4110_v33 = vpop.f32.mrf.mxu1  ;;  %v4109_v9 = vadd.f32 %v4108_v13, %v4068_v59  ;;  %v4070_v61 = vadd.f32 %v4069_v21, %v4029_v30 }
 0x424   :  { %v4071_v23 = vpop.f32.mrf.mxu0 }
 0x425   :  { %v4112_v24 = vpop.f32.mrf.mxu1  ;;  %v4111_v2 = vadd.f32 %v4110_v33, %v4070_v61  ;;  %4361 = vst [vmem:[%s8078_s6] sm:$0xff] %v4109_v9 }
 0x426   :  { %v4072_v40 = vpop.f32.mrf.mxu0 }
 0x427   :  { %v4113_v15 = vpop.f32.mrf.mxu1  ;;  %4362 = vst [vmem:[%s8078_s6 + $0x8] sm:$0xff] %v4111_v2 }
 0x460   :  { %v4149_v47 = vpop.f32.mrf.mxu0 }
 0x461   :  { %v4190_v7 = vpop.f32.mrf.mxu1 }
 0x462   :  { %v4191_v19 = vadd.f32 %v4190_v7, %v4149_v47  ;;  %v4151_v27 = vpop.f32.mrf.mxu0 }
 0x463   :  { %v4192_v26 = vpop.f32.mrf.mxu1 }
 0x464   :  { %v4193_v54 = vadd.f32 %v4192_v26, %v4151_v27  ;;  %v4153_v51 = vpop.f32.mrf.mxu0 }
 0x465   :  { %v4194_v5 = vpop.f32.mrf.mxu1 }
 0x466   :  { %v4154_v20 = vpop.f32.mrf.mxu0 }
 0x467   :  { %v4195_v22 = vpop.f32.mrf.mxu1 }
 0x4a0   :  { %v4231_v43 = vpop.f32.mrf.mxu0 }
 0x4a1   :  { %v4272_v1 = vpop.f32.mrf.mxu1  ;;  %v4232_v14 = vadd.f32 %v4231_v43, %v4191_v19 }
 0x4a2   :  { %v4233_v16 = vpop.f32.mrf.mxu0 }
 0x4a3   :  { %v4274_v18 = vpop.f32.mrf.mxu1  ;;  %v4234_v57 = vadd.f32 %v4233_v16, %v4193_v54  ;;  %v4273_v62 = vadd.f32 %v4272_v1, %v4232_v14 }
 0x4a4   :  { %v4235_v29 = vpop.f32.mrf.mxu0 }
 0x4a5   :  { %v4276_v41 = vpop.f32.mrf.mxu1  ;;  %v4275_v49 = vadd.f32 %v4274_v18, %v4234_v57 }
 0x4a6   :  { %v4236_v35 = vpop.f32.mrf.mxu0 }
 0x4a7   :  { %v4277_v12 = vpop.f32.mrf.mxu1 }
 0x4e0   :  { %v4313_v8 = vpop.f32.mrf.mxu0 }
 0x4e1   :  { %v4354_v10 = vpop.f32.mrf.mxu1  ;;  %v4314_v53 = vadd.f32 %v4313_v8, %v4273_v62 }
 0x4e2   :  { %v4315_v39 = vpop.f32.mrf.mxu0 }
 0x4e3   :  { %v4356_v32 = vpop.f32.mrf.mxu1  ;;  %v4355_v25 = vadd.f32 %v4354_v10, %v4314_v53  ;;  %v4316_v0 = vadd.f32 %v4315_v39, %v4275_v49 }
 0x4e4   :  { %v4317_v36 = vpop.f32.mrf.mxu0 }
 0x4e5   :  { %v4358_v4 = vpop.f32.mrf.mxu1  ;;  %4363 = vst [vmem:[%s8078_s6 + $0x10] sm:$0xff] %v4355_v25  ;;  %v4357_v6 = vadd.f32 %v4356_v32, %v4316_v0 }
 0x4e6   :  { %v4318_v45 = vpop.f32.mrf.mxu0 }
 0x4e7   :  { %v4359_v55 = vpop.f32.mrf.mxu1  ;;  %4364 = vst [vmem:[%s8078_s6 + $0x18] sm:$0xff] %v4357_v6 }
 0x4e8   :  { %4369 = vsyncmov [#allocation3] }
 0x4eb   :  { %s4370_s24 = vpop.sfrf %4369 }
 0x4ec   :  { %p4811_p0 = scmp.ne.s32.totalorder %s4370_s24, 0 }
 0x4ee   :  { %4374 = shalt.err (%p4811_p0)  }

</bundles_post_ra>
